<compile_context>
chip_gen: v7x
topology: tpu7x:2x2x1
jax: 0.10.0
libtpu: 0.0.40
codegen_flags: <defaults>
</compile_context>

<pallas_src>
import functools

import jax
import jax.numpy as jnp
from jax.experimental import pallas as pl
from jax.experimental.pallas import tpu as pltpu


# ---------------------------------------------------------------------------
# Kernels
# ---------------------------------------------------------------------------

def _resident_kernel(a_ref, x_ref, o_ref, *, num_layers, unroll):
    """Whole graph resident in VMEM; one (N, col_tile) embedding slab/step."""
    a = a_ref[...]                                    # (N, N) bf16 MXU operand
    cur = x_ref[...].astype(jnp.float32)              # residual chain (f32)
    acc = cur                                         # running sum of states

    def layer(cur, acc):
        prod = jnp.dot(a, cur.astype(jnp.bfloat16),
                       preferred_element_type=jnp.float32)
        cur = prod + cur
        return cur, acc + cur

    if unroll:                                        # small num_layers
        for _ in range(num_layers):
            cur, acc = layer(cur, acc)
    else:                                             # bound live temporaries
        cur, acc = jax.lax.fori_loop(0, num_layers,
                                     lambda _, c: layer(*c), (cur, acc))

    o_ref[...] = (acc * (1.0 / (num_layers + 1))).astype(o_ref.dtype)


def _streamed_kernel(a_ref, x_ref, o_ref, cur_ref, curb_ref, acc_ref,
                     *, row_tile, inv):
    """Graph streamed from HBM in (row_tile, N) tiles (dense A > VMEM)."""
    l = pl.program_id(1)                              # layer index
    r = pl.program_id(2)                              # row-block of A
    last_l = pl.num_programs(1) - 1
    last_r = pl.num_programs(2) - 1

    @pl.when((l == 0) & (r == 0))
    def _init():
        x0 = x_ref[...].astype(jnp.float32)
        cur_ref[...] = x0
        acc_ref[...] = x0
        curb_ref[...] = x0.astype(jnp.bfloat16)

    # New rows [r*row_tile, (r+1)*row_tile) of this layer's state. curb_ref
    # still holds the previous layer's state (bf16), so in-place row updates
    # of cur_ref are safe: the residual reads rows not yet overwritten.
    row0 = pl.multiple_of(r * row_tile, row_tile)
    prod = jnp.dot(a_ref[...], curb_ref[...],
                   preferred_element_type=jnp.float32)
    cur_ref[pl.ds(row0, row_tile), :] = (
        prod + cur_ref[pl.ds(row0, row_tile), :])

    @pl.when(r == last_r)                             # layer complete
    def _finish_layer():
        new = cur_ref[...]
        acc_ref[...] = acc_ref[...] + new
        curb_ref[...] = new.astype(jnp.bfloat16)

    @pl.when((l == last_l) & (r == last_r))
    def _emit():
        o_ref[...] = (acc_ref[...] * inv).astype(o_ref.dtype)


# ---------------------------------------------------------------------------
# Wrapper
# ---------------------------------------------------------------------------

def _device_budget():
    """(vmem_capacity_bytes, tensorcores_per_device), with safe fallbacks."""
    vmem_cap = 64 << 20                # conservative default = v7x per-TC VMEM
    try:
        info = pltpu.get_tpu_info()
        vmem_cap = int(getattr(info, "vmem_capacity_bytes", vmem_cap))
    except Exception:                  # pure sizing query; default is safe
        pass
    num_cores = 1
    try:
        kind = jax.devices()[0].device_kind.lower()
        if any(t in kind for t in ("v4", "v5p", "v7", "tpu7", "7x")):
            num_cores = 2              # megacore / dual-TensorCore chips
    except Exception:
        pass
    return vmem_cap, num_cores


def geo_conv_network(pois_embs, geo_graph, num_layers, dropout=0.0, *,
                     col_tile=None, row_tile=None, force_stream=False):
    """out = mean([X, X_1, ..., X_L]) with X_{l+1} = geo_graph @ X_l + X_l."""
    del dropout                        # stored but never applied in reference
    N, D = pois_embs.shape
    assert geo_graph.shape == (N, N)
    assert N % 128 == 0, "pad num_pois to a multiple of 128"

    if num_layers == 0:                # mean over the single initial state
        return pois_embs

    out_dtype = pois_embs.dtype
    in_b = jnp.dtype(pois_embs.dtype).itemsize
    out_b = jnp.dtype(out_dtype).itemsize

    vmem_cap, num_cores = _device_budget()
    budget = vmem_cap - (8 << 20)      # headroom for compiler scratch / misc

    # bf16 graph operand: higher MXU throughput and half the footprint of the
    # dominant (N, N) buffer; accumulation stays f32.
    # TODO(synk): optional v6e-only win — int8-quantize A with per-row scales
    # to halve its footprint again and use the int8 MXU path (not on v7x).
    a_bf16 = geo_graph.astype(jnp.bfloat16)
    a_bytes = N * N * 2
    flops = 2 * N * N * D * num_layers

    # --- VMEM need models: actual buffer counts, no blanket fudge -----------
    def resident_need(ct, a_buffers):
        resident = a_buffers * a_bytes                  # graph copies in VMEM
        pipelined = 2 * N * ct * (in_b + out_b)         # in/out slabs (x2 buf)
        temps = 4 * N * ct * 4                          # cur/acc/prod/bf16 cur
        return resident + pipelined + temps + (2 << 20)

    def streamed_need(ct, rt):
        a_tiles = 2 * rt * N * 2                        # A row tiles (x2 buf)
        pipelined = 2 * N * ct * (in_b + out_b)
        scratch = N * ct * (4 + 4 + 2)                  # cur, acc (f32), curb
        temps = 4 * rt * ct * 4
        return a_tiles + pipelined + scratch + temps + (2 << 20)

    # --- column-tile selection ------------------------------------------------
    def candidates():
        if col_tile is not None:
            return [col_tile]
        cands = [c for c in (512, 384, 256, 128) if c <= D and D % c == 0]
        return cands or [D]            # D not 128-aligned: single full block

    def choose(fits):
        fitting = [c for c in candidates() if fits(c)]
        if not fitting:
            return None
        # Largest tile that still leaves >= 2 grid steps per TensorCore
        # (dual-TC chips want >= 4 total steps so slab DMA overlaps compute).
        for min_steps in (2 * num_cores, num_cores, 1):
            for c in fitting:          # candidates are largest-first
                if D // c >= min_steps:
                    return c
        return fitting[-1]

    def vmem_limit(need):
        return int(min(max(need, 32 << 20), vmem_cap - (4 << 20)))

    # --- runners ---------------------------------------------------------------
    def run_resident(ct, a_buffers):
        assert D % ct == 0 or ct == D
        graph_kwargs = {} if a_buffers == 2 else {"pipeline_mode": pl.Buffered(1)}
        kernel = functools.partial(_resident_kernel, num_layers=num_layers,
                                   unroll=num_layers < 8)
        cost = pl.CostEstimate(
            flops=flops, transcendentals=0,
            bytes_accessed=int(a_bytes + N * D * (in_b + out_b)))
        return pl.pallas_call(
            kernel,
            out_shape=jax.ShapeDtypeStruct((N, D), out_dtype),
            grid_spec=pltpu.PrefetchScalarGridSpec(
                num_scalar_prefetch=0,
                grid=(D // ct,),
                in_specs=[
                    # Full graph; constant block index -> fetched once per core.
                    pl.BlockSpec((N, N), lambda j: (0, 0), **graph_kwargs),
                    # Column slab of the embeddings (double-buffered pipeline).
                    pl.BlockSpec((N, ct), lambda j: (0, j)),
                ],
                out_specs=pl.BlockSpec((N, ct), lambda j: (0, j)),
            ),
            compiler_params=pltpu.CompilerParams(
                dimension_semantics=("parallel",),
                vmem_limit_bytes=vmem_limit(resident_need(ct, a_buffers))),
            cost_estimate=cost,
        )(a_bf16, pois_embs)

    def run_streamed(ct, rt):
        assert N % rt == 0 and (D % ct == 0 or ct == D)
        kernel = functools.partial(_streamed_kernel, row_tile=rt,
                                   inv=1.0 / (num_layers + 1))
        cost = pl.CostEstimate(
            flops=flops, transcendentals=0,
            bytes_accessed=int(num_layers * (D // ct) * a_bytes
                               + N * D * (in_b + out_b)))
        return pl.pallas_call(
            kernel,
            out_shape=jax.ShapeDtypeStruct((N, D), out_dtype),
            grid_spec=pltpu.PrefetchScalarGridSpec(
                num_scalar_prefetch=0,
                grid=(D // ct, num_layers, N // rt),
                in_specs=[
                    pl.BlockSpec((rt, N), lambda j, l, r: (r, 0)),
                    pl.BlockSpec((N, ct), lambda j, l, r: (0, j)),
                ],
                out_specs=pl.BlockSpec((N, ct), lambda j, l, r: (0, j)),
                scratch_shapes=[
                    pltpu.VMEM((N, ct), jnp.float32),    # cur (layer state)
                    pltpu.VMEM((N, ct), jnp.bfloat16),   # bf16 snapshot of cur
                    pltpu.VMEM((N, ct), jnp.float32),    # acc (sum of states)
                ],
            ),
            compiler_params=pltpu.CompilerParams(
                dimension_semantics=("parallel", "arbitrary", "arbitrary"),
                vmem_limit_bytes=vmem_limit(streamed_need(ct, rt))),
            cost_estimate=cost,
        )(a_bf16, pois_embs)

    # --- strategy selection -----------------------------------------------------
    if not force_stream:
        ct = choose(lambda c: resident_need(c, 2) <= budget)
        if ct is not None:
            return run_resident(ct, a_buffers=2)
        ct = choose(lambda c: resident_need(c, 1) <= budget)
        if ct is not None:
            # Single-buffer the graph (its block index is constant). If this
            # jax build rejects Buffered(1) we fall through to the streamed
            # kernel — never to double-buffered A, which is known not to fit.
            # Only construction / lowering-time failures are caught; genuine
            # runtime errors propagate.
            try:
                return run_resident(ct, a_buffers=1)
            except (pltpu.LoweringException, ValueError, NotImplementedError,
                    TypeError):
                pass

    rt = row_tile if row_tile is not None else max(
        c for c in (512, 256, 128) if N % c == 0)
    ct = choose(lambda c: streamed_need(c, rt) <= budget)
    if ct is None:
        ct = candidates()[-1]          # smallest candidate; best effort
    return run_streamed(ct, rt)


def _reference(pois_embs, geo_graph, num_layers):
    final = [pois_embs]
    x = pois_embs
    for _ in range(num_layers):
        x = geo_graph @ x + final[-1]
        final.append(x)
    return jnp.mean(jnp.stack(final), axis=0)


if __name__ == "__main__":
    num_layers = 3
    dropout = 0.1          # signature parity; unused in the forward pass

    # Small deterministic problem: 256 POIs, 1024-dim embeddings. D is large
    # enough that the column grid keeps >= 2 steps per TensorCore even on
    # dual-core chips, so slab DMA overlaps the matmul chain.
    N, D = 256, 1024
    key = jax.random.PRNGKey(0)
    k_emb, k_adj, k_mask = jax.random.split(key, 3)

    pois_embs = jax.random.normal(k_emb, (N, D), dtype=jnp.float32)

    # Dense stand-in for the torch sparse adjacency: ~10% density, row-normalized.
    weights = jax.random.uniform(k_adj, (N, N), dtype=jnp.float32)
    mask = (jax.random.uniform(k_mask, (N, N)) < 0.1).astype(jnp.float32)
    adj = weights * mask
    geo_graph = adj / jnp.maximum(adj.sum(axis=1, keepdims=True), 1e-6)

    ref = _reference(pois_embs, geo_graph, num_layers)

    # Default (resident-graph) path.
    out = geo_conv_network(pois_embs, geo_graph, num_layers, dropout)
    out = jax.block_until_ready(out)
    assert out.shape == (N, D)
    # bf16 MXU operands vs f32 reference -> loosened tolerance; accumulation
    # is f32 and the row-normalized graph has entries <= 1.
    err = float(jnp.max(jnp.abs(out - ref)))
    assert jnp.allclose(out, ref, atol=5e-2, rtol=5e-2), err

    # Exercise the streamed-graph path (used when dense A exceeds VMEM) on the
    # same small problem so it stays verified.
    out_s = geo_conv_network(pois_embs, geo_graph, num_layers, dropout,
                             force_stream=True, col_tile=256, row_tile=128)
    out_s = jax.block_until_ready(out_s)
    err_s = float(jnp.max(jnp.abs(out_s - ref)))
    assert jnp.allclose(out_s, ref, atol=5e-2, rtol=5e-2), err_s

    print("KERNEL_OK")
</pallas_src>

<mosaic_0001>
module attributes {stable_mosaic.version = 11 : i64} {
  func.func @_resident_kernel(%arg0: i32, %arg1: memref<256x256xbf16, #tpu.memory_space<vmem>>, %arg2: memref<256x512xf32, #tpu.memory_space<vmem>>, %arg3: memref<256x512xf32, #tpu.memory_space<vmem>>) attributes {dimension_semantics = [#tpu.dimension_semantics<parallel>], iteration_bounds = array<i64: 2>, scalar_prefetch = 0 : i64, scratch_operands = 0 : i64, tpu.core_type = #tpu.core_type<tc>, window_params = [{pipeline_mode = #tpu.pipeline_mode<synchronous>, transform_indices = @transform_0, window_bounds = array<i64: 256, 256>}, {transform_indices = @transform_1, window_bounds = array<i64: 256, 512>}, {transform_indices = @transform_2, window_bounds = array<i64: 256, 512>}]} {
    %c0 = arith.constant 0 : index
    %c0_0 = arith.constant 0 : index
    %0 = vector.load %arg1[%c0, %c0_0] : memref<256x256xbf16, #tpu.memory_space<vmem>>, vector<256x256xbf16>
    %c0_1 = arith.constant 0 : index
    %c0_2 = arith.constant 0 : index
    %1 = vector.load %arg2[%c0_1, %c0_2] : memref<256x512xf32, #tpu.memory_space<vmem>>, vector<256x512xf32>
    %2 = arith.truncf %1 : vector<256x512xf32> to vector<256x512xbf16>
    %cst = arith.constant dense<0.000000e+00> : vector<256x512xf32>
    %3 = tpu.matmul %0, %2, %cst {dimension_numbers = #tpu.dot_dimension_numbers<[1], [0], [0], [1], [0, 0, 1, 1], [], []>} : vector<256x256xbf16>, vector<256x512xbf16>, vector<256x512xf32> -> vector<256x512xf32>
    %4 = arith.addf %3, %1 : vector<256x512xf32>
    %5 = arith.addf %1, %4 : vector<256x512xf32>
    %6 = arith.truncf %4 : vector<256x512xf32> to vector<256x512xbf16>
    %cst_3 = arith.constant dense<0.000000e+00> : vector<256x512xf32>
    %7 = tpu.matmul %0, %6, %cst_3 {dimension_numbers = #tpu.dot_dimension_numbers<[1], [0], [0], [1], [0, 0, 1, 1], [], []>} : vector<256x256xbf16>, vector<256x512xbf16>, vector<256x512xf32> -> vector<256x512xf32>
    %8 = arith.addf %7, %4 : vector<256x512xf32>
    %9 = arith.addf %5, %8 : vector<256x512xf32>
    %10 = arith.truncf %8 : vector<256x512xf32> to vector<256x512xbf16>
    %cst_4 = arith.constant dense<0.000000e+00> : vector<256x512xf32>
    %11 = tpu.matmul %0, %10, %cst_4 {dimension_numbers = #tpu.dot_dimension_numbers<[1], [0], [0], [1], [0, 0, 1, 1], [], []>} : vector<256x256xbf16>, vector<256x512xbf16>, vector<256x512xf32> -> vector<256x512xf32>
    %12 = arith.addf %11, %8 : vector<256x512xf32>
    %13 = arith.addf %9, %12 : vector<256x512xf32>
    %cst_5 = arith.constant 2.500000e-01 : f32
    %14 = vector.broadcast %cst_5 : f32 to vector<256x512xf32>
    %15 = arith.mulf %13, %14 : vector<256x512xf32>
    %c0_6 = arith.constant 0 : index
    %c0_7 = arith.constant 0 : index
    %16 = vector.load %arg3[%c0_6, %c0_7] : memref<256x512xf32, #tpu.memory_space<vmem>>, vector<256x512xf32>
    tpu.vector_store %arg3[%c0_6, %c0_7], %15 {strides = array<i32>} : memref<256x512xf32, #tpu.memory_space<vmem>>, vector<256x512xf32>,
    return
  }
  func.func @transform_0(%arg0: i32) -> (i32, i32) {
    %c0_i32 = arith.constant 0 : i32
    %c0_i32_0 = arith.constant 0 : i32
    %c0_i32_1 = arith.constant 0 : i32
    return %c0_i32, %c0_i32_0 : i32, i32
  }
  func.func @transform_1(%arg0: i32) -> (i32, i32) {
    %c0_i32 = arith.constant 0 : i32
    %c0_i32_0 = arith.constant 0 : i32
    return %c0_i32, %arg0 : i32, i32
  }
  func.func @transform_2(%arg0: i32) -> (i32, i32) {
    %c0_i32 = arith.constant 0 : i32
    %c0_i32_0 = arith.constant 0 : i32
    return %c0_i32, %arg0 : i32, i32
  }
}

</mosaic_0001>

<bundles_post_ra>
// kernel: tpu_custom_call.1
= control target key start
LH: loop header
LB: loop body
LE: loop exit
PB: predicated region body
PF: predicated region fallthrough
CT: control target
= control target key end

     0   :  { %7 = vsyncpa [#allocation3], 0  ;;  %s6028_s0 = inlined_call_operand.hbm [shape: bf16[256,256], index: 0, kind: input, shape index: {}]   ;;  %s6029_s1 = inlined_call_operand.hbm [shape: f32[256,1024], index: 1, kind: input, shape index: {}]   ;;  %s6030_s2 = inlined_call_operand.hbm [shape: f32[256,1024], index: 2, kind: output, shape index: {}]  }
   0x1   :  { %8 = vsyncpa [#allocation6], 0 }
   0x2   :  { %10 = vsyncpa [#allocation6 + $0x1], 0 }
   0x3   :  { %11 = vsyncpa [#allocation4], 0 }
   0x4   :  { %13 = vsyncpa [#allocation4 + $0x1], 0  ;;  %s3067_s9 = smov 0   ;;  %s3069_s10 = smov 0  }
   0x5   :  { %s3071_s11 = smov 0   ;;  %s3073_s12 = smov 0  }
   0x6 LB: > { %s3088_s13 = sadd.s32 4294967295, %s3039_s12   ;;  %s2588_s14 = sadd.s32 4294967294, %s3039_s12   ;;  %s3039_s12 = sphi %s3073_s12, %s7521_s12   ;;  %s3035_s11 = sphi %s3071_s11, %s7520_s11   ;;  %s3031_s10 = sphi %s3069_s10, %s7519_s10   ;;  %s3027_s9 = sphi %s3067_s9, %s7518_s9  }
   0x7   : > { %s3092_s15 = sadd.s32 1, %s3039_s12   ;;  %s47_s16 = sadd.s32 1, %s3035_s11 }
   0x8   : > { %s44_s17 = ssub.s32 %s3039_s12, %s3092_s15  ;;  %p54_p0 = scmp.ne.s32.totalorder %s3035_s11, %s3031_s10 }
   0x9   : > { %p45_p1 = scmp.eq.s32.totalorder %s44_s17, 0  ;;  %p55_p2 = scmp.eq.s32.totalorder %s3039_s12, 0 }
   0xa   : > { %p60_p3 = scmp.ne.s32.totalorder %s3031_s10, %s3027_s9  ;;  %p6031_p4 = scmp.eq.s32.totalorder %s3088_s13, 0 }
   0xb   : > { %s3104_s18 = scalar_select %p45_p1, %s3035_s11, %s47_s16  }
   0xc   : > { %p3106_p5 = por %p55_p2, %p54_p0  ;;  %p3112_p6 = por %p6031_p4, %p60_p3 }
   0xd   : > { %p84_p7 = scmp.eq.s32.totalorder %s3088_s13, 1  ;;  %p90_p8 = scmp.eq.s32.totalorder %s2588_s14, 1 }
   0xe   : > { %s6602_s19 = scalar_select %p3106_p5, 1, 0 }
   0xf   : > { %s6603_s20 = scalar_select %p3112_p6, 1, 0 }
  0x10   : > { %p2589_p9 = scmp.ge.s32.totalorder %s3039_s12, 1  ;;  %p97_p10 = scmp.lt.s32.totalorder %s3039_s12, 3 }
  0x11   : > { %p3119_p11 = por %p84_p7, %p54_p0  ;;  %p3123_p12 = por %p90_p8, %p60_p3 }
  0x12   : > { %p3127_p13 = pnand %p2589_p9, %p97_p10  ;;  %s3041_s24 = smov [#allocation2]  }
  0x13   : > { %s6604_s21 = scalar_select %p3119_p11, 1, 0 }
  0x14   : > { %s6605_s22 = scalar_select %p3123_p12, 1, 0 }
  0x15   : > { %s6606_s23 = scalar_select %p3127_p13, 1, 0 }
  0x16   : > { %p2646_p1 = pneg %p3127_p13  ;;  %s109_s25 = sshll.u32 %s3041_s24, 4  ;;  %s110_s25 = int_to_ptr.vmem [resolvable:$true] %s109_s25 }
  0x17   : > { %s123_s27 = sand.u32 1, %s3035_s11   ;;  %s2911_s30 = scalar_lea.hbm %s6028_s0, 4096 }
  0x18   : > { %p3135_p2 = pnand %p2646_p1, %p6031_p4  ;;  %p2912_p7 = scmp.ne.s32.totalorder %s6028_s0, %s2911_s30 }
  0x19   : > { %p2918_p1 = scmp.lt.u32.totalorder %s2911_s30, %s6028_s0 }
  0x1a   : > { %p2913_p8 = pneg %p3135_p2 }
  0x1c   : > { %p2914_p9 = pnand %p2913_p8, %p2912_p7 }
  0x1e   : > { %p2915_p10 = pneg %p2914_p9 }
  0x20   : > { %p2920_p4 = pnand %p2918_p1, %p2915_p10 }
  0x22   : > { %2923 = shalt.err (!%p2920_p4)
}
  0x23   : > { %s2924_s7 = scalar_lea.vmem %s110_s25, 4096  ;;  %p2932_p11 = scmp.lt.s32.totalorder %s110_s25, %s110_s25 }
  0x24   : > { %p2925_p0 = scmp.ne.s32.totalorder %s110_s25, %s2924_s7  ;;  %p2933_p6 = scmp.lt.s32.totalorder %s2924_s7, %s2924_s7 }
  0x26   : > { %p2927_p3 = pnand %p2925_p0, %p2913_p8  ;;  %p2934_p13 = por %p2933_p6, %p2932_p11 }
  0x28   : > { %p2928_p12 = pneg %p2927_p3 }
  0x2a   : > { %p2935_p5 = pnand %p2934_p13, %p2928_p12 }
  0x2c   : > { %2938 = shalt.err (!%p2935_p5)
}
  0x2d   : > { %s3042_s8 = smov 128   ;;  %s3043_s14 = smov 8  }
  0x2e   : > { %2649 = dma.hbm_to_vmem [thread:$0]  (!%p3135_p2), %s6028_s0, 4096, %s110_s25, [#allocation3], %s3042_s8, %s3042_s8, %s3043_s14  }
  0x2f   : > { %p6608_p4 = scmp.ne.s32.totalorder %s6602_s19, 0  ;;  %p6609_p7 = scmp.lt.s32.totalorder %s3039_s12, 2 }
  0x30   : > { %s2592_s28 = sshll.u32 %s123_s27, 10  ;;  %s2636_s29 = sshll.u32 %s3039_s12, 9 }
  0x31   : > { %p3162_p0 = pnand %p6609_p7, %p6608_p4  ;;  %s3170_s4 = scalar_lea.hbm %s6029_s1, %s2636_s29 }
  0x32   : > { %s127_s25 = scalar_lea.vmem [#allocation5], %s2592_s28  ;;  %s3174_s26 = scalar_lea.sflag [#allocation6], %s123_s27 }
  0x33   : > { %s134_s19 = sshll.u32 %s127_s25, 4  ;;  %s2939_s5 = scalar_lea.hbm %s3170_s4, 16384  ;;  %s3172_s19 = int_to_ptr.vmem [resolvable:$true] %s134_s19 }
  0x34   : > { %p2940_p5 = scmp.ne.s32.totalorder %s3170_s4, %s2939_s5  ;;  %p2941_p6 = pneg %p3162_p0 }
  0x35   : > { %s2944_s8 = scalar_lea.hbm %s6029_s1, 32768  ;;  %p2945_p13 = scmp.lt.u32.totalorder %s3170_s4, %s6029_s1 }
  0x36   : > { %p2942_p11 = pnand %p2941_p6, %p2940_p5  ;;  %p2946_p2 = scmp.lt.u32.totalorder %s2944_s8, %s2939_s5 }
  0x37   : > { %p2948_p8 = scmp.lt.u32.totalorder %s2939_s5, %s3170_s4 }
  0x38   : > { %p2943_p12 = pneg %p2942_p11  ;;  %p2947_p3 = por %p2946_p2, %p2945_p13 }
  0x3a   : > { %p2949_p9 = por %p2948_p8, %p2947_p3 }
  0x3c   : > { %p2950_p10 = pnand %p2949_p9, %p2943_p12 }
  0x3e   : > { %2953 = shalt.err (!%p2950_p10)
}
  0x3f   : > { %s2954_s27 = scalar_lea.vmem %s3172_s19, 16384  ;;  %s3044_s17 = smov [#allocation5]  }
  0x40   : > { %p2955_p1 = scmp.ne.s32.totalorder %s3172_s19, %s2954_s27  ;;  %s2959_s28 = sshll.u32 %s3044_s17, 4  ;;  %s2960_s28 = int_to_ptr.vmem [resolvable:$false] %s2959_s28 }
  0x41   : > { %s2961_s29 = scalar_lea.vmem %s2960_s28, 32768  ;;  %p2962_p5 = scmp.lt.s32.totalorder %s3172_s19, %s2960_s28 }
  0x42   : > { %p2957_p4 = pnand %p2955_p1, %p2941_p6  ;;  %p2963_p11 = scmp.lt.s32.totalorder %s2961_s29, %s2954_s27 }
  0x44   : > { %p2958_p7 = pneg %p2957_p4  ;;  %p2964_p13 = por %p2963_p11, %p2962_p5 }
  0x46   : > { %p2965_p2 = pnand %p2964_p13, %p2958_p7 }
  0x48   : > { %2968 = shalt.err (!%p2965_p2)
}
  0x49   : > { %s3045_s30 = smov 1024   ;;  %s3046_s3 = smov 512  }
  0x4a   : > { %s3047_s25 = smov 32   ;;  %p6611_p6 = scmp.ne.s32.totalorder %s6606_s23, 0 }
  0x4b   : > { %2653 = dma.hbm_to_vmem [thread:$0]  (!%p3162_p0), %s3170_s4, 16384, %s3172_s19, %s3174_s26, %s3045_s30, %s3046_s3, %s3047_s25  }
  0x4c   : > { %146 = sbr.rel (%p6611_p6) target bundleno = 1203 (0x4b3), region = 28 }
  0x53   : > { %p6612_p12 = scmp.eq.s32.totalorder %s3088_s13, 0 }
  0x55   : > { %3014 = dma.done.wait (%p6612_p12), [#allocation3], 4096   ;;  %p6613_p3 = pmov %p6612_p12 }
  0x56   : > { %s3209_s5 = sand.u32 1, %s3031_s10   ;;  %p6614_p0 = scmp.ne.s32.totalorder %s6603_s20, 0 }
  0x57   : > { %3016 = vsyncadd (%p6613_p3), [#allocation3], 4294963200  ;;  %s2597_s6 = sshll.u32 %s3209_s5, 10  ;;  %s153_s7 = scalar_lea.sflag [#allocation6], %s3209_s5 }
  0x58   : > { %s3215_s24 = scalar_lea.vmem [#allocation5], %s2597_s6 }
  0x59   : > { %3018 = dma.done.wait (%p6614_p0), %s153_s7, 16384  }
  0x5a   : > { %3020 = vsyncadd (%p6614_p0), %s153_s7, 4294950912  ;;  %v3222_v0 = vld [vmem:[%s3215_s24 + $0x8] sm:$0xff]  ;;  %v3228_v2 = vld [vmem:[%s3215_s24 + $0x18] sm:$0xff]  ;;  %s5487_s20 = scalar_lea.vmem [#allocation7], %s2597_s6  ;;  %s2637_s23 = sshll.u32 %s3088_s13, 9 }
  0x5b   : > { %v3225_v1 = vld [vmem:[%s3215_s24 + $0x28] sm:$0xff]  ;;  %v3233_v4 = vld [vmem:[%s3215_s24 + $0x38] sm:$0xff]  ;;  %v3236_v5 = vld [vmem:[%s3215_s24] sm:$0xff]  ;;  %s2503_s4 = sshll.u32 %s5487_s20, 4  ;;  %s5975_s26 = scalar_lea.hbm %s6030_s2, %s2637_s23  ;;  %s5979_s4 = int_to_ptr.vmem [resolvable:$true] %s2503_s4 }
  0x5c   : > { %v340_v3 = vpack.c.bf16 %v3225_v1, %v3222_v0  ;;  %v3239_v6 = vld [vmem:[%s3215_s24 + $0x20] sm:$0xff]  ;;  %v342_v7 = vpack.c.bf16 %v3233_v4, %v3228_v2  ;;  %v3246_v9 = vld [vmem:[%s3215_s24 + $0x10] sm:$0xff]  ;;  %v3252_v11 = vld [vmem:[%s3215_s24 + $0x48] sm:$0xff]  ;;  %s2490_s8 = scalar_lea.sflag [#allocation4], %s3209_s5  ;;  %s2969_s14 = scalar_lea.vmem %s5979_s4, 16384 }
  0x5d   : > { %v339_v8 = vpack.c.bf16 %v3239_v6, %v3236_v5  ;;  %v3249_v10 = vld [vmem:[%s3215_s24 + $0x30] sm:$0xff]  ;;  %v3257_v13 = vld [vmem:[%s3215_s24 + $0x68] sm:$0xff]  ;;  %v3260_v14 = vld [vmem:[%s3215_s24 + $0x58] sm:$0xff]  ;;  %p2970_p8 = scmp.ne.s32.totalorder %s5979_s4, %s2969_s14  ;;  %p7515_p9 = scmp.ne.s32.totalorder %s6604_s21, 0 }
  0x5e   : > { %563 = vmatprep.subr.bf16.mxu0 %v340_v3  ;;  %v341_v12 = vpack.c.bf16 %v3249_v10, %v3246_v9  ;;  %v3263_v15 = vld [vmem:[%s3215_s24 + $0x78] sm:$0xff]  ;;  %756 = vmatprep.subr.bf16.mxu1 %v342_v7  ;;  %v344_v16 = vpack.c.bf16 %v3257_v13, %v3252_v11  ;;  %v3270_v18 = vld [vmem:[%s3215_s24 + $0x40] sm:$0xff]  ;;  %v3276_v20 = vld [vmem:[%s3215_s24 + $0x50] sm:$0xff]  ;;  %s3048_s16 = smov [#allocation7]  }
  0x5f   : > { %564 = vmatpush1.bf16.msra.mxu0 %v339_v8  ;;  %v346_v17 = vpack.c.bf16 %v3263_v15, %v3260_v14  ;;  %v3273_v19 = vld [vmem:[%s3215_s24 + $0x60] sm:$0xff]  ;;  %v3281_v22 = vld [vmem:[%s3215_s24 + $0x70] sm:$0xff]  ;;  %v3284_v23 = vld [vmem:[%s3215_s24 + $0x88] sm:$0xff]  ;;  %p2971_p10 = pnand %p2970_p8, %p7515_p9  ;;  %s2973_s27 = sshll.u32 %s3048_s16, 4  ;;  %s2974_s27 = int_to_ptr.vmem [resolvable:$false] %s2973_s27 }
  0x60   : > { %757 = vmatpush1.bf16.msra.mxu1 %v341_v12  ;;  %v343_v21 = vpack.c.bf16 %v3273_v19, %v3270_v18  ;;  %v3287_v24 = vld [vmem:[%s3215_s24 + $0xa8] sm:$0xff]  ;;  %565 = vmatprep.subr.bf16.mxu0 %v344_v16  ;;  %v345_v25 = vpack.c.bf16 %v3281_v22, %v3276_v20  ;;  %v3294_v27 = vld [vmem:[%s3215_s24 + $0x98] sm:$0xff]  ;;  %v3300_v29 = vld [vmem:[%s3215_s24 + $0x80] sm:$0xff]  ;;  %s2975_s17 = scalar_lea.vmem %s2974_s27, 32768  ;;  %p2976_p4 = scmp.lt.s32.totalorder %s5979_s4, %s2974_s27 }
  0x61   : > { %758 = vmatprep.subr.bf16.mxu1 %v346_v17  ;;  %v348_v26 = vpack.c.bf16 %v3287_v24, %v3284_v23  ;;  %v3297_v28 = vld [vmem:[%s3215_s24 + $0xb8] sm:$0xff]  ;;  %v3305_v31 = vld [vmem:[%s3215_s24 + $0xa0] sm:$0xff]  ;;  %v3308_v32 = vld [vmem:[%s3215_s24 + $0x90] sm:$0xff]  ;;  %p2972_p1 = pneg %p2971_p10  ;;  %p2977_p7 = scmp.lt.s32.totalorder %s2975_s17, %s2969_s14 }
  0x62   : > { %v350_v30 = vpack.c.bf16 %v3297_v28, %v3294_v27  ;;  %v3311_v33 = vld [vmem:[%s3215_s24 + $0xb0] sm:$0xff]  ;;  %v347_v34 = vpack.c.bf16 %v3305_v31, %v3300_v29  ;;  %v3316_v35 = vld [vmem:[%s3215_s24 + $0xc8] sm:$0xff]  ;;  %v3322_v37 = vld [vmem:[%s3215_s24 + $0xd8] sm:$0xff] }
  0x63   : > { %566 = vmatpush1.bf16.msra.mxu0 %v343_v21  ;;  %v3319_v36 = vld [vmem:[%s3215_s24 + $0xe8] sm:$0xff]  ;;  %v349_v38 = vpack.c.bf16 %v3311_v33, %v3308_v32  ;;  %v3329_v40 = vld [vmem:[%s3215_s24 + $0xf8] sm:$0xff]  ;;  %v3332_v41 = vld [vmem:[%s3215_s24 + $0xc0] sm:$0xff]  ;;  %p2978_p5 = por %p2977_p7, %p2976_p4 }
  0x64   : > { %759 = vmatpush1.bf16.msra.mxu1 %v345_v25  ;;  %567 = vmatprep.subr.bf16.mxu0 %v348_v26  ;;  %v352_v39 = vpack.c.bf16 %v3319_v36, %v3316_v35  ;;  %v3335_v42 = vld [vmem:[%s3215_s24 + $0xe0] sm:$0xff]  ;;  %v354_v43 = vpack.c.bf16 %v3329_v40, %v3322_v37  ;;  %v3340_v44 = vld [vmem:[%s3215_s24 + $0xd0] sm:$0xff]  ;;  %v3346_v46 = vld [vmem:[%s3215_s24 + $0x108] sm:$0xff] }
  0x65   : > { %760 = vmatprep.subr.bf16.mxu1 %v350_v30  ;;  %v3343_v45 = vld [vmem:[%s3215_s24 + $0xf0] sm:$0xff]  ;;  %v3349_v47 = vld [vmem:[%s3215_s24 + $0x128] sm:$0xff]  ;;  %v3352_v48 = vld [vmem:[%s3215_s24 + $0x118] sm:$0xff]  ;;  %v351_v50 = vpack.c.bf16 %v3335_v42, %v3332_v41  ;;  %p2979_p11 = pnand %p2978_p5, %p2972_p1 }
  0x66   : > { %v3355_v49 = vld [vmem:[%s3215_s24 + $0x138] sm:$0xff]  ;;  %v353_v51 = vpack.c.bf16 %v3343_v45, %v3340_v44  ;;  %v356_v52 = vpack.c.bf16 %v3349_v47, %v3346_v46  ;;  %v3364_v53 = vld [vmem:[%s3215_s24 + $0x100] sm:$0xff]  ;;  %v3370_v55 = vld [vmem:[%s3215_s24 + $0x110] sm:$0xff] }
  0x67   : > { %568 = vmatpush1.bf16.msra.mxu0 %v347_v34  ;;  %v3367_v54 = vld [vmem:[%s3215_s24 + $0x120] sm:$0xff]  ;;  %v358_v56 = vpack.c.bf16 %v3355_v49, %v3352_v48  ;;  %v3375_v57 = vld [vmem:[%s3215_s24 + $0x130] sm:$0xff]  ;;  %v3378_v58 = vld [vmem:[%s3215_s24 + $0x148] sm:$0xff] }
  0x68   : > { %761 = vmatpush1.bf16.msra.mxu1 %v349_v38  ;;  %569 = vmatprep.subr.bf16.mxu0 %v352_v39  ;;  %v3381_v59 = vld [vmem:[%s3215_s24 + $0x168] sm:$0xff]  ;;  %v3384_v60 = vld [vmem:[%s3215_s24 + $0x158] sm:$0xff]  ;;  %v355_v62 = vpack.c.bf16 %v3367_v54, %v3364_v53  ;;  %v357_v63 = vpack.c.bf16 %v3375_v57, %v3370_v55  ;;  %v3396_v7 = vld [vmem:[%s3215_s24 + $0x140] sm:$0xff] }
  0x69   : > { %762 = vmatprep.subr.bf16.mxu1 %v354_v43  ;;  %6615 = vst [vmem:[#allocation11_spill] sm:$0xff] %v3381_v59  ;;  %6616 = vst [vmem:[#allocation12_spill] sm:$0xff] %v3384_v60  ;;  %v3387_v61 = vld [vmem:[%s3215_s24 + $0x178] sm:$0xff]  ;;  %v360_v3 = vpack.c.bf16 %v3381_v59, %v3378_v58  ;;  %v3399_v8 = vld [vmem:[%s3215_s24 + $0x160] sm:$0xff] }
  0x6a   : > { %6617 = vst [vmem:[#allocation13_spill] sm:$0xff] %v3387_v61  ;;  %6618 = vst [vmem:[#allocation14_spill] sm:$0xff] %v3396_v7  ;;  %v3402_v12 = vld [vmem:[%s3215_s24 + $0x150] sm:$0xff]  ;;  %v362_v16 = vpack.c.bf16 %v3387_v61, %v3384_v60  ;;  %v3410_v21 = vld [vmem:[%s3215_s24 + $0x188] sm:$0xff]  ;;  %v359_v34 = vpack.c.bf16 %v3399_v8, %v3396_v7 }
  0x6b   : > { %570 = vmatpush1.bf16.msra.mxu0 %v351_v50  ;;  %6619 = vst [vmem:[#allocation15_spill] sm:$0xff] %v3402_v12  ;;  %v3407_v17 = vld [vmem:[%s3215_s24 + $0x170] sm:$0xff]  ;;  %6621 = vst [vmem:[#allocation17_spill] sm:$0xff] %v3410_v21  ;;  %v3413_v25 = vld [vmem:[%s3215_s24 + $0x1a8] sm:$0xff] }
  0x6c   : > { %763 = vmatpush1.bf16.msra.mxu1 %v353_v51  ;;  %571 = vmatprep.subr.bf16.mxu0 %v356_v52  ;;  %6620 = vst [vmem:[#allocation16_spill] sm:$0xff] %v3407_v17  ;;  %6622 = vst [vmem:[#allocation18_spill] sm:$0xff] %v3413_v25  ;;  %v3416_v26 = vld [vmem:[%s3215_s24 + $0x198] sm:$0xff]  ;;  %v361_v38 = vpack.c.bf16 %v3407_v17, %v3402_v12  ;;  %v364_v39 = vpack.c.bf16 %v3413_v25, %v3410_v21  ;;  %v3428_v43 = vld [vmem:[%s3215_s24 + $0x180] sm:$0xff] }
  0x6d   : > { %764 = vmatprep.subr.bf16.mxu1 %v358_v56  ;;  %6623 = vst [vmem:[#allocation19_spill] sm:$0xff] %v3416_v26  ;;  %v3419_v30 = vld [vmem:[%s3215_s24 + $0x1b8] sm:$0xff]  ;;  %6625 = vst [vmem:[#allocation21_spill] sm:$0xff] %v3428_v43  ;;  %v3431_v50 = vld [vmem:[%s3215_s24 + $0x1a0] sm:$0xff] }
  0x6e   : > { %6624 = vst [vmem:[#allocation20_spill] sm:$0xff] %v3419_v30  ;;  %6626 = vst [vmem:[#allocation22_spill] sm:$0xff] %v3431_v50  ;;  %v3434_v51 = vld [vmem:[%s3215_s24 + $0x190] sm:$0xff]  ;;  %v366_v52 = vpack.c.bf16 %v3419_v30, %v3416_v26  ;;  %v3451_v25 = vld [vmem:[%s3215_s24 + $0x1f8] sm:$0xff] }
  0x6f   : > { %572 = vmatpush1.bf16.msra.mxu0 %v355_v62  ;;  %6627 = vst [vmem:[#allocation23_spill] sm:$0xff] %v3434_v51  ;;  %v3439_v56 = vld [vmem:[%s3215_s24 + $0x1b0] sm:$0xff]  ;;  %v3442_v62 = vld [vmem:[%s3215_s24 + $0x1c8] sm:$0xff]  ;;  %6632 = vst [vmem:[#allocation28_spill] sm:$0xff] %v3451_v25 }
  0x70   : > { %765 = vmatpush1.bf16.msra.mxu1 %v357_v63  ;;  %573 = vmatprep.subr.bf16.mxu0 %v360_v3  ;;  %6628 = vst [vmem:[#allocation24_spill] sm:$0xff] %v3439_v56  ;;  %6629 = vst [vmem:[#allocation25_spill] sm:$0xff] %v3442_v62  ;;  %v3445_v63 = vld [vmem:[%s3215_s24 + $0x1e8] sm:$0xff]  ;;  %v3448_v3 = vld [vmem:[%s3215_s24 + $0x1d8] sm:$0xff]  ;;  %v365_v30 = vpack.c.bf16 %v3439_v56, %v3434_v51 }
  0x71   : > { %766 = vmatprep.subr.bf16.mxu1 %v362_v16  ;;  %6630 = vst [vmem:[#allocation26_spill] sm:$0xff] %v3445_v63  ;;  %6631 = vst [vmem:[#allocation27_spill] sm:$0xff] %v3448_v3  ;;  %v363_v16 = vpack.c.bf16 %v3431_v50, %v3428_v43  ;;  %v368_v26 = vpack.c.bf16 %v3445_v63, %v3442_v62  ;;  %v3460_v21 = vld [vmem:[%s3215_s24 + $0x1c0] sm:$0xff]  ;;  %v3466_v61 = vld [vmem:[%s3215_s24 + $0x1d0] sm:$0xff] }
  0x72   : > { %6633 = vst [vmem:[#allocation29_spill] sm:$0xff] %v3460_v21  ;;  %v3463_v12 = vld [vmem:[%s3215_s24 + $0x1e0] sm:$0xff]  ;;  %6635 = vst [vmem:[#allocation31_spill] sm:$0xff] %v3466_v61  ;;  %v3477_v63 = vld [vmem:[%s3215_s24 + $0x228] sm:$0xff] }
  0x73   : > { %574 = vmatpush1.bf16.msra.mxu0 %v359_v34  ;;  %6634 = vst [vmem:[#allocation30_spill] sm:$0xff] %v3463_v12  ;;  %v370_v34 = vpack.c.bf16 %v3451_v25, %v3448_v3  ;;  %6638 = vst [vmem:[#allocation34_spill] sm:$0xff] %v3477_v63  ;;  %v3480_v62 = vld [vmem:[%s3215_s24 + $0x218] sm:$0xff]  ;;  %v3492_v43 = vld [vmem:[%s3215_s24 + $0x200] sm:$0xff] }
  0x74   : > { %767 = vmatpush1.bf16.msra.mxu1 %v361_v38  ;;  %575 = vmatprep.subr.bf16.mxu0 %v364_v39  ;;  %v3471_v38 = vld [vmem:[%s3215_s24 + $0x1f0] sm:$0xff]  ;;  %v3474_v39 = vld [vmem:[%s3215_s24 + $0x208] sm:$0xff]  ;;  %6639 = vst [vmem:[#allocation35_spill] sm:$0xff] %v3480_v62  ;;  %v3483_v51 = vld [vmem:[%s3215_s24 + $0x238] sm:$0xff] }
  0x75   : > { %768 = vmatprep.subr.bf16.mxu1 %v366_v52  ;;  %6636 = vst [vmem:[#allocation32_spill] sm:$0xff] %v3471_v38  ;;  %6637 = vst [vmem:[#allocation33_spill] sm:$0xff] %v3474_v39  ;;  %v367_v52 = vpack.c.bf16 %v3463_v12, %v3460_v21  ;;  %v369_v25 = vpack.c.bf16 %v3471_v38, %v3466_v61  ;;  %v372_v3 = vpack.c.bf16 %v3477_v63, %v3474_v39  ;;  %v3495_v56 = vld [vmem:[%s3215_s24 + $0x220] sm:$0xff]  ;;  %v3498_v50 = vld [vmem:[%s3215_s24 + $0x210] sm:$0xff] }
  0x76   : > { %6640 = vst [vmem:[#allocation36_spill] sm:$0xff] %v3483_v51  ;;  %6641 = vst [vmem:[#allocation37_spill] sm:$0xff] %v3492_v43  ;;  %v3509_v63 = vld [vmem:[%s3215_s24 + $0x268] sm:$0xff]  ;;  %v3512_v39 = vld [vmem:[%s3215_s24 + $0x258] sm:$0xff] }
  0x77   : > { %576 = vmatpush1.bf16.msra.mxu0 %v363_v16  ;;  %6642 = vst [vmem:[#allocation38_spill] sm:$0xff] %v3495_v56  ;;  %6643 = vst [vmem:[#allocation39_spill] sm:$0xff] %v3498_v50  ;;  %v3506_v16 = vld [vmem:[%s3215_s24 + $0x248] sm:$0xff]  ;;  %v3515_v61 = vld [vmem:[%s3215_s24 + $0x278] sm:$0xff] }
  0x78   : > { %769 = vmatpush1.bf16.msra.mxu1 %v365_v30  ;;  %577 = vmatprep.subr.bf16.mxu0 %v368_v26  ;;  %v374_v30 = vpack.c.bf16 %v3483_v51, %v3480_v62  ;;  %v3503_v26 = vld [vmem:[%s3215_s24 + $0x230] sm:$0xff]  ;;  %6645 = vst [vmem:[#allocation41_spill] sm:$0xff] %v3506_v16  ;;  %6646 = vst [vmem:[#allocation42_spill] sm:$0xff] %v3509_v63  ;;  %v376_v62 = vpack.c.bf16 %v3509_v63, %v3506_v16  ;;  %v3524_v21 = vld [vmem:[%s3215_s24 + $0x240] sm:$0xff] }
  0x79   : > { %770 = vmatprep.subr.bf16.mxu1 %v370_v34  ;;  %6644 = vst [vmem:[#allocation40_spill] sm:$0xff] %v3503_v26  ;;  %6647 = vst [vmem:[#allocation43_spill] sm:$0xff] %v3512_v39  ;;  %v371_v34 = vpack.c.bf16 %v3495_v56, %v3492_v43  ;;  %v373_v51 = vpack.c.bf16 %v3503_v26, %v3498_v50  ;;  %v3527_v38 = vld [vmem:[%s3215_s24 + $0x260] sm:$0xff]  ;;  %v3530_v12 = vld [vmem:[%s3215_s24 + $0x250] sm:$0xff] }
  0x7a   : > { %6648 = vst [vmem:[#allocation44_spill] sm:$0xff] %v3515_v61  ;;  %6649 = vst [vmem:[#allocation45_spill] sm:$0xff] %v3524_v21  ;;  %v3541_v63 = vld [vmem:[%s3215_s24 + $0x2a8] sm:$0xff]  ;;  %v3544_v16 = vld [vmem:[%s3215_s24 + $0x298] sm:$0xff] }
  0x7b   : > { %578 = vmatpush1.bf16.msra.mxu0 %v367_v52  ;;  %6650 = vst [vmem:[#allocation46_spill] sm:$0xff] %v3527_v38  ;;  %6651 = vst [vmem:[#allocation47_spill] sm:$0xff] %v3530_v12  ;;  %v3538_v52 = vld [vmem:[%s3215_s24 + $0x288] sm:$0xff]  ;;  %v3547_v50 = vld [vmem:[%s3215_s24 + $0x2b8] sm:$0xff] }
  0x7c   : > { %771 = vmatpush1.bf16.msra.mxu1 %v369_v25  ;;  %579 = vmatprep.subr.bf16.mxu0 %v372_v3  ;;  %v378_v25 = vpack.c.bf16 %v3515_v61, %v3512_v39  ;;  %v3535_v3 = vld [vmem:[%s3215_s24 + $0x270] sm:$0xff]  ;;  %6653 = vst [vmem:[#allocation49_spill] sm:$0xff] %v3538_v52  ;;  %6654 = vst [vmem:[#allocation50_spill] sm:$0xff] %v3541_v63  ;;  %v380_v39 = vpack.c.bf16 %v3541_v63, %v3538_v52  ;;  %v3556_v43 = vld [vmem:[%s3215_s24 + $0x280] sm:$0xff] }
  0x7d   : > { %772 = vmatprep.subr.bf16.mxu1 %v374_v30  ;;  %6652 = vst [vmem:[#allocation48_spill] sm:$0xff] %v3535_v3  ;;  %6655 = vst [vmem:[#allocation51_spill] sm:$0xff] %v3544_v16  ;;  %v375_v30 = vpack.c.bf16 %v3527_v38, %v3524_v21  ;;  %v377_v61 = vpack.c.bf16 %v3535_v3, %v3530_v12  ;;  %v3559_v26 = vld [vmem:[%s3215_s24 + $0x2a0] sm:$0xff]  ;;  %v3562_v56 = vld [vmem:[%s3215_s24 + $0x290] sm:$0xff] }
  0x7e   : > { %6656 = vst [vmem:[#allocation52_spill] sm:$0xff] %v3547_v50  ;;  %6657 = vst [vmem:[#allocation53_spill] sm:$0xff] %v3556_v43  ;;  %v3573_v12 = vld [vmem:[%s3215_s24 + $0x2e8] sm:$0xff]  ;;  %v3576_v63 = vld [vmem:[%s3215_s24 + $0x2d8] sm:$0xff] }
  0x7f   : > { %580 = vmatpush1.bf16.msra.mxu0 %v371_v34  ;;  %6658 = vst [vmem:[#allocation54_spill] sm:$0xff] %v3559_v26  ;;  %6659 = vst [vmem:[#allocation55_spill] sm:$0xff] %v3562_v56  ;;  %v3570_v34 = vld [vmem:[%s3215_s24 + $0x2c8] sm:$0xff]  ;;  %v3579_v52 = vld [vmem:[%s3215_s24 + $0x2f8] sm:$0xff] }
  0x80   : > { %773 = vmatpush1.bf16.msra.mxu1 %v373_v51  ;;  %581 = vmatprep.subr.bf16.mxu0 %v376_v62  ;;  %v382_v51 = vpack.c.bf16 %v3547_v50, %v3544_v16  ;;  %v3567_v62 = vld [vmem:[%s3215_s24 + $0x2b0] sm:$0xff]  ;;  %6661 = vst [vmem:[#allocation57_spill] sm:$0xff] %v3570_v34  ;;  %6662 = vst [vmem:[#allocation58_spill] sm:$0xff] %v3573_v12  ;;  %v3584_v50 = vld [vmem:[%s3215_s24 + $0x2c0] sm:$0xff] }
  0x81   : > { %774 = vmatprep.subr.bf16.mxu1 %v378_v25  ;;  %6660 = vst [vmem:[#allocation56_spill] sm:$0xff] %v3567_v62  ;;  %6663 = vst [vmem:[#allocation59_spill] sm:$0xff] %v3576_v63  ;;  %v379_v25 = vpack.c.bf16 %v3559_v26, %v3556_v43  ;;  %v3587_v16 = vld [vmem:[%s3215_s24 + $0x2e0] sm:$0xff]  ;;  %v3590_v21 = vld [vmem:[%s3215_s24 + $0x2d0] sm:$0xff]  ;;  %v381_v3 = vpack.c.bf16 %v3567_v62, %v3562_v56 }
  0x82   : > { %6664 = vst [vmem:[#allocation60_spill] sm:$0xff] %v3579_v52  ;;  %6665 = vst [vmem:[#allocation61_spill] sm:$0xff] %v3584_v50  ;;  %v3597_v38 = vld [vmem:[%s3215_s24 + $0x2f0] sm:$0xff]  ;;  %v3600_v43 = vld [vmem:[%s3215_s24 + $0x308] sm:$0xff] }
  0x83   : > { %582 = vmatpush1.bf16.msra.mxu0 %v375_v30  ;;  %6666 = vst [vmem:[#allocation62_spill] sm:$0xff] %v3587_v16  ;;  %6667 = vst [vmem:[#allocation63_spill] sm:$0xff] %v3590_v21  ;;  %v384_v30 = vpack.c.bf16 %v3573_v12, %v3570_v34  ;;  %v3603_v26 = vld [vmem:[%s3215_s24 + $0x328] sm:$0xff]  ;;  %v3611_v60 = vld [vmem:[%s3215_s24 + $0x338] sm:$0xff]  ;;  %v385_v7 = vpack.c.bf16 %v3597_v38, %v3590_v21 }
  0x84   : > { %775 = vmatpush1.bf16.msra.mxu1 %v377_v61  ;;  %583 = vmatprep.subr.bf16.mxu0 %v380_v39  ;;  %6668 = vst [vmem:[#allocation64_spill] sm:$0xff] %v3600_v43  ;;  %6669 = vst [vmem:[#allocation65_spill] sm:$0xff] %v3603_v26  ;;  %v386_v61 = vpack.c.bf16 %v3579_v52, %v3576_v63  ;;  %v3608_v39 = vld [vmem:[%s3215_s24 + $0x318] sm:$0xff]  ;;  %v3614_v56 = vld [vmem:[%s3215_s24 + $0x300] sm:$0xff] }
  0x85   : > { %776 = vmatprep.subr.bf16.mxu1 %v382_v51  ;;  %6670 = vst [vmem:[#allocation66_spill] sm:$0xff] %v3608_v39  ;;  %6671 = vst [vmem:[#allocation67_spill] sm:$0xff] %v3611_v60  ;;  %v3617_v12 = vld [vmem:[%s3215_s24 + $0x320] sm:$0xff]  ;;  %v383_v51 = vpack.c.bf16 %v3587_v16, %v3584_v50  ;;  %v3624_v62 = vld [vmem:[%s3215_s24 + $0x310] sm:$0xff]  ;;  %v390_v50 = vpack.c.bf16 %v3611_v60, %v3608_v39 }
  0x86   : > { %6672 = vst [vmem:[#allocation68_spill] sm:$0xff] %v3614_v56  ;;  %6673 = vst [vmem:[#allocation69_spill] sm:$0xff] %v3617_v12  ;;  %v3619_v34 = vld [vmem:[#allocation2 + $0x4] ss:$8 sps:$4 sm:$0xff]   ;;  %v3627_v52 = vld [vmem:[%s3215_s24 + $0x330] sm:$0xff] }
  0x87   : > { %584 = vmatpush1.bf16.msra.mxu0 %v379_v25  ;;  %6674 = vst [vmem:[#allocation70_spill] sm:$0xff] %v3624_v62  ;;  %v3630_v63 = vld [vmem:[%s3215_s24 + $0x348] sm:$0xff]  ;;  %v388_v25 = vpack.c.bf16 %v3603_v26, %v3600_v43  ;;  %v3642_v16 = vld [vmem:[%s3215_s24 + $0x358] sm:$0xff]  ;;  %595 = vmatprep.mubr.bf16.mxu0 %v3619_v34  ;;  %v3658_v60 = vld [vmem:[%s3215_s24 + $0x350] sm:$0xff]  ;;  %v389_v43 = vpack.c.bf16 %v3627_v52, %v3624_v62 }
  0x88   : > { %6675 = vst [vmem:[#allocation71_spill] sm:$0xff] %v3630_v63  ;;  %777 = vmatpush1.bf16.msra.mxu1 %v381_v3  ;;  %585 = vmatprep.subr.bf16.mxu0 %v384_v30  ;;  %v3637_v59 = vld [vmem:[%s3215_s24 + $0x368] sm:$0xff]  ;;  %6677 = vst [vmem:[#allocation73_spill] sm:$0xff] %v3642_v16  ;;  %v3645_v17 = vld [vmem:[%s3215_s24 + $0x378] sm:$0xff] }
  0x89   : > { %6676 = vst [vmem:[#allocation72_spill] sm:$0xff] %v3637_v59  ;;  %778 = vmatprep.subr.bf16.mxu1 %v386_v61  ;;  %6678 = vst [vmem:[#allocation74_spill] sm:$0xff] %v3645_v17  ;;  %v3649_v3 = vld [vmem:[%s3215_s24 + $0x340] sm:$0xff]  ;;  %788 = vmatprep.mubr.bf16.mxu1 %v3619_v34  ;;  %v387_v61 = vpack.c.bf16 %v3617_v12, %v3614_v56  ;;  %v3661_v39 = vld [vmem:[%s3215_s24 + $0x370] sm:$0xff]  ;;  %v392_v21 = vpack.c.bf16 %v3637_v59, %v3630_v63 }
  0x8a   : > { %6679 = vst [vmem:[#allocation75_spill] sm:$0xff] %v3649_v3  ;;  %v3652_v30 = vld [vmem:[%s3215_s24 + $0x360] sm:$0xff]  ;;  %6681 = vst [vmem:[#allocation77_spill] sm:$0xff] %v3658_v60  ;;  %v3664_v26 = vld [vmem:[%s3215_s24 + $0x388] sm:$0xff]  ;;  %v394_v56 = vpack.c.bf16 %v3645_v17, %v3642_v16  ;;  %v393_v17 = vpack.c.bf16 %v3661_v39, %v3658_v60 }
  0x8b   : > { %6680 = vst [vmem:[#allocation76_spill] sm:$0xff] %v3652_v30  ;;  %586 = vmatpush1.bf16.msra.mxu0 %v383_v51  ;;  %6682 = vst [vmem:[#allocation78_spill] sm:$0xff] %v3661_v39  ;;  %v3671_v51 = vld [vmem:[%s3215_s24 + $0x3a8] sm:$0xff]  ;;  %v3676_v12 = vld [vmem:[%s3215_s24 + $0x398] sm:$0xff] }
  0x8c   : > { %6683 = vst [vmem:[#allocation79_spill] sm:$0xff] %v3664_v26  ;;  %779 = vmatpush1.bf16.msra.mxu1 %v385_v7  ;;  %587 = vmatprep.subr.bf16.mxu0 %v388_v25  ;;  %6684 = vst [vmem:[#allocation80_spill] sm:$0xff] %v3671_v51  ;;  %v3679_v7 = vld [vmem:[%s3215_s24 + $0x3b8] sm:$0xff]  ;;  %v3682_v25 = vld [vmem:[%s3215_s24 + $0x380] sm:$0xff]  ;;  %v396_v16 = vpack.c.bf16 %v3671_v51, %v3664_v26 }
  0x8d   : > { %780 = vmatprep.subr.bf16.mxu1 %v390_v50  ;;  %6685 = vst [vmem:[#allocation81_spill] sm:$0xff] %v3676_v12  ;;  %6686 = vst [vmem:[#allocation82_spill] sm:$0xff] %v3679_v7  ;;  %v3685_v62 = vld [vmem:[%s3215_s24 + $0x3a0] sm:$0xff]  ;;  %v391_v50 = vpack.c.bf16 %v3652_v30, %v3649_v3  ;;  %v3690_v59 = vld [vmem:[%s3215_s24 + $0x390] sm:$0xff] }
  0x8e   : > { %v3697_v63 = vld [vmem:[%s3215_s24 + $0x3b0] sm:$0xff]  ;;  %v3702_v3 = vld [vmem:[%s3215_s24 + $0x3c8] sm:$0xff]  ;;  %v395_v51 = vpack.c.bf16 %v3685_v62, %v3682_v25  ;;  %v3716_v26 = vld [vmem:[%s3215_s24 + $0x3c0] sm:$0xff] }
  0x8f   : > { %588 = vmatpush1.bf16.msra.mxu0 %v387_v61  ;;  %v398_v61 = vpack.c.bf16 %v3679_v7, %v3676_v12  ;;  %v3705_v30 = vld [vmem:[%s3215_s24 + $0x3e8] sm:$0xff]  ;;  %6690 = vst [vmem:[#allocation86_spill] sm:$0xff] %v3716_v26  ;;  %v3723_v12 = vld [vmem:[%s3215_s24 + $0x3e0] sm:$0xff]  ;;  %v3731_v39 = vld [vmem:[%s3215_s24 + $0x3f0] sm:$0xff] }
  0x90   : > { %781 = vmatpush1.bf16.msra.mxu1 %v389_v43  ;;  %589 = vmatprep.subr.bf16.mxu0 %v392_v21  ;;  %6687 = vst [vmem:[#allocation83_spill] sm:$0xff] %v3705_v30  ;;  %v3708_v21 = vld [vmem:[%s3215_s24 + $0x3d8] sm:$0xff]  ;;  %v400_v7 = vpack.c.bf16 %v3705_v30, %v3702_v3  ;;  %6692 = vst [vmem:[#allocation88_spill] sm:$0xff] %v3731_v39  ;;  %v3737_v30 = vld [vmem:[#allocation2] ss:$8 sps:$4 sm:$0xff]  }
  0x91   : > { %782 = vmatprep.subr.bf16.mxu1 %v394_v56  ;;  %6688 = vst [vmem:[#allocation84_spill] sm:$0xff] %v3708_v21  ;;  %v3711_v43 = vld [vmem:[%s3215_s24 + $0x3f8] sm:$0xff]  ;;  %v397_v56 = vpack.c.bf16 %v3697_v63, %v3690_v59  ;;  %6693 = vst [vmem:[#allocation89_spill] sm:$0xff] %v3737_v30 }
  0x92   : > { %6689 = vst [vmem:[#allocation85_spill] sm:$0xff] %v3711_v43  ;;  %v402_v60 = vpack.c.bf16 %v3711_v43, %v3708_v21 }
  0x93   : > { %590 = vmatpush1.bf16.msra.mxu0 %v391_v50  ;;  %v3728_v50 = vld [vmem:[%s3215_s24 + $0x3d0] sm:$0xff] }
  0x94   : > { %783 = vmatpush1.bf16.msra.mxu1 %v393_v17  ;;  %591 = vmatprep.subr.bf16.mxu0 %v396_v16  ;;  %6691 = vst [vmem:[#allocation87_spill] sm:$0xff] %v3728_v50  ;;  %v399_v17 = vpack.c.bf16 %v3723_v12, %v3716_v26  ;;  %v401_v16 = vpack.c.bf16 %v3731_v39, %v3728_v50 }
  0x95   : > { %784 = vmatprep.subr.bf16.mxu1 %v398_v61  ;;  %v3739_v61 = vld [vmem:[#allocation2 + $0x14] ss:$8 sps:$4 sm:$0xff]  }
  0x96   : > { %6694 = vst [vmem:[#allocation90_spill] sm:$0xff] %v3739_v61 }
  0x97   : > { %592 = vmatpush1.bf16.msra.mxu0 %v395_v51  ;;  %v3745_v51 = vld [vmem:[#allocation2 + $0x10] ss:$8 sps:$4 sm:$0xff]  }
  0x98   : > { %785 = vmatpush1.bf16.msra.mxu1 %v397_v56  ;;  %593 = vmatprep.subr.bf16.mxu0 %v400_v7  ;;  %6695 = vst [vmem:[#allocation91_spill] sm:$0xff] %v3745_v51  ;;  %v3747_v7 = vld [vmem:[#allocation2 + $0x24] ss:$8 sps:$4 sm:$0xff]   ;;  %v3755_v56 = vld [vmem:[#allocation2 + $0x34] ss:$8 sps:$4 sm:$0xff]  }
  0x99   : > { %786 = vmatprep.subr.bf16.mxu1 %v402_v60  ;;  %6696 = vst [vmem:[#allocation92_spill] sm:$0xff] %v3747_v7  ;;  %v3753_v60 = vld [vmem:[#allocation2 + $0x20] ss:$8 sps:$4 sm:$0xff]   ;;  %6698 = vst [vmem:[#allocation94_spill] sm:$0xff] %v3755_v56 }
  0x9a   : > { %6697 = vst [vmem:[#allocation93_spill] sm:$0xff] %v3753_v60 }
  0x9b   : > { %594 = vmatpush1.bf16.msra.mxu0 %v399_v17  ;;  %v3761_v17 = vld [vmem:[#allocation2 + $0x30] ss:$8 sps:$4 sm:$0xff]  }
  0x9c   : > { %787 = vmatpush1.bf16.msra.mxu1 %v401_v16  ;;  %6699 = vst [vmem:[#allocation95_spill] sm:$0xff] %v3761_v17  ;;  %v3763_v16 = vld [vmem:[#allocation2 + $0x44] ss:$8 sps:$4 sm:$0xff]  }
  0x9d   : > { %6700 = vst [vmem:[#allocation96_spill] sm:$0xff] %v3763_v16 }
  0x9e   : > { %596 = vmatmul.mubr.bf16.vlgmr.msra.gmra.mrb[0].mxu0 %v3737_v30 }
  0x9f   : > { %789 = vmatmul.mubr.bf16.vlgmr.msra.gmra.mrb[0].mxu1 %v3737_v30  ;;  %605 = vmatprep.mubr.bf16.mxu0 %v3739_v61 }
  0xa0   : > { %798 = vmatprep.mubr.bf16.mxu1 %v3739_v61 }
  0xa6   : > { %606 = vmatmul.mubr.bf16.gmra.mrb[4].mxu0 %v3745_v51 }
  0xa7   : > { %799 = vmatmul.mubr.bf16.gmra.mrb[4].mxu1 %v3745_v51  ;;  %615 = vmatprep.mubr.bf16.mxu0 %v3747_v7  ;;  %v3771_v51 = vld [vmem:[#allocation2 + $0x54] ss:$8 sps:$4 sm:$0xff]  }
  0xa8   : > { %808 = vmatprep.mubr.bf16.mxu1 %v3747_v7  ;;  %v3769_v7 = vld [vmem:[#allocation2 + $0x40] ss:$8 sps:$4 sm:$0xff]   ;;  %6702 = vst [vmem:[#allocation98_spill] sm:$0xff] %v3771_v51 }
  0xa9   : > { %6701 = vst [vmem:[#allocation97_spill] sm:$0xff] %v3769_v7 }
  0xae   : > { %616 = vmatmul.mubr.bf16.gmra.mrb[8].mxu0 %v3753_v60 }
  0xaf   : > { %809 = vmatmul.mubr.bf16.gmra.mrb[8].mxu1 %v3753_v60  ;;  %625 = vmatprep.mubr.bf16.mxu0 %v3755_v56  ;;  %v3779_v60 = vld [vmem:[#allocation2 + $0x64] ss:$8 sps:$4 sm:$0xff]  }
  0xb0   : > { %818 = vmatprep.mubr.bf16.mxu1 %v3755_v56  ;;  %v3777_v56 = vld [vmem:[#allocation2 + $0x50] ss:$8 sps:$4 sm:$0xff]   ;;  %6704 = vst [vmem:[#allocation100_spill] sm:$0xff] %v3779_v60 }
  0xb1   : > { %6703 = vst [vmem:[#allocation99_spill] sm:$0xff] %v3777_v56 }
  0xb6   : > { %626 = vmatmul.mubr.bf16.gmra.mrb[12].mxu0 %v3761_v17 }
  0xb7   : > { %819 = vmatmul.mubr.bf16.gmra.mrb[12].mxu1 %v3761_v17  ;;  %635 = vmatprep.mubr.bf16.mxu0 %v3763_v16  ;;  %v3787_v17 = vld [vmem:[#allocation2 + $0x74] ss:$8 sps:$4 sm:$0xff]  }
  0xb8   : > { %828 = vmatprep.mubr.bf16.mxu1 %v3763_v16  ;;  %v3785_v16 = vld [vmem:[#allocation2 + $0x60] ss:$8 sps:$4 sm:$0xff]   ;;  %6706 = vst [vmem:[#allocation102_spill] sm:$0xff] %v3787_v17 }
  0xb9   : > { %6705 = vst [vmem:[#allocation101_spill] sm:$0xff] %v3785_v16 }
  0xbe   : > { %636 = vmatmul.mubr.bf16.gmra.mrb[16].mxu0 %v3769_v7 }
  0xbf   : > { %829 = vmatmul.mubr.bf16.gmra.mrb[16].mxu1 %v3769_v7  ;;  %645 = vmatprep.mubr.bf16.mxu0 %v3771_v51  ;;  %v3795_v7 = vld [vmem:[#allocation2 + $0x84] ss:$8 sps:$4 sm:$0xff]  }
  0xc0   : > { %838 = vmatprep.mubr.bf16.mxu1 %v3771_v51  ;;  %v3793_v51 = vld [vmem:[#allocation2 + $0x70] ss:$8 sps:$4 sm:$0xff]   ;;  %6708 = vst [vmem:[#allocation104_spill] sm:$0xff] %v3795_v7 }
  0xc1   : > { %6707 = vst [vmem:[#allocation103_spill] sm:$0xff] %v3793_v51 }
  0xc6   : > { %646 = vmatmul.mubr.bf16.gmra.mrb[20].mxu0 %v3777_v56 }
  0xc7   : > { %839 = vmatmul.mubr.bf16.gmra.mrb[20].mxu1 %v3777_v56  ;;  %655 = vmatprep.mubr.bf16.mxu0 %v3779_v60  ;;  %v3803_v56 = vld [vmem:[#allocation2 + $0x94] ss:$8 sps:$4 sm:$0xff]  }
  0xc8   : > { %848 = vmatprep.mubr.bf16.mxu1 %v3779_v60  ;;  %v3801_v60 = vld [vmem:[#allocation2 + $0x80] ss:$8 sps:$4 sm:$0xff]   ;;  %6710 = vst [vmem:[#allocation106_spill] sm:$0xff] %v3803_v56 }
  0xc9   : > { %6709 = vst [vmem:[#allocation105_spill] sm:$0xff] %v3801_v60 }
  0xce   : > { %656 = vmatmul.mubr.bf16.gmra.mrb[24].mxu0 %v3785_v16 }
  0xcf   : > { %849 = vmatmul.mubr.bf16.gmra.mrb[24].mxu1 %v3785_v16  ;;  %665 = vmatprep.mubr.bf16.mxu0 %v3787_v17  ;;  %v3811_v16 = vld [vmem:[#allocation2 + $0xa4] ss:$8 sps:$4 sm:$0xff]  }
  0xd0   : > { %858 = vmatprep.mubr.bf16.mxu1 %v3787_v17  ;;  %v3809_v17 = vld [vmem:[#allocation2 + $0x90] ss:$8 sps:$4 sm:$0xff]   ;;  %6712 = vst [vmem:[#allocation108_spill] sm:$0xff] %v3811_v16 }
  0xd1   : > { %6711 = vst [vmem:[#allocation107_spill] sm:$0xff] %v3809_v17 }
  0xd6   : > { %666 = vmatmul.mubr.bf16.gmra.mrb[28].mxu0 %v3793_v51 }
  0xd7   : > { %859 = vmatmul.mubr.bf16.gmra.mrb[28].mxu1 %v3793_v51  ;;  %675 = vmatprep.mubr.bf16.mxu0 %v3795_v7  ;;  %v3819_v51 = vld [vmem:[#allocation2 + $0xb4] ss:$8 sps:$4 sm:$0xff]  }
  0xd8   : > { %868 = vmatprep.mubr.bf16.mxu1 %v3795_v7  ;;  %v3817_v7 = vld [vmem:[#allocation2 + $0xa0] ss:$8 sps:$4 sm:$0xff]   ;;  %6714 = vst [vmem:[#allocation110_spill] sm:$0xff] %v3819_v51 }
  0xd9   : > { %6713 = vst [vmem:[#allocation109_spill] sm:$0xff] %v3817_v7 }
  0xde   : > { %676 = vmatmul.mubr.bf16.gmra.mrb[32].mxu0 %v3801_v60 }
  0xdf   : > { %869 = vmatmul.mubr.bf16.gmra.mrb[32].mxu1 %v3801_v60  ;;  %685 = vmatprep.mubr.bf16.mxu0 %v3803_v56  ;;  %v3827_v60 = vld [vmem:[#allocation2 + $0xc4] ss:$8 sps:$4 sm:$0xff]  }
  0xe0   : > { %878 = vmatprep.mubr.bf16.mxu1 %v3803_v56  ;;  %v3825_v56 = vld [vmem:[#allocation2 + $0xb0] ss:$8 sps:$4 sm:$0xff]   ;;  %6716 = vst [vmem:[#allocation112_spill] sm:$0xff] %v3827_v60 }
  0xe1   : > { %6715 = vst [vmem:[#allocation111_spill] sm:$0xff] %v3825_v56 }
  0xe6   : > { %686 = vmatmul.mubr.bf16.gmra.mrb[36].mxu0 %v3809_v17 }
  0xe7   : > { %879 = vmatmul.mubr.bf16.gmra.mrb[36].mxu1 %v3809_v17  ;;  %695 = vmatprep.mubr.bf16.mxu0 %v3811_v16  ;;  %v3835_v17 = vld [vmem:[#allocation2 + $0xd4] ss:$8 sps:$4 sm:$0xff]  }
  0xe8   : > { %888 = vmatprep.mubr.bf16.mxu1 %v3811_v16  ;;  %v3833_v16 = vld [vmem:[#allocation2 + $0xc0] ss:$8 sps:$4 sm:$0xff]   ;;  %6718 = vst [vmem:[#allocation114_spill] sm:$0xff] %v3835_v17 }
  0xe9   : > { %6717 = vst [vmem:[#allocation113_spill] sm:$0xff] %v3833_v16 }
  0xee   : > { %696 = vmatmul.mubr.bf16.gmra.mrb[40].mxu0 %v3817_v7 }
  0xef   : > { %889 = vmatmul.mubr.bf16.gmra.mrb[40].mxu1 %v3817_v7  ;;  %705 = vmatprep.mubr.bf16.mxu0 %v3819_v51  ;;  %v3843_v7 = vld [vmem:[#allocation2 + $0xe4] ss:$8 sps:$4 sm:$0xff]  }
  0xf0   : > { %898 = vmatprep.mubr.bf16.mxu1 %v3819_v51  ;;  %v3841_v51 = vld [vmem:[#allocation2 + $0xd0] ss:$8 sps:$4 sm:$0xff]   ;;  %6720 = vst [vmem:[#allocation116_spill] sm:$0xff] %v3843_v7 }
  0xf1   : > { %6719 = vst [vmem:[#allocation115_spill] sm:$0xff] %v3841_v51 }
  0xf6   : > { %706 = vmatmul.mubr.bf16.gmra.mrb[44].mxu0 %v3825_v56 }
  0xf7   : > { %899 = vmatmul.mubr.bf16.gmra.mrb[44].mxu1 %v3825_v56  ;;  %715 = vmatprep.mubr.bf16.mxu0 %v3827_v60  ;;  %v3851_v56 = vld [vmem:[#allocation2 + $0xf4] ss:$8 sps:$4 sm:$0xff]  }
  0xf8   : > { %908 = vmatprep.mubr.bf16.mxu1 %v3827_v60  ;;  %v3849_v60 = vld [vmem:[#allocation2 + $0xe0] ss:$8 sps:$4 sm:$0xff]   ;;  %6722 = vst [vmem:[#allocation118_spill] sm:$0xff] %v3851_v56 }
  0xf9   : > { %6721 = vst [vmem:[#allocation117_spill] sm:$0xff] %v3849_v60 }
  0xfe   : > { %716 = vmatmul.mubr.bf16.gmra.mrb[48].mxu0 %v3833_v16 }
  0xff   : > { %909 = vmatmul.mubr.bf16.gmra.mrb[48].mxu1 %v3833_v16  ;;  %725 = vmatprep.mubr.bf16.mxu0 %v3835_v17 }
 0x100   : > { %918 = vmatprep.mubr.bf16.mxu1 %v3835_v17  ;;  %v3857_v17 = vld [vmem:[#allocation2 + $0xf0] ss:$8 sps:$4 sm:$0xff]  }
 0x101   : > { %6723 = vst [vmem:[#allocation119_spill] sm:$0xff] %v3857_v17 }
 0x106   : > { %726 = vmatmul.mubr.bf16.gmra.mrb[52].mxu0 %v3841_v51 }
 0x107   : > { %919 = vmatmul.mubr.bf16.gmra.mrb[52].mxu1 %v3841_v51  ;;  %735 = vmatprep.mubr.bf16.mxu0 %v3843_v7 }
 0x108   : > { %928 = vmatprep.mubr.bf16.mxu1 %v3843_v7 }
 0x10e   : > { %736 = vmatmul.mubr.bf16.gmra.mrb[56].mxu0 %v3849_v60 }
 0x10f   : > { %929 = vmatmul.mubr.bf16.gmra.mrb[56].mxu1 %v3849_v60  ;;  %745 = vmatprep.mubr.bf16.mxu0 %v3851_v56 }
 0x110   : > { %938 = vmatprep.mubr.bf16.mxu1 %v3851_v56 }
 0x116   : > { %746 = vmatmul.mubr.bf16.gmra.mrb[60].mxu0 %v3857_v17 }
 0x117   : > { %939 = vmatmul.mubr.bf16.gmra.mrb[60].mxu1 %v3857_v17  ;;  %1173 = vmatprep.mubr.bf16.mxu0 %v3619_v34 }
 0x118   : > { %1366 = vmatprep.mubr.bf16.mxu1 %v3619_v34 }
 0x171   : > { %v597_v7 = vpop.f32.mrb[0].mxu0 }
 0x172   : > { %v790_v51 = vpop.f32.mrb[0].mxu1  ;;  %v599_v16 = vpop.f32.mrb[1].mxu0  ;;  %v3876_v26 = vadd.f32 %v597_v7, %v3236_v5 }
 0x173   : > { %v792_v61 = vpop.f32.mrb[1].mxu1  ;;  %v601_v30 = vpop.f32.mrb[2].mxu0  ;;  %v3867_v43 = vadd.f32 %v599_v16, %v3222_v0 }
 0x174   : > { %v3864_v60 = vadd.f32 %v601_v30, %v3239_v6  ;;  %v794_v50 = vpop.f32.mrb[2].mxu1  ;;  %v603_v56 = vpop.f32.mrb[3].mxu0  ;;  %v3879_v39 = vadd.f32 %v792_v61, %v3228_v2  ;;  %v3885_v30 = vadd.f32 %v790_v51, %v3246_v9 }
 0x175   : > { %v3870_v21 = vadd.f32 %v794_v50, %v3249_v10  ;;  %v3873_v17 = vadd.f32 %v603_v56, %v3225_v1  ;;  %v796_v34 = vpop.f32.mrb[3].mxu1 }
 0x176   : > { %6724 = vst [vmem:[#allocation120_spill] sm:$0xff] %v3864_v60  ;;  %v3882_v6 = vadd.f32 %v796_v34, %v3233_v4  ;;  %v1077_v1 = vpack.c.bf16 %v3864_v60, %v3876_v26 }
 0x177   : > { %6725 = vst [vmem:[#allocation121_spill] sm:$0xff] %v3873_v17  ;;  %v1078_v0 = vpack.c.bf16 %v3873_v17, %v3867_v43  ;;  %v1079_v5 = vpack.c.bf16 %v3870_v21, %v3885_v30 }
 0x178   : > { %6726 = vst [vmem:[#allocation122_spill] sm:$0xff] %v3882_v6  ;;  %v1080_v10 = vpack.c.bf16 %v3882_v6, %v3879_v39 }
 0x179   : > { %v607_v2 = vpop.f32.mrb[4].mxu0  ;;  %1141 = vmatprep.subr.bf16.mxu0 %v1078_v0 }
 0x17a   : > { %v800_v50 = vpop.f32.mrb[4].mxu1  ;;  %1334 = vmatprep.subr.bf16.mxu1 %v1080_v10  ;;  %v609_v4 = vpop.f32.mrb[5].mxu0  ;;  %1142 = vmatpush1.bf16.msra.mxu0 %v1077_v1  ;;  %v3908_v1 = vadd.f32 %v607_v2, %v3270_v18 }
 0x17b   : > { %v802_v9 = vpop.f32.mrb[5].mxu1  ;;  %1335 = vmatpush1.bf16.msra.mxu1 %v1079_v5  ;;  %v611_v61 = vpop.f32.mrb[6].mxu0  ;;  %v3899_v16 = vadd.f32 %v609_v4, %v3252_v11 }
 0x17c   : > { %v3896_v51 = vadd.f32 %v611_v61, %v3273_v19  ;;  %v804_v7 = vpop.f32.mrb[6].mxu1  ;;  %v613_v56 = vpop.f32.mrb[7].mxu0  ;;  %v3911_v5 = vadd.f32 %v802_v9, %v3260_v14  ;;  %v3917_v61 = vadd.f32 %v800_v50, %v3276_v20 }
 0x17d   : > { %v3902_v34 = vadd.f32 %v804_v7, %v3281_v22  ;;  %v3905_v0 = vadd.f32 %v613_v56, %v3257_v13  ;;  %v806_v10 = vpop.f32.mrb[7].mxu1 }
 0x17e   : > { %v3914_v19 = vadd.f32 %v806_v10, %v3263_v15  ;;  %v1081_v13 = vpack.c.bf16 %v3896_v51, %v3908_v1 }
 0x17f   : > { %v1082_v11 = vpack.c.bf16 %v3905_v0, %v3899_v16  ;;  %v1083_v18 = vpack.c.bf16 %v3902_v34, %v3917_v61 }
 0x180   : > { %v1084_v22 = vpack.c.bf16 %v3914_v19, %v3911_v5 }
 0x181   : > { %v617_v14 = vpop.f32.mrb[8].mxu0  ;;  %1143 = vmatprep.subr.bf16.mxu0 %v1082_v11 }
 0x182   : > { %v810_v2 = vpop.f32.mrb[8].mxu1  ;;  %1336 = vmatprep.subr.bf16.mxu1 %v1084_v22  ;;  %v619_v15 = vpop.f32.mrb[9].mxu0  ;;  %1144 = vmatpush1.bf16.msra.mxu0 %v1081_v13  ;;  %v3940_v13 = vadd.f32 %v617_v14, %v3300_v29 }
 0x183   : > { %v812_v20 = vpop.f32.mrb[9].mxu1  ;;  %1337 = vmatpush1.bf16.msra.mxu1 %v1083_v18  ;;  %v621_v50 = vpop.f32.mrb[10].mxu0  ;;  %v3931_v56 = vadd.f32 %v619_v15, %v3284_v23 }
 0x184   : > { %v3928_v4 = vadd.f32 %v621_v50, %v3305_v31  ;;  %v814_v9 = vpop.f32.mrb[10].mxu1  ;;  %v623_v7 = vpop.f32.mrb[11].mxu0  ;;  %v3943_v18 = vadd.f32 %v812_v20, %v3294_v27  ;;  %v3949_v50 = vadd.f32 %v810_v2, %v3308_v32 }
 0x185   : > { %v3934_v10 = vadd.f32 %v814_v9, %v3311_v33  ;;  %v3937_v11 = vadd.f32 %v623_v7, %v3287_v24  ;;  %v816_v22 = vpop.f32.mrb[11].mxu1 }
 0x186   : > { %v3946_v31 = vadd.f32 %v816_v22, %v3297_v28  ;;  %v1085_v24 = vpack.c.bf16 %v3928_v4, %v3940_v13 }
 0x187   : > { %v1086_v23 = vpack.c.bf16 %v3937_v11, %v3931_v56  ;;  %v1087_v29 = vpack.c.bf16 %v3934_v10, %v3949_v50 }
 0x188   : > { %v1088_v33 = vpack.c.bf16 %v3946_v31, %v3943_v18 }
 0x189   : > { %v627_v27 = vpop.f32.mrb[12].mxu0  ;;  %1145 = vmatprep.subr.bf16.mxu0 %v1086_v23 }
 0x18a   : > { %v820_v14 = vpop.f32.mrb[12].mxu1  ;;  %1338 = vmatprep.subr.bf16.mxu1 %v1088_v33  ;;  %v629_v28 = vpop.f32.mrb[13].mxu0  ;;  %1146 = vmatpush1.bf16.msra.mxu0 %v1085_v24  ;;  %v3972_v24 = vadd.f32 %v627_v27, %v3332_v41 }
 0x18b   : > { %v822_v32 = vpop.f32.mrb[13].mxu1  ;;  %1339 = vmatpush1.bf16.msra.mxu1 %v1087_v29  ;;  %v631_v2 = vpop.f32.mrb[14].mxu0  ;;  %v3963_v7 = vadd.f32 %v629_v28, %v3316_v35 }
 0x18c   : > { %v3960_v15 = vadd.f32 %v631_v2, %v3335_v42  ;;  %v824_v20 = vpop.f32.mrb[14].mxu1  ;;  %v633_v9 = vpop.f32.mrb[15].mxu0  ;;  %v3975_v29 = vadd.f32 %v822_v32, %v3322_v37  ;;  %v3981_v2 = vadd.f32 %v820_v14, %v3340_v44 }
 0x18d   : > { %v3966_v22 = vadd.f32 %v824_v20, %v3343_v45  ;;  %v3969_v23 = vadd.f32 %v633_v9, %v3319_v36  ;;  %v826_v33 = vpop.f32.mrb[15].mxu1 }
 0x18e   : > { %v3978_v42 = vadd.f32 %v826_v33, %v3329_v40  ;;  %v1089_v36 = vpack.c.bf16 %v3960_v15, %v3972_v24 }
 0x18f   : > { %6727 = vst [vmem:[#allocation123_spill] sm:$0xff] %v3966_v22  ;;  %6728 = vst [vmem:[#allocation124_spill] sm:$0xff] %v3969_v23  ;;  %v1090_v35 = vpack.c.bf16 %v3969_v23, %v3963_v7  ;;  %v1091_v41 = vpack.c.bf16 %v3966_v22, %v3981_v2 }
 0x190   : > { %6729 = vst [vmem:[#allocation125_spill] sm:$0xff] %v3978_v42  ;;  %v1092_v45 = vpack.c.bf16 %v3978_v42, %v3975_v29 }
 0x191   : > { %v637_v37 = vpop.f32.mrb[16].mxu0  ;;  %1147 = vmatprep.subr.bf16.mxu0 %v1090_v35 }
 0x192   : > { %v830_v27 = vpop.f32.mrb[16].mxu1  ;;  %1340 = vmatprep.subr.bf16.mxu1 %v1092_v45  ;;  %v639_v40 = vpop.f32.mrb[17].mxu0  ;;  %1148 = vmatpush1.bf16.msra.mxu0 %v1089_v36  ;;  %v4004_v36 = vadd.f32 %v637_v37, %v3364_v53 }
 0x193   : > { %v832_v44 = vpop.f32.mrb[17].mxu1  ;;  %1341 = vmatpush1.bf16.msra.mxu1 %v1091_v41  ;;  %v641_v14 = vpop.f32.mrb[18].mxu0  ;;  %v3995_v9 = vadd.f32 %v639_v40, %v3346_v46 }
 0x194   : > { %v3992_v28 = vadd.f32 %v641_v14, %v3367_v54  ;;  %v834_v32 = vpop.f32.mrb[18].mxu1  ;;  %v643_v20 = vpop.f32.mrb[19].mxu0  ;;  %6734 = vst [vmem:[#allocation130_spill] sm:$0xff] %v4004_v36  ;;  %v4007_v41 = vadd.f32 %v832_v44, %v3352_v48  ;;  %v4013_v14 = vadd.f32 %v830_v27, %v3370_v55 }
 0x195   : > { %6731 = vst [vmem:[#allocation127_spill] sm:$0xff] %v3995_v9  ;;  %v3998_v33 = vadd.f32 %v834_v32, %v3375_v57  ;;  %v4001_v35 = vadd.f32 %v643_v20, %v3349_v47  ;;  %v836_v45 = vpop.f32.mrb[19].mxu1 }
 0x196   : > { %6730 = vst [vmem:[#allocation126_spill] sm:$0xff] %v3992_v28  ;;  %6735 = vst [vmem:[#allocation131_spill] sm:$0xff] %v4007_v41  ;;  %v4010_v54 = vadd.f32 %v836_v45, %v3355_v49  ;;  %v1093_v47 = vpack.c.bf16 %v3992_v28, %v4004_v36  ;;  %v6740_v45 = vld [vmem:[#allocation16_spill] sm:$0xff] }
 0x197   : > { %6732 = vst [vmem:[#allocation128_spill] sm:$0xff] %v3998_v33  ;;  %6733 = vst [vmem:[#allocation129_spill] sm:$0xff] %v4001_v35  ;;  %v1094_v46 = vpack.c.bf16 %v4001_v35, %v3995_v9  ;;  %v1095_v53 = vpack.c.bf16 %v3998_v33, %v4013_v14  ;;  %v6750_v35 = vld [vmem:[#allocation15_spill] sm:$0xff] }
 0x198   : > { %6736 = vst [vmem:[#allocation132_spill] sm:$0xff] %v4010_v54  ;;  %6737 = vst [vmem:[#allocation133_spill] sm:$0xff] %v4013_v14  ;;  %v1096_v57 = vpack.c.bf16 %v4010_v54, %v4007_v41  ;;  %v6742_v14 = vld [vmem:[#allocation11_spill] sm:$0xff]  ;;  %v6744_v41 = vld [vmem:[#allocation14_spill] sm:$0xff] }
 0x199   : > { %v647_v48 = vpop.f32.mrb[20].mxu0  ;;  %1149 = vmatprep.subr.bf16.mxu0 %v1094_v46 }
 0x19a   : > { %v840_v37 = vpop.f32.mrb[20].mxu1  ;;  %1342 = vmatprep.subr.bf16.mxu1 %v1096_v57  ;;  %v649_v49 = vpop.f32.mrb[21].mxu0  ;;  %1150 = vmatpush1.bf16.msra.mxu0 %v1093_v47  ;;  %v4036_v47 = vadd.f32 %v647_v48, %v6744_v41 }
 0x19b   : > { %v842_v55 = vpop.f32.mrb[21].mxu1  ;;  %1343 = vmatpush1.bf16.msra.mxu1 %v1095_v53  ;;  %v651_v27 = vpop.f32.mrb[22].mxu0  ;;  %v4027_v20 = vadd.f32 %v649_v49, %v3378_v58  ;;  %v6746_v53 = vld [vmem:[#allocation12_spill] sm:$0xff]  ;;  %v4045_v33 = vadd.f32 %v840_v37, %v6750_v35 }
 0x19c   : > { %v4024_v40 = vadd.f32 %v651_v27, %v3399_v8  ;;  %v844_v44 = vpop.f32.mrb[22].mxu1  ;;  %v653_v32 = vpop.f32.mrb[23].mxu0  ;;  %6745 = vst [vmem:[#allocation14_spill] sm:$0xff] %v4036_v47  ;;  %v4039_v36 = vadd.f32 %v842_v55, %v6746_v53  ;;  %v6748_v8 = vld [vmem:[#allocation13_spill] sm:$0xff] }
 0x19d   : > { %6739 = vst [vmem:[#allocation135_spill] sm:$0xff] %v4027_v20  ;;  %v4030_v54 = vadd.f32 %v844_v44, %v6740_v45  ;;  %v4033_v46 = vadd.f32 %v653_v32, %v6742_v14  ;;  %v846_v57 = vpop.f32.mrb[23].mxu1  ;;  %6751 = vst [vmem:[#allocation15_spill] sm:$0xff] %v4045_v33  ;;  %v6752_v32 = vld [vmem:[#allocation22_spill] sm:$0xff] }
 0x19e   : > { %6738 = vst [vmem:[#allocation134_spill] sm:$0xff] %v4024_v40  ;;  %6747 = vst [vmem:[#allocation12_spill] sm:$0xff] %v4039_v36  ;;  %v4042_v27 = vadd.f32 %v846_v57, %v6748_v8  ;;  %v1097_v14 = vpack.c.bf16 %v4024_v40, %v4036_v47  ;;  %v6754_v8 = vld [vmem:[#allocation17_spill] sm:$0xff] }
 0x19f   : > { %6741 = vst [vmem:[#allocation16_spill] sm:$0xff] %v4030_v54  ;;  %6743 = vst [vmem:[#allocation11_spill] sm:$0xff] %v4033_v46  ;;  %v1098_v58 = vpack.c.bf16 %v4033_v46, %v4027_v20  ;;  %v1099_v41 = vpack.c.bf16 %v4030_v54, %v4045_v33  ;;  %v6758_v33 = vld [vmem:[#allocation18_spill] sm:$0xff]  ;;  %v6760_v46 = vld [vmem:[#allocation21_spill] sm:$0xff] }
 0x1a0   : > { %6749 = vst [vmem:[#allocation13_spill] sm:$0xff] %v4042_v27  ;;  %v1100_v49 = vpack.c.bf16 %v4042_v27, %v4039_v36  ;;  %v6756_v27 = vld [vmem:[#allocation24_spill] sm:$0xff]  ;;  %v6766_v20 = vld [vmem:[#allocation23_spill] sm:$0xff] }
 0x1a1   : > { %v657_v48 = vpop.f32.mrb[24].mxu0  ;;  %1151 = vmatprep.subr.bf16.mxu0 %v1098_v58 }
 0x1a2   : > { %v850_v55 = vpop.f32.mrb[24].mxu1  ;;  %1344 = vmatprep.subr.bf16.mxu1 %v1100_v49  ;;  %v659_v44 = vpop.f32.mrb[25].mxu0  ;;  %1152 = vmatpush1.bf16.msra.mxu0 %v1097_v14  ;;  %v4068_v14 = vadd.f32 %v657_v48, %v6760_v46 }
 0x1a3   : > { %v852_v35 = vpop.f32.mrb[25].mxu1  ;;  %1345 = vmatpush1.bf16.msra.mxu1 %v1099_v41  ;;  %v661_v37 = vpop.f32.mrb[26].mxu0  ;;  %v4059_v47 = vadd.f32 %v659_v44, %v6754_v8  ;;  %v6762_v41 = vld [vmem:[#allocation19_spill] sm:$0xff]  ;;  %v4077_v40 = vadd.f32 %v850_v55, %v6766_v20 }
 0x1a4   : > { %v4056_v45 = vadd.f32 %v661_v37, %v6752_v32  ;;  %v854_v57 = vpop.f32.mrb[26].mxu1  ;;  %v663_v53 = vpop.f32.mrb[27].mxu0  ;;  %6761 = vst [vmem:[#allocation21_spill] sm:$0xff] %v4068_v14  ;;  %v4071_v54 = vadd.f32 %v852_v35, %v6762_v41  ;;  %v6764_v37 = vld [vmem:[#allocation20_spill] sm:$0xff] }
 0x1a5   : > { %6755 = vst [vmem:[#allocation17_spill] sm:$0xff] %v4059_v47  ;;  %v4062_v36 = vadd.f32 %v854_v57, %v6756_v27  ;;  %v4065_v58 = vadd.f32 %v663_v53, %v6758_v33  ;;  %v856_v49 = vpop.f32.mrb[27].mxu1  ;;  %6767 = vst [vmem:[#allocation23_spill] sm:$0xff] %v4077_v40  ;;  %v6768_v53 = vld [vmem:[#allocation30_spill] sm:$0xff] }
 0x1a6   : > { %6753 = vst [vmem:[#allocation22_spill] sm:$0xff] %v4056_v45  ;;  %6763 = vst [vmem:[#allocation19_spill] sm:$0xff] %v4071_v54  ;;  %v4074_v32 = vadd.f32 %v856_v49, %v6764_v37  ;;  %v1101_v33 = vpack.c.bf16 %v4056_v45, %v4068_v14  ;;  %v6770_v37 = vld [vmem:[#allocation25_spill] sm:$0xff] }
 0x1a7   : > { %6757 = vst [vmem:[#allocation24_spill] sm:$0xff] %v4062_v36  ;;  %6759 = vst [vmem:[#allocation18_spill] sm:$0xff] %v4065_v58  ;;  %v1102_v27 = vpack.c.bf16 %v4065_v58, %v4059_v47  ;;  %v1103_v46 = vpack.c.bf16 %v4062_v36, %v4077_v40  ;;  %v6774_v40 = vld [vmem:[#allocation26_spill] sm:$0xff]  ;;  %v6776_v58 = vld [vmem:[#allocation29_spill] sm:$0xff] }
 0x1a8   : > { %6765 = vst [vmem:[#allocation20_spill] sm:$0xff] %v4074_v32  ;;  %v1104_v44 = vpack.c.bf16 %v4074_v32, %v4071_v54  ;;  %v6772_v32 = vld [vmem:[#allocation32_spill] sm:$0xff]  ;;  %v6782_v47 = vld [vmem:[#allocation31_spill] sm:$0xff] }
 0x1a9   : > { %v667_v48 = vpop.f32.mrb[28].mxu0  ;;  %1153 = vmatprep.subr.bf16.mxu0 %v1102_v27 }
 0x1aa   : > { %v860_v35 = vpop.f32.mrb[28].mxu1  ;;  %1346 = vmatprep.subr.bf16.mxu1 %v1104_v44  ;;  %v669_v57 = vpop.f32.mrb[29].mxu0  ;;  %1154 = vmatpush1.bf16.msra.mxu0 %v1101_v33  ;;  %v4100_v33 = vadd.f32 %v667_v48, %v6776_v58 }
 0x1ab   : > { %v862_v20 = vpop.f32.mrb[29].mxu1  ;;  %1347 = vmatpush1.bf16.msra.mxu1 %v1103_v46  ;;  %v671_v55 = vpop.f32.mrb[30].mxu0  ;;  %v4091_v14 = vadd.f32 %v669_v57, %v6770_v37  ;;  %v6778_v46 = vld [vmem:[#allocation27_spill] sm:$0xff]  ;;  %v4109_v45 = vadd.f32 %v860_v35, %v6782_v47 }
 0x1ac   : > { %v4088_v8 = vadd.f32 %v671_v55, %v6768_v53  ;;  %v864_v49 = vpop.f32.mrb[30].mxu1  ;;  %v673_v41 = vpop.f32.mrb[31].mxu0  ;;  %6777 = vst [vmem:[#allocation29_spill] sm:$0xff] %v4100_v33  ;;  %v4103_v36 = vadd.f32 %v862_v20, %v6778_v46  ;;  %v6780_v55 = vld [vmem:[#allocation28_spill] sm:$0xff] }
 0x1ad   : > { %6771 = vst [vmem:[#allocation25_spill] sm:$0xff] %v4091_v14  ;;  %v4094_v54 = vadd.f32 %v864_v49, %v6772_v32  ;;  %v4097_v27 = vadd.f32 %v673_v41, %v6774_v40  ;;  %v866_v44 = vpop.f32.mrb[31].mxu1  ;;  %6783 = vst [vmem:[#allocation31_spill] sm:$0xff] %v4109_v45  ;;  %v6784_v41 = vld [vmem:[#allocation38_spill] sm:$0xff] }
 0x1ae   : > { %6769 = vst [vmem:[#allocation30_spill] sm:$0xff] %v4088_v8  ;;  %6779 = vst [vmem:[#allocation27_spill] sm:$0xff] %v4103_v36  ;;  %v4106_v53 = vadd.f32 %v866_v44, %v6780_v55  ;;  %v1105_v40 = vpack.c.bf16 %v4088_v8, %v4100_v33  ;;  %v6786_v55 = vld [vmem:[#allocation33_spill] sm:$0xff] }
 0x1af   : > { %6773 = vst [vmem:[#allocation32_spill] sm:$0xff] %v4094_v54  ;;  %6775 = vst [vmem:[#allocation26_spill] sm:$0xff] %v4097_v27  ;;  %v1106_v32 = vpack.c.bf16 %v4097_v27, %v4091_v14  ;;  %v1107_v58 = vpack.c.bf16 %v4094_v54, %v4109_v45  ;;  %v6790_v45 = vld [vmem:[#allocation34_spill] sm:$0xff]  ;;  %v6792_v27 = vld [vmem:[#allocation37_spill] sm:$0xff] }
 0x1b0   : > { %6781 = vst [vmem:[#allocation28_spill] sm:$0xff] %v4106_v53  ;;  %v1108_v57 = vpack.c.bf16 %v4106_v53, %v4103_v36  ;;  %v6788_v53 = vld [vmem:[#allocation40_spill] sm:$0xff]  ;;  %v6798_v14 = vld [vmem:[#allocation39_spill] sm:$0xff] }
 0x1b1   : > { %v677_v48 = vpop.f32.mrb[32].mxu0  ;;  %1155 = vmatprep.subr.bf16.mxu0 %v1106_v32 }
 0x1b2   : > { %v870_v20 = vpop.f32.mrb[32].mxu1  ;;  %1348 = vmatprep.subr.bf16.mxu1 %v1108_v57  ;;  %v679_v49 = vpop.f32.mrb[33].mxu0  ;;  %1156 = vmatpush1.bf16.msra.mxu0 %v1105_v40  ;;  %v4132_v40 = vadd.f32 %v677_v48, %v6792_v27 }
 0x1b3   : > { %v872_v47 = vpop.f32.mrb[33].mxu1  ;;  %1349 = vmatpush1.bf16.msra.mxu1 %v1107_v58  ;;  %v681_v35 = vpop.f32.mrb[34].mxu0  ;;  %v4123_v33 = vadd.f32 %v679_v49, %v6786_v55  ;;  %v6794_v58 = vld [vmem:[#allocation35_spill] sm:$0xff]  ;;  %v4141_v8 = vadd.f32 %v870_v20, %v6798_v14 }
 0x1b4   : > { %v4120_v37 = vadd.f32 %v681_v35, %v6784_v41  ;;  %v874_v44 = vpop.f32.mrb[34].mxu1  ;;  %v683_v46 = vpop.f32.mrb[35].mxu0  ;;  %6793 = vst [vmem:[#allocation37_spill] sm:$0xff] %v4132_v40  ;;  %v4135_v54 = vadd.f32 %v872_v47, %v6794_v58  ;;  %v6796_v35 = vld [vmem:[#allocation36_spill] sm:$0xff] }
 0x1b5   : > { %6787 = vst [vmem:[#allocation33_spill] sm:$0xff] %v4123_v33  ;;  %v4126_v36 = vadd.f32 %v874_v44, %v6788_v53  ;;  %v4129_v32 = vadd.f32 %v683_v46, %v6790_v45  ;;  %v876_v57 = vpop.f32.mrb[35].mxu1  ;;  %6799 = vst [vmem:[#allocation39_spill] sm:$0xff] %v4141_v8  ;;  %v6800_v46 = vld [vmem:[#allocation46_spill] sm:$0xff] }
 0x1b6   : > { %6785 = vst [vmem:[#allocation38_spill] sm:$0xff] %v4120_v37  ;;  %6795 = vst [vmem:[#allocation35_spill] sm:$0xff] %v4135_v54  ;;  %v4138_v41 = vadd.f32 %v876_v57, %v6796_v35  ;;  %v1109_v45 = vpack.c.bf16 %v4120_v37, %v4132_v40  ;;  %v6802_v35 = vld [vmem:[#allocation41_spill] sm:$0xff] }
 0x1b7   : > { %6789 = vst [vmem:[#allocation40_spill] sm:$0xff] %v4126_v36  ;;  %6791 = vst [vmem:[#allocation34_spill] sm:$0xff] %v4129_v32  ;;  %v1110_v53 = vpack.c.bf16 %v4129_v32, %v4123_v33  ;;  %v1111_v27 = vpack.c.bf16 %v4126_v36, %v4141_v8  ;;  %v6806_v8 = vld [vmem:[#allocation42_spill] sm:$0xff]  ;;  %v6808_v32 = vld [vmem:[#allocation45_spill] sm:$0xff] }
 0x1b8   : > { %6797 = vst [vmem:[#allocation36_spill] sm:$0xff] %v4138_v41  ;;  %v1112_v49 = vpack.c.bf16 %v4138_v41, %v4135_v54  ;;  %v6804_v41 = vld [vmem:[#allocation48_spill] sm:$0xff]  ;;  %v6814_v33 = vld [vmem:[#allocation47_spill] sm:$0xff] }
 0x1b9   : > { %v687_v48 = vpop.f32.mrb[36].mxu0  ;;  %1157 = vmatprep.subr.bf16.mxu0 %v1110_v53 }
 0x1ba   : > { %v880_v47 = vpop.f32.mrb[36].mxu1  ;;  %1350 = vmatprep.subr.bf16.mxu1 %v1112_v49  ;;  %v689_v44 = vpop.f32.mrb[37].mxu0  ;;  %1158 = vmatpush1.bf16.msra.mxu0 %v1109_v45  ;;  %v4164_v45 = vadd.f32 %v687_v48, %v6808_v32 }
 0x1bb   : > { %v882_v14 = vpop.f32.mrb[37].mxu1  ;;  %1351 = vmatpush1.bf16.msra.mxu1 %v1111_v27  ;;  %v691_v20 = vpop.f32.mrb[38].mxu0  ;;  %v4155_v40 = vadd.f32 %v689_v44, %v6802_v35  ;;  %v6810_v27 = vld [vmem:[#allocation43_spill] sm:$0xff]  ;;  %v4173_v37 = vadd.f32 %v880_v47, %v6814_v33 }
 0x1bc   : > { %v4152_v55 = vadd.f32 %v691_v20, %v6800_v46  ;;  %v884_v57 = vpop.f32.mrb[38].mxu1  ;;  %v693_v58 = vpop.f32.mrb[39].mxu0  ;;  %6809 = vst [vmem:[#allocation45_spill] sm:$0xff] %v4164_v45  ;;  %v4167_v36 = vadd.f32 %v882_v14, %v6810_v27  ;;  %v6812_v20 = vld [vmem:[#allocation44_spill] sm:$0xff] }
 0x1bd   : > { %6803 = vst [vmem:[#allocation41_spill] sm:$0xff] %v4155_v40  ;;  %v4158_v54 = vadd.f32 %v884_v57, %v6804_v41  ;;  %v4161_v53 = vadd.f32 %v693_v58, %v6806_v8  ;;  %v886_v49 = vpop.f32.mrb[39].mxu1  ;;  %6815 = vst [vmem:[#allocation47_spill] sm:$0xff] %v4173_v37  ;;  %v6816_v58 = vld [vmem:[#allocation54_spill] sm:$0xff] }
 0x1be   : > { %6801 = vst [vmem:[#allocation46_spill] sm:$0xff] %v4152_v55  ;;  %6811 = vst [vmem:[#allocation43_spill] sm:$0xff] %v4167_v36  ;;  %v4170_v46 = vadd.f32 %v886_v49, %v6812_v20  ;;  %v1113_v8 = vpack.c.bf16 %v4152_v55, %v4164_v45  ;;  %v6818_v20 = vld [vmem:[#allocation49_spill] sm:$0xff] }
 0x1bf   : > { %6805 = vst [vmem:[#allocation48_spill] sm:$0xff] %v4158_v54  ;;  %6807 = vst [vmem:[#allocation42_spill] sm:$0xff] %v4161_v53  ;;  %v1114_v41 = vpack.c.bf16 %v4161_v53, %v4155_v40  ;;  %v1115_v32 = vpack.c.bf16 %v4158_v54, %v4173_v37  ;;  %v6822_v37 = vld [vmem:[#allocation50_spill] sm:$0xff]  ;;  %v6824_v53 = vld [vmem:[#allocation53_spill] sm:$0xff] }
 0x1c0   : > { %6813 = vst [vmem:[#allocation44_spill] sm:$0xff] %v4170_v46  ;;  %v1116_v44 = vpack.c.bf16 %v4170_v46, %v4167_v36  ;;  %v6820_v46 = vld [vmem:[#allocation56_spill] sm:$0xff]  ;;  %v6830_v40 = vld [vmem:[#allocation55_spill] sm:$0xff] }
 0x1c1   : > { %v697_v48 = vpop.f32.mrb[40].mxu0  ;;  %1159 = vmatprep.subr.bf16.mxu0 %v1114_v41 }
 0x1c2   : > { %v890_v14 = vpop.f32.mrb[40].mxu1  ;;  %1352 = vmatprep.subr.bf16.mxu1 %v1116_v44  ;;  %v699_v57 = vpop.f32.mrb[41].mxu0  ;;  %1160 = vmatpush1.bf16.msra.mxu0 %v1113_v8  ;;  %v4196_v8 = vadd.f32 %v697_v48, %v6824_v53 }
 0x1c3   : > { %v892_v33 = vpop.f32.mrb[41].mxu1  ;;  %1353 = vmatpush1.bf16.msra.mxu1 %v1115_v32  ;;  %v701_v47 = vpop.f32.mrb[42].mxu0  ;;  %v4187_v45 = vadd.f32 %v699_v57, %v6818_v20  ;;  %v6826_v32 = vld [vmem:[#allocation51_spill] sm:$0xff]  ;;  %v4205_v55 = vadd.f32 %v890_v14, %v6830_v40 }
 0x1c4   : > { %v4184_v35 = vadd.f32 %v701_v47, %v6816_v58  ;;  %v894_v49 = vpop.f32.mrb[42].mxu1  ;;  %v703_v27 = vpop.f32.mrb[43].mxu0  ;;  %6825 = vst [vmem:[#allocation53_spill] sm:$0xff] %v4196_v8  ;;  %v4199_v54 = vadd.f32 %v892_v33, %v6826_v32  ;;  %v6828_v47 = vld [vmem:[#allocation52_spill] sm:$0xff] }
 0x1c5   : > { %6819 = vst [vmem:[#allocation49_spill] sm:$0xff] %v4187_v45  ;;  %v4190_v36 = vadd.f32 %v894_v49, %v6820_v46  ;;  %v4193_v41 = vadd.f32 %v703_v27, %v6822_v37  ;;  %v896_v44 = vpop.f32.mrb[43].mxu1  ;;  %6831 = vst [vmem:[#allocation55_spill] sm:$0xff] %v4205_v55  ;;  %v6832_v27 = vld [vmem:[#allocation62_spill] sm:$0xff] }
 0x1c6   : > { %6817 = vst [vmem:[#allocation54_spill] sm:$0xff] %v4184_v35  ;;  %6827 = vst [vmem:[#allocation51_spill] sm:$0xff] %v4199_v54  ;;  %v4202_v58 = vadd.f32 %v896_v44, %v6828_v47  ;;  %v1117_v37 = vpack.c.bf16 %v4184_v35, %v4196_v8  ;;  %v6834_v47 = vld [vmem:[#allocation57_spill] sm:$0xff] }
 0x1c7   : > { %6821 = vst [vmem:[#allocation56_spill] sm:$0xff] %v4190_v36  ;;  %6823 = vst [vmem:[#allocation50_spill] sm:$0xff] %v4193_v41  ;;  %v1118_v46 = vpack.c.bf16 %v4193_v41, %v4187_v45  ;;  %v1119_v53 = vpack.c.bf16 %v4190_v36, %v4205_v55  ;;  %v6837_v55 = vld [vmem:[#allocation58_spill] sm:$0xff]  ;;  %v6845_v36 = vld [vmem:[#allocation63_spill] sm:$0xff] }
 0x1c8   : > { %6829 = vst [vmem:[#allocation52_spill] sm:$0xff] %v4202_v58  ;;  %v1120_v57 = vpack.c.bf16 %v4202_v58, %v4199_v54  ;;  %v6839_v54 = vld [vmem:[#allocation61_spill] sm:$0xff] }
 0x1c9   : > { %v707_v48 = vpop.f32.mrb[44].mxu0  ;;  %1161 = vmatprep.subr.bf16.mxu0 %v1118_v46 }
 0x1ca   : > { %v900_v33 = vpop.f32.mrb[44].mxu1  ;;  %1354 = vmatprep.subr.bf16.mxu1 %v1120_v57  ;;  %v709_v49 = vpop.f32.mrb[45].mxu0  ;;  %1162 = vmatpush1.bf16.msra.mxu0 %v1117_v37  ;;  %v4228_v37 = vadd.f32 %v707_v48, %v6839_v54 }
 0x1cb   : > { %v902_v40 = vpop.f32.mrb[45].mxu1  ;;  %1355 = vmatpush1.bf16.msra.mxu1 %v1119_v53  ;;  %v711_v14 = vpop.f32.mrb[46].mxu0  ;;  %v4219_v8 = vadd.f32 %v709_v49, %v6834_v47  ;;  %v6841_v53 = vld [vmem:[#allocation59_spill] sm:$0xff]  ;;  %v4237_v45 = vadd.f32 %v900_v33, %v6845_v36 }
 0x1cc   : > { %v4216_v20 = vadd.f32 %v711_v14, %v6832_v27  ;;  %v904_v44 = vpop.f32.mrb[46].mxu1  ;;  %v713_v32 = vpop.f32.mrb[47].mxu0  ;;  %6840 = vst [vmem:[#allocation61_spill] sm:$0xff] %v4228_v37  ;;  %v4231_v41 = vadd.f32 %v902_v40, %v6841_v53  ;;  %v6843_v14 = vld [vmem:[#allocation60_spill] sm:$0xff] }
 0x1cd   : > { %6835 = vst [vmem:[#allocation57_spill] sm:$0xff] %v4219_v8  ;;  %v4222_v58 = vadd.f32 %v904_v44, %v3597_v38  ;;  %v4225_v46 = vadd.f32 %v713_v32, %v6837_v55  ;;  %v906_v57 = vpop.f32.mrb[47].mxu1  ;;  %6846 = vst [vmem:[#allocation63_spill] sm:$0xff] %v4237_v45  ;;  %v6847_v32 = vld [vmem:[#allocation69_spill] sm:$0xff] }
 0x1ce   : > { %6833 = vst [vmem:[#allocation62_spill] sm:$0xff] %v4216_v20  ;;  %6842 = vst [vmem:[#allocation59_spill] sm:$0xff] %v4231_v41  ;;  %v4234_v27 = vadd.f32 %v906_v57, %v6843_v14  ;;  %v1121_v55 = vpack.c.bf16 %v4216_v20, %v4228_v37  ;;  %v6849_v14 = vld [vmem:[#allocation64_spill] sm:$0xff] }
 0x1cf   : > { %6836 = vst [vmem:[#allocation136_spill] sm:$0xff] %v4222_v58  ;;  %6838 = vst [vmem:[#allocation58_spill] sm:$0xff] %v4225_v46  ;;  %v1122_v38 = vpack.c.bf16 %v4225_v46, %v4219_v8  ;;  %v1123_v54 = vpack.c.bf16 %v4222_v58, %v4237_v45  ;;  %v6852_v45 = vld [vmem:[#allocation65_spill] sm:$0xff]  ;;  %v6860_v58 = vld [vmem:[#allocation70_spill] sm:$0xff] }
 0x1d0   : > { %6844 = vst [vmem:[#allocation60_spill] sm:$0xff] %v4234_v27  ;;  %v1124_v49 = vpack.c.bf16 %v4234_v27, %v4231_v41  ;;  %v6854_v41 = vld [vmem:[#allocation68_spill] sm:$0xff] }
 0x1d1   : > { %v717_v48 = vpop.f32.mrb[48].mxu0  ;;  %1163 = vmatprep.subr.bf16.mxu0 %v1122_v38 }
 0x1d2   : > { %v910_v40 = vpop.f32.mrb[48].mxu1  ;;  %1356 = vmatprep.subr.bf16.mxu1 %v1124_v49  ;;  %v719_v44 = vpop.f32.mrb[49].mxu0  ;;  %1164 = vmatpush1.bf16.msra.mxu0 %v1121_v55  ;;  %v4260_v55 = vadd.f32 %v717_v48, %v6854_v41 }
 0x1d3   : > { %v912_v36 = vpop.f32.mrb[49].mxu1  ;;  %1357 = vmatpush1.bf16.msra.mxu1 %v1123_v54  ;;  %v721_v33 = vpop.f32.mrb[50].mxu0  ;;  %v4251_v37 = vadd.f32 %v719_v44, %v6849_v14  ;;  %v6856_v54 = vld [vmem:[#allocation66_spill] sm:$0xff]  ;;  %v4269_v8 = vadd.f32 %v910_v40, %v6860_v58 }
 0x1d4   : > { %v4248_v47 = vadd.f32 %v721_v33, %v6847_v32  ;;  %v914_v57 = vpop.f32.mrb[50].mxu1  ;;  %v723_v53 = vpop.f32.mrb[51].mxu0  ;;  %6855 = vst [vmem:[#allocation68_spill] sm:$0xff] %v4260_v55  ;;  %v4263_v46 = vadd.f32 %v912_v36, %v6856_v54  ;;  %v6858_v33 = vld [vmem:[#allocation67_spill] sm:$0xff] }
 0x1d5   : > { %6850 = vst [vmem:[#allocation64_spill] sm:$0xff] %v4251_v37  ;;  %v4254_v27 = vadd.f32 %v914_v57, %v3627_v52  ;;  %v4257_v38 = vadd.f32 %v723_v53, %v6852_v45  ;;  %v916_v49 = vpop.f32.mrb[51].mxu1  ;;  %6861 = vst [vmem:[#allocation70_spill] sm:$0xff] %v4269_v8  ;;  %v6862_v53 = vld [vmem:[#allocation76_spill] sm:$0xff] }
 0x1d6   : > { %6848 = vst [vmem:[#allocation69_spill] sm:$0xff] %v4248_v47  ;;  %6857 = vst [vmem:[#allocation66_spill] sm:$0xff] %v4263_v46  ;;  %v4266_v32 = vadd.f32 %v916_v49, %v6858_v33  ;;  %v1125_v45 = vpack.c.bf16 %v4248_v47, %v4260_v55  ;;  %v6864_v33 = vld [vmem:[#allocation71_spill] sm:$0xff] }
 0x1d7   : > { %6851 = vst [vmem:[#allocation137_spill] sm:$0xff] %v4254_v27  ;;  %6853 = vst [vmem:[#allocation65_spill] sm:$0xff] %v4257_v38  ;;  %v1126_v52 = vpack.c.bf16 %v4257_v38, %v4251_v37  ;;  %v1127_v41 = vpack.c.bf16 %v4254_v27, %v4269_v8  ;;  %v6868_v8 = vld [vmem:[#allocation72_spill] sm:$0xff]  ;;  %v6870_v38 = vld [vmem:[#allocation75_spill] sm:$0xff] }
 0x1d8   : > { %6859 = vst [vmem:[#allocation67_spill] sm:$0xff] %v4266_v32  ;;  %v1128_v44 = vpack.c.bf16 %v4266_v32, %v4263_v46  ;;  %v6866_v32 = vld [vmem:[#allocation78_spill] sm:$0xff]  ;;  %v6876_v37 = vld [vmem:[#allocation77_spill] sm:$0xff] }
 0x1d9   : > { %v727_v48 = vpop.f32.mrb[52].mxu0  ;;  %1165 = vmatprep.subr.bf16.mxu0 %v1126_v52 }
 0x1da   : > { %v920_v36 = vpop.f32.mrb[52].mxu1  ;;  %1358 = vmatprep.subr.bf16.mxu1 %v1128_v44  ;;  %v729_v57 = vpop.f32.mrb[53].mxu0  ;;  %1166 = vmatpush1.bf16.msra.mxu0 %v1125_v45  ;;  %v4292_v45 = vadd.f32 %v727_v48, %v6870_v38 }
 0x1db   : > { %v922_v58 = vpop.f32.mrb[53].mxu1  ;;  %1359 = vmatpush1.bf16.msra.mxu1 %v1127_v41  ;;  %v731_v40 = vpop.f32.mrb[54].mxu0  ;;  %v4283_v55 = vadd.f32 %v729_v57, %v6864_v33  ;;  %v6872_v41 = vld [vmem:[#allocation73_spill] sm:$0xff]  ;;  %v4301_v47 = vadd.f32 %v920_v36, %v6876_v37 }
 0x1dc   : > { %v4280_v14 = vadd.f32 %v731_v40, %v6862_v53  ;;  %v924_v49 = vpop.f32.mrb[54].mxu1  ;;  %v733_v54 = vpop.f32.mrb[55].mxu0  ;;  %6871 = vst [vmem:[#allocation75_spill] sm:$0xff] %v4292_v45  ;;  %v4295_v27 = vadd.f32 %v922_v58, %v6872_v41  ;;  %v6874_v40 = vld [vmem:[#allocation74_spill] sm:$0xff]  ;;  %v6879_v41 = vld [vmem:[#allocation79_spill] sm:$0xff] }
 0x1dd   : > { %6865 = vst [vmem:[#allocation71_spill] sm:$0xff] %v4283_v55  ;;  %v4286_v46 = vadd.f32 %v924_v49, %v6866_v32  ;;  %v4289_v52 = vadd.f32 %v733_v54, %v6868_v8  ;;  %v926_v44 = vpop.f32.mrb[55].mxu1  ;;  %6877 = vst [vmem:[#allocation77_spill] sm:$0xff] %v4301_v47 }
 0x1de   : > { %6863 = vst [vmem:[#allocation76_spill] sm:$0xff] %v4280_v14  ;;  %6873 = vst [vmem:[#allocation73_spill] sm:$0xff] %v4295_v27  ;;  %v4298_v53 = vadd.f32 %v926_v44, %v6874_v40  ;;  %v1129_v8 = vpack.c.bf16 %v4280_v14, %v4292_v45 }
 0x1df   : > { %6867 = vst [vmem:[#allocation78_spill] sm:$0xff] %v4286_v46  ;;  %6869 = vst [vmem:[#allocation72_spill] sm:$0xff] %v4289_v52  ;;  %v1130_v32 = vpack.c.bf16 %v4289_v52, %v4283_v55  ;;  %v1131_v38 = vpack.c.bf16 %v4286_v46, %v4301_v47  ;;  %v6881_v47 = vld [vmem:[#allocation80_spill] sm:$0xff] }
 0x1e0   : > { %6875 = vst [vmem:[#allocation74_spill] sm:$0xff] %v4298_v53  ;;  %v1132_v57 = vpack.c.bf16 %v4298_v53, %v4295_v27 }
 0x1e1   : > { %v737_v48 = vpop.f32.mrb[56].mxu0  ;;  %1167 = vmatprep.subr.bf16.mxu0 %v1130_v32 }
 0x1e2   : > { %v930_v58 = vpop.f32.mrb[56].mxu1  ;;  %1360 = vmatprep.subr.bf16.mxu1 %v1132_v57  ;;  %v739_v49 = vpop.f32.mrb[57].mxu0  ;;  %1168 = vmatpush1.bf16.msra.mxu0 %v1129_v8  ;;  %v4324_v8 = vadd.f32 %v737_v48, %v3682_v25 }
 0x1e3   : > { %v932_v37 = vpop.f32.mrb[57].mxu1  ;;  %1361 = vmatpush1.bf16.msra.mxu1 %v1131_v38  ;;  %v741_v36 = vpop.f32.mrb[58].mxu0  ;;  %v4315_v40 = vadd.f32 %v739_v49, %v6879_v41  ;;  %v6884_v38 = vld [vmem:[#allocation81_spill] sm:$0xff]  ;;  %v4333_v45 = vadd.f32 %v930_v58, %v3690_v59 }
 0x1e4   : > { %v4312_v54 = vadd.f32 %v741_v36, %v3685_v62  ;;  %v934_v33 = vpop.f32.mrb[58].mxu1  ;;  %v743_v44 = vpop.f32.mrb[59].mxu0  ;;  %6883 = vst [vmem:[#allocation139_spill] sm:$0xff] %v4324_v8  ;;  %v4327_v27 = vadd.f32 %v932_v37, %v6884_v38  ;;  %v6886_v62 = vld [vmem:[#allocation82_spill] sm:$0xff] }
 0x1e5   : > { %v4318_v53 = vadd.f32 %v934_v33, %v3697_v63  ;;  %v4321_v32 = vadd.f32 %v743_v44, %v6881_v47  ;;  %v936_v57 = vpop.f32.mrb[59].mxu1  ;;  %6888 = vst [vmem:[#allocation140_spill] sm:$0xff] %v4333_v45 }
 0x1e6   : > { %6878 = vst [vmem:[#allocation138_spill] sm:$0xff] %v4312_v54  ;;  %6885 = vst [vmem:[#allocation81_spill] sm:$0xff] %v4327_v27  ;;  %v4330_v36 = vadd.f32 %v936_v57, %v6886_v62  ;;  %v1133_v47 = vpack.c.bf16 %v4312_v54, %v4324_v8  ;;  %v6889_v62 = vld [vmem:[#allocation88_spill] sm:$0xff] }
 0x1e7   : > { %6880 = vst [vmem:[#allocation79_spill] sm:$0xff] %v4318_v53  ;;  %6882 = vst [vmem:[#allocation80_spill] sm:$0xff] %v4321_v32  ;;  %v1134_v63 = vpack.c.bf16 %v4321_v32, %v4315_v40  ;;  %v1135_v25 = vpack.c.bf16 %v4318_v53, %v4333_v45  ;;  %v6890_v45 = vld [vmem:[#allocation83_spill] sm:$0xff] }
 0x1e8   : > { %6887 = vst [vmem:[#allocation82_spill] sm:$0xff] %v4330_v36  ;;  %v1136_v49 = vpack.c.bf16 %v4330_v36, %v4327_v27  ;;  %v6891_v27 = vld [vmem:[#allocation86_spill] sm:$0xff]  ;;  %v6894_v32 = vld [vmem:[#allocation87_spill] sm:$0xff] }
 0x1e9   : > { %v747_v48 = vpop.f32.mrb[60].mxu0  ;;  %1169 = vmatprep.subr.bf16.mxu0 %v1134_v63 }
 0x1ea   : > { %v940_v37 = vpop.f32.mrb[60].mxu1  ;;  %1362 = vmatprep.subr.bf16.mxu1 %v1136_v49  ;;  %v749_v33 = vpop.f32.mrb[61].mxu0  ;;  %1170 = vmatpush1.bf16.msra.mxu0 %v1133_v47  ;;  %v4356_v47 = vadd.f32 %v747_v48, %v6891_v27  ;;  %v6895_v48 = vld [vmem:[#allocation89_spill] sm:$0xff] }
 0x1eb   : > { %v942_v59 = vpop.f32.mrb[61].mxu1  ;;  %1363 = vmatpush1.bf16.msra.mxu1 %v1135_v25  ;;  %v751_v58 = vpop.f32.mrb[62].mxu0  ;;  %v4347_v38 = vadd.f32 %v749_v33, %v3702_v3  ;;  %v6892_v25 = vld [vmem:[#allocation84_spill] sm:$0xff]  ;;  %v4365_v53 = vadd.f32 %v940_v37, %v6894_v32  ;;  %v6896_v32 = vld [vmem:[#allocation90_spill] sm:$0xff]  ;;  %v6897_v37 = vld [vmem:[#allocation91_spill] sm:$0xff] }
 0x1ec   : > { %v4344_v44 = vadd.f32 %v751_v58, %v3723_v12  ;;  %v944_v41 = vpop.f32.mrb[62].mxu1  ;;  %v753_v57 = vpop.f32.mrb[63].mxu0  ;;  %v4359_v8 = vadd.f32 %v942_v59, %v6892_v25  ;;  %v6893_v12 = vld [vmem:[#allocation85_spill] sm:$0xff]  ;;  %v6898_v59 = vld [vmem:[#allocation92_spill] sm:$0xff] }
 0x1ed   : > { %v4350_v36 = vadd.f32 %v944_v41, %v6889_v62  ;;  %v4353_v63 = vadd.f32 %v753_v57, %v6890_v45  ;;  %v946_v49 = vpop.f32.mrb[63].mxu1  ;;  %v6899_v41 = vld [vmem:[#allocation93_spill] sm:$0xff]  ;;  %v6900_v57 = vld [vmem:[#allocation94_spill] sm:$0xff]  ;;  %v6901_v62 = vld [vmem:[#allocation95_spill] sm:$0xff] }
 0x1ee   : > { %v4362_v58 = vadd.f32 %v946_v49, %v6893_v12  ;;  %v1137_v45 = vpack.c.bf16 %v4344_v44, %v4356_v47  ;;  %v6902_v49 = vld [vmem:[#allocation96_spill] sm:$0xff]  ;;  %v6903_v25 = vld [vmem:[#allocation97_spill] sm:$0xff]  ;;  %v6904_v12 = vld [vmem:[#allocation98_spill] sm:$0xff] }
 0x1ef   : > { %v1138_v3 = vpack.c.bf16 %v4353_v63, %v4347_v38  ;;  %v1139_v27 = vpack.c.bf16 %v4350_v36, %v4365_v53 }
 0x1f0   : > { %v1140_v33 = vpack.c.bf16 %v4362_v58, %v4359_v8 }
 0x1f1   : > { %1171 = vmatprep.subr.bf16.mxu0 %v1138_v3  ;;  %v6905_v3 = vld [vmem:[#allocation99_spill] sm:$0xff] }
 0x1f2   : > { %1364 = vmatprep.subr.bf16.mxu1 %v1140_v33  ;;  %1172 = vmatpush1.bf16.msra.mxu0 %v1137_v45  ;;  %v6906_v45 = vld [vmem:[#allocation100_spill] sm:$0xff]  ;;  %v6907_v33 = vld [vmem:[#allocation101_spill] sm:$0xff] }
 0x1f3   : > { %1365 = vmatpush1.bf16.msra.mxu1 %v1139_v27  ;;  %v6908_v27 = vld [vmem:[#allocation102_spill] sm:$0xff] }
 0x1f5   : > { %1174 = vmatmul.mubr.bf16.vlgmr.msra.gmra.mrb[64].mxu0 %v6895_v48 }
 0x1f6   : > { %1367 = vmatmul.mubr.bf16.vlgmr.msra.gmra.mrb[64].mxu1 %v6895_v48  ;;  %1183 = vmatprep.mubr.bf16.mxu0 %v6896_v32  ;;  %v6909_v48 = vld [vmem:[#allocation103_spill] sm:$0xff] }
 0x1f7   : > { %1376 = vmatprep.mubr.bf16.mxu1 %v6896_v32  ;;  %v6910_v32 = vld [vmem:[#allocation104_spill] sm:$0xff] }
 0x1fd   : > { %1184 = vmatmul.mubr.bf16.gmra.mrb[68].mxu0 %v6897_v37 }
 0x1fe   : > { %1377 = vmatmul.mubr.bf16.gmra.mrb[68].mxu1 %v6897_v37  ;;  %1193 = vmatprep.mubr.bf16.mxu0 %v6898_v59  ;;  %v6911_v37 = vld [vmem:[#allocation105_spill] sm:$0xff] }
 0x1ff   : > { %1386 = vmatprep.mubr.bf16.mxu1 %v6898_v59  ;;  %v6912_v59 = vld [vmem:[#allocation106_spill] sm:$0xff] }
 0x205   : > { %1194 = vmatmul.mubr.bf16.gmra.mrb[72].mxu0 %v6899_v41 }
 0x206   : > { %1387 = vmatmul.mubr.bf16.gmra.mrb[72].mxu1 %v6899_v41  ;;  %1203 = vmatprep.mubr.bf16.mxu0 %v6900_v57  ;;  %v6913_v41 = vld [vmem:[#allocation107_spill] sm:$0xff] }
 0x207   : > { %1396 = vmatprep.mubr.bf16.mxu1 %v6900_v57  ;;  %v6914_v57 = vld [vmem:[#allocation108_spill] sm:$0xff] }
 0x20d   : > { %1204 = vmatmul.mubr.bf16.gmra.mrb[76].mxu0 %v6901_v62 }
 0x20e   : > { %1397 = vmatmul.mubr.bf16.gmra.mrb[76].mxu1 %v6901_v62  ;;  %1213 = vmatprep.mubr.bf16.mxu0 %v6902_v49  ;;  %v6915_v62 = vld [vmem:[#allocation109_spill] sm:$0xff] }
 0x20f   : > { %1406 = vmatprep.mubr.bf16.mxu1 %v6902_v49  ;;  %v6916_v49 = vld [vmem:[#allocation110_spill] sm:$0xff] }
 0x215   : > { %1214 = vmatmul.mubr.bf16.gmra.mrb[80].mxu0 %v6903_v25 }
 0x216   : > { %1407 = vmatmul.mubr.bf16.gmra.mrb[80].mxu1 %v6903_v25  ;;  %1223 = vmatprep.mubr.bf16.mxu0 %v6904_v12  ;;  %v6917_v25 = vld [vmem:[#allocation111_spill] sm:$0xff] }
 0x217   : > { %1416 = vmatprep.mubr.bf16.mxu1 %v6904_v12  ;;  %v6918_v12 = vld [vmem:[#allocation112_spill] sm:$0xff] }
 0x21d   : > { %1224 = vmatmul.mubr.bf16.gmra.mrb[84].mxu0 %v6905_v3 }
 0x21e   : > { %1417 = vmatmul.mubr.bf16.gmra.mrb[84].mxu1 %v6905_v3  ;;  %1233 = vmatprep.mubr.bf16.mxu0 %v6906_v45  ;;  %v6919_v3 = vld [vmem:[#allocation113_spill] sm:$0xff] }
 0x21f   : > { %1426 = vmatprep.mubr.bf16.mxu1 %v6906_v45  ;;  %v6920_v45 = vld [vmem:[#allocation114_spill] sm:$0xff] }
 0x225   : > { %1234 = vmatmul.mubr.bf16.gmra.mrb[88].mxu0 %v6907_v33 }
 0x226   : > { %1427 = vmatmul.mubr.bf16.gmra.mrb[88].mxu1 %v6907_v33  ;;  %1243 = vmatprep.mubr.bf16.mxu0 %v6908_v27  ;;  %v6921_v33 = vld [vmem:[#allocation115_spill] sm:$0xff] }
 0x227   : > { %1436 = vmatprep.mubr.bf16.mxu1 %v6908_v27  ;;  %v6922_v27 = vld [vmem:[#allocation116_spill] sm:$0xff] }
 0x22d   : > { %1244 = vmatmul.mubr.bf16.gmra.mrb[92].mxu0 %v6909_v48 }
 0x22e   : > { %1437 = vmatmul.mubr.bf16.gmra.mrb[92].mxu1 %v6909_v48  ;;  %1253 = vmatprep.mubr.bf16.mxu0 %v6910_v32  ;;  %v6923_v48 = vld [vmem:[#allocation117_spill] sm:$0xff] }
 0x22f   : > { %1446 = vmatprep.mubr.bf16.mxu1 %v6910_v32  ;;  %v6924_v32 = vld [vmem:[#allocation118_spill] sm:$0xff] }
 0x235   : > { %1254 = vmatmul.mubr.bf16.gmra.mrb[96].mxu0 %v6911_v37 }
 0x236   : > { %1447 = vmatmul.mubr.bf16.gmra.mrb[96].mxu1 %v6911_v37  ;;  %1263 = vmatprep.mubr.bf16.mxu0 %v6912_v59  ;;  %v6925_v37 = vld [vmem:[#allocation119_spill] sm:$0xff] }
 0x237   : > { %1456 = vmatprep.mubr.bf16.mxu1 %v6912_v59  ;;  %v2751_v59 = vld [vmem:[#allocation2 + $0x4] ss:$8 sps:$4 sm:$0xff]  }
 0x23d   : > { %1264 = vmatmul.mubr.bf16.gmra.mrb[100].mxu0 %v6913_v41 }
 0x23e   : > { %1457 = vmatmul.mubr.bf16.gmra.mrb[100].mxu1 %v6913_v41  ;;  %1273 = vmatprep.mubr.bf16.mxu0 %v6914_v57 }
 0x23f   : > { %1466 = vmatprep.mubr.bf16.mxu1 %v6914_v57 }
 0x245   : > { %1274 = vmatmul.mubr.bf16.gmra.mrb[104].mxu0 %v6915_v62 }
 0x246   : > { %1467 = vmatmul.mubr.bf16.gmra.mrb[104].mxu1 %v6915_v62  ;;  %1283 = vmatprep.mubr.bf16.mxu0 %v6916_v49 }
 0x247   : > { %1476 = vmatprep.mubr.bf16.mxu1 %v6916_v49 }
 0x24d   : > { %1284 = vmatmul.mubr.bf16.gmra.mrb[108].mxu0 %v6917_v25 }
 0x24e   : > { %1477 = vmatmul.mubr.bf16.gmra.mrb[108].mxu1 %v6917_v25  ;;  %1293 = vmatprep.mubr.bf16.mxu0 %v6918_v12 }
 0x24f   : > { %1486 = vmatprep.mubr.bf16.mxu1 %v6918_v12 }
 0x255   : > { %1294 = vmatmul.mubr.bf16.gmra.mrb[112].mxu0 %v6919_v3 }
 0x256   : > { %1487 = vmatmul.mubr.bf16.gmra.mrb[112].mxu1 %v6919_v3  ;;  %1303 = vmatprep.mubr.bf16.mxu0 %v6920_v45 }
 0x257   : > { %1496 = vmatprep.mubr.bf16.mxu1 %v6920_v45 }
 0x25d   : > { %1304 = vmatmul.mubr.bf16.gmra.mrb[116].mxu0 %v6921_v33 }
 0x25e   : > { %1497 = vmatmul.mubr.bf16.gmra.mrb[116].mxu1 %v6921_v33  ;;  %1313 = vmatprep.mubr.bf16.mxu0 %v6922_v27 }
 0x25f   : > { %1506 = vmatprep.mubr.bf16.mxu1 %v6922_v27 }
 0x265   : > { %1314 = vmatmul.mubr.bf16.gmra.mrb[120].mxu0 %v6923_v48 }
 0x266   : > { %1507 = vmatmul.mubr.bf16.gmra.mrb[120].mxu1 %v6923_v48  ;;  %1323 = vmatprep.mubr.bf16.mxu0 %v6924_v32 }
 0x267   : > { %1516 = vmatprep.mubr.bf16.mxu1 %v6924_v32 }
 0x26d   : > { %1324 = vmatmul.mubr.bf16.gmra.mrb[124].mxu0 %v6925_v37 }
 0x26e   : > { %1517 = vmatmul.mubr.bf16.gmra.mrb[124].mxu1 %v6925_v37  ;;  %1751 = vmatprep.mubr.bf16.mxu0 %v2751_v59 }
 0x26f   : > { %1944 = vmatprep.mubr.bf16.mxu1 %v2751_v59 }
 0x2c8   : > { %v1175_v41 = vpop.f32.mrb[64].mxu0 }
 0x2c9   : > { %v1368_v57 = vpop.f32.mrb[64].mxu1  ;;  %v1177_v62 = vpop.f32.mrb[65].mxu0  ;;  %v4450_v37 = vadd.f32 %v1175_v41, %v3876_v26 }
 0x2ca   : > { %v1370_v49 = vpop.f32.mrb[65].mxu1  ;;  %v1179_v25 = vpop.f32.mrb[66].mxu0  ;;  %v4441_v33 = vadd.f32 %v1177_v62, %v3867_v43 }
 0x2cb   : > { %v4438_v12 = vadd.f32 %v1179_v25, %v3864_v60  ;;  %v1372_v3 = vpop.f32.mrb[66].mxu1  ;;  %v1181_v45 = vpop.f32.mrb[67].mxu0  ;;  %6930 = vst [vmem:[#allocation85_spill] sm:$0xff] %v4450_v37  ;;  %v4453_v59 = vadd.f32 %v1370_v49, %v3879_v39  ;;  %v4459_v60 = vadd.f32 %v1368_v57, %v3885_v30 }
 0x2cc   : > { %6927 = vst [vmem:[#allocation83_spill] sm:$0xff] %v4441_v33  ;;  %v4444_v27 = vadd.f32 %v1372_v3, %v3870_v21  ;;  %v4447_v48 = vadd.f32 %v1181_v45, %v3873_v17  ;;  %v1374_v32 = vpop.f32.mrb[67].mxu1 }
 0x2cd   : > { %6926 = vst [vmem:[#allocation88_spill] sm:$0xff] %v4438_v12  ;;  %6931 = vst [vmem:[#allocation87_spill] sm:$0xff] %v4453_v59  ;;  %v4456_v25 = vadd.f32 %v1374_v32, %v3882_v6  ;;  %v1655_v3 = vpack.c.bf16 %v4438_v12, %v4450_v37 }
 0x2ce   : > { %6928 = vst [vmem:[#allocation86_spill] sm:$0xff] %v4444_v27  ;;  %6929 = vst [vmem:[#allocation84_spill] sm:$0xff] %v4447_v48  ;;  %v1656_v62 = vpack.c.bf16 %v4447_v48, %v4441_v33  ;;  %v1657_v41 = vpack.c.bf16 %v4444_v27, %v4459_v60 }
 0x2cf   : > { %6932 = vst [vmem:[#allocation89_spill] sm:$0xff] %v4456_v25  ;;  %6933 = vst [vmem:[#allocation90_spill] sm:$0xff] %v4459_v60  ;;  %v1658_v45 = vpack.c.bf16 %v4456_v25, %v4453_v59 }
 0x2d0   : > { %v1185_v49 = vpop.f32.mrb[68].mxu0  ;;  %1719 = vmatprep.subr.bf16.mxu0 %v1656_v62 }
 0x2d1   : > { %v1378_v17 = vpop.f32.mrb[68].mxu1  ;;  %1912 = vmatprep.subr.bf16.mxu1 %v1658_v45  ;;  %v1187_v32 = vpop.f32.mrb[69].mxu0  ;;  %1720 = vmatpush1.bf16.msra.mxu0 %v1655_v3  ;;  %v4482_v3 = vadd.f32 %v1185_v49, %v3908_v1 }
 0x2d2   : > { %v1380_v57 = vpop.f32.mrb[69].mxu1  ;;  %1913 = vmatpush1.bf16.msra.mxu1 %v1657_v41  ;;  %v1189_v6 = vpop.f32.mrb[70].mxu0  ;;  %v4473_v37 = vadd.f32 %v1187_v32, %v3899_v16  ;;  %v4491_v27 = vadd.f32 %v1378_v17, %v3917_v61 }
 0x2d3   : > { %v4470_v48 = vadd.f32 %v1189_v6, %v3896_v51  ;;  %v1382_v33 = vpop.f32.mrb[70].mxu1  ;;  %v1191_v12 = vpop.f32.mrb[71].mxu0  ;;  %6938 = vst [vmem:[#allocation95_spill] sm:$0xff] %v4482_v3  ;;  %v4485_v41 = vadd.f32 %v1380_v57, %v3911_v5 }
 0x2d4   : > { %6935 = vst [vmem:[#allocation92_spill] sm:$0xff] %v4473_v37  ;;  %v4476_v25 = vadd.f32 %v1382_v33, %v3902_v34  ;;  %v4479_v62 = vadd.f32 %v1191_v12, %v3905_v0  ;;  %v1384_v45 = vpop.f32.mrb[71].mxu1  ;;  %6941 = vst [vmem:[#allocation98_spill] sm:$0xff] %v4491_v27 }
 0x2d5   : > { %6934 = vst [vmem:[#allocation91_spill] sm:$0xff] %v4470_v48  ;;  %6939 = vst [vmem:[#allocation96_spill] sm:$0xff] %v4485_v41  ;;  %v4488_v6 = vadd.f32 %v1384_v45, %v3914_v19  ;;  %v1659_v12 = vpack.c.bf16 %v4470_v48, %v4482_v3 }
 0x2d6   : > { %6936 = vst [vmem:[#allocation93_spill] sm:$0xff] %v4476_v25  ;;  %6937 = vst [vmem:[#allocation94_spill] sm:$0xff] %v4479_v62  ;;  %v1660_v33 = vpack.c.bf16 %v4479_v62, %v4473_v37  ;;  %v1661_v49 = vpack.c.bf16 %v4476_v25, %v4491_v27 }
 0x2d7   : > { %6940 = vst [vmem:[#allocation97_spill] sm:$0xff] %v4488_v6  ;;  %v1662_v32 = vpack.c.bf16 %v4488_v6, %v4485_v41 }
 0x2d8   : > { %v1195_v57 = vpop.f32.mrb[72].mxu0  ;;  %1721 = vmatprep.subr.bf16.mxu0 %v1660_v33 }
 0x2d9   : > { %v1388_v59 = vpop.f32.mrb[72].mxu1  ;;  %1914 = vmatprep.subr.bf16.mxu1 %v1662_v32  ;;  %v1197_v45 = vpop.f32.mrb[73].mxu0  ;;  %1722 = vmatpush1.bf16.msra.mxu0 %v1659_v12  ;;  %v4514_v12 = vadd.f32 %v1195_v57, %v3940_v13 }
 0x2da   : > { %v1390_v17 = vpop.f32.mrb[73].mxu1  ;;  %1915 = vmatpush1.bf16.msra.mxu1 %v1661_v49  ;;  %v1199_v60 = vpop.f32.mrb[74].mxu0  ;;  %v4505_v3 = vadd.f32 %v1197_v45, %v3931_v56  ;;  %v4523_v25 = vadd.f32 %v1388_v59, %v3949_v50 }
 0x2db   : > { %v4502_v62 = vadd.f32 %v1199_v60, %v3928_v4  ;;  %v1392_v37 = vpop.f32.mrb[74].mxu1  ;;  %v1201_v48 = vpop.f32.mrb[75].mxu0  ;;  %6946 = vst [vmem:[#allocation103_spill] sm:$0xff] %v4514_v12  ;;  %v4517_v49 = vadd.f32 %v1390_v17, %v3943_v18 }
 0x2dc   : > { %6943 = vst [vmem:[#allocation100_spill] sm:$0xff] %v4505_v3  ;;  %v4508_v6 = vadd.f32 %v1392_v37, %v3934_v10  ;;  %v4511_v33 = vadd.f32 %v1201_v48, %v3937_v11  ;;  %v1394_v32 = vpop.f32.mrb[75].mxu1  ;;  %6949 = vst [vmem:[#allocation106_spill] sm:$0xff] %v4523_v25 }
 0x2dd   : > { %6942 = vst [vmem:[#allocation99_spill] sm:$0xff] %v4502_v62  ;;  %6947 = vst [vmem:[#allocation104_spill] sm:$0xff] %v4517_v49  ;;  %v4520_v60 = vadd.f32 %v1394_v32, %v3946_v31  ;;  %v1663_v48 = vpack.c.bf16 %v4502_v62, %v4514_v12 }
 0x2de   : > { %6944 = vst [vmem:[#allocation101_spill] sm:$0xff] %v4508_v6  ;;  %6945 = vst [vmem:[#allocation102_spill] sm:$0xff] %v4511_v33  ;;  %v1664_v37 = vpack.c.bf16 %v4511_v33, %v4505_v3  ;;  %v1665_v57 = vpack.c.bf16 %v4508_v6, %v4523_v25 }
 0x2df   : > { %6948 = vst [vmem:[#allocation105_spill] sm:$0xff] %v4520_v60  ;;  %v1666_v45 = vpack.c.bf16 %v4520_v60, %v4517_v49 }
 0x2e0   : > { %v1205_v17 = vpop.f32.mrb[76].mxu0  ;;  %1723 = vmatprep.subr.bf16.mxu0 %v1664_v37 }
 0x2e1   : > { %v1398_v41 = vpop.f32.mrb[76].mxu1  ;;  %1916 = vmatprep.subr.bf16.mxu1 %v1666_v45  ;;  %v1207_v32 = vpop.f32.mrb[77].mxu0  ;;  %1724 = vmatpush1.bf16.msra.mxu0 %v1663_v48  ;;  %v4546_v48 = vadd.f32 %v1205_v17, %v3972_v24 }
 0x2e2   : > { %v1400_v59 = vpop.f32.mrb[77].mxu1  ;;  %1917 = vmatpush1.bf16.msra.mxu1 %v1665_v57  ;;  %v1209_v27 = vpop.f32.mrb[78].mxu0  ;;  %v4537_v12 = vadd.f32 %v1207_v32, %v3963_v7  ;;  %v4555_v6 = vadd.f32 %v1398_v41, %v3981_v2 }
 0x2e3   : > { %v4534_v33 = vadd.f32 %v1209_v27, %v3960_v15  ;;  %v1402_v3 = vpop.f32.mrb[78].mxu1  ;;  %v1211_v62 = vpop.f32.mrb[79].mxu0  ;;  %6954 = vst [vmem:[#allocation111_spill] sm:$0xff] %v4546_v48  ;;  %v4549_v57 = vadd.f32 %v1400_v59, %v3975_v29 }
 0x2e4   : > { %6951 = vst [vmem:[#allocation108_spill] sm:$0xff] %v4537_v12  ;;  %v4540_v60 = vadd.f32 %v1402_v3, %v3966_v22  ;;  %v4543_v37 = vadd.f32 %v1211_v62, %v3969_v23  ;;  %v1404_v45 = vpop.f32.mrb[79].mxu1  ;;  %6957 = vst [vmem:[#allocation114_spill] sm:$0xff] %v4555_v6  ;;  %v6970_v23 = vld [vmem:[#allocation133_spill] sm:$0xff] }
 0x2e5   : > { %6950 = vst [vmem:[#allocation107_spill] sm:$0xff] %v4534_v33  ;;  %6955 = vst [vmem:[#allocation112_spill] sm:$0xff] %v4549_v57  ;;  %v4552_v27 = vadd.f32 %v1404_v45, %v3978_v42  ;;  %v1667_v62 = vpack.c.bf16 %v4534_v33, %v4546_v48 }
 0x2e6   : > { %6952 = vst [vmem:[#allocation109_spill] sm:$0xff] %v4540_v60  ;;  %6953 = vst [vmem:[#allocation110_spill] sm:$0xff] %v4543_v37  ;;  %v1668_v3 = vpack.c.bf16 %v4543_v37, %v4537_v12  ;;  %v1669_v17 = vpack.c.bf16 %v4540_v60, %v4555_v6  ;;  %v6962_v60 = vld [vmem:[#allocation129_spill] sm:$0xff]  ;;  %v6964_v6 = vld [vmem:[#allocation130_spill] sm:$0xff] }
 0x2e7   : > { %6956 = vst [vmem:[#allocation113_spill] sm:$0xff] %v4552_v27  ;;  %v1670_v32 = vpack.c.bf16 %v4552_v27, %v4549_v57  ;;  %v6960_v27 = vld [vmem:[#allocation128_spill] sm:$0xff] }
 0x2e8   : > { %v1215_v59 = vpop.f32.mrb[80].mxu0  ;;  %1725 = vmatprep.subr.bf16.mxu0 %v1668_v3 }
 0x2e9   : > { %v1408_v49 = vpop.f32.mrb[80].mxu1  ;;  %1918 = vmatprep.subr.bf16.mxu1 %v1670_v32  ;;  %v1217_v45 = vpop.f32.mrb[81].mxu0  ;;  %1726 = vmatpush1.bf16.msra.mxu0 %v1667_v62  ;;  %v4578_v62 = vadd.f32 %v1215_v59, %v6964_v6 }
 0x2ea   : > { %v1410_v41 = vpop.f32.mrb[81].mxu1  ;;  %1919 = vmatpush1.bf16.msra.mxu1 %v1669_v17  ;;  %v1219_v25 = vpop.f32.mrb[82].mxu0  ;;  %v4569_v48 = vadd.f32 %v1217_v45, %v3995_v9  ;;  %v6966_v17 = vld [vmem:[#allocation131_spill] sm:$0xff]  ;;  %v4587_v22 = vadd.f32 %v1408_v49, %v6970_v23 }
 0x2eb   : > { %v4566_v37 = vadd.f32 %v1219_v25, %v3992_v28  ;;  %v1412_v12 = vpop.f32.mrb[82].mxu1  ;;  %v1221_v33 = vpop.f32.mrb[83].mxu0  ;;  %6965 = vst [vmem:[#allocation119_spill] sm:$0xff] %v4578_v62  ;;  %v4581_v42 = vadd.f32 %v1410_v41, %v6966_v17  ;;  %v6968_v25 = vld [vmem:[#allocation132_spill] sm:$0xff]  ;;  %v6986_v23 = vld [vmem:[#allocation15_spill] sm:$0xff] }
 0x2ec   : > { %6959 = vst [vmem:[#allocation116_spill] sm:$0xff] %v4569_v48  ;;  %v4572_v57 = vadd.f32 %v1412_v12, %v6960_v27  ;;  %v4575_v3 = vadd.f32 %v1221_v33, %v6962_v60  ;;  %v1414_v32 = vpop.f32.mrb[83].mxu1  ;;  %6971 = vst [vmem:[#allocation143_spill] sm:$0xff] %v4587_v22  ;;  %v6972_v27 = vld [vmem:[#allocation134_spill] sm:$0xff] }
 0x2ed   : > { %6958 = vst [vmem:[#allocation115_spill] sm:$0xff] %v4566_v37  ;;  %6967 = vst [vmem:[#allocation141_spill] sm:$0xff] %v4581_v42  ;;  %v4584_v28 = vadd.f32 %v1414_v32, %v6968_v25  ;;  %v1671_v33 = vpack.c.bf16 %v4566_v37, %v4578_v62  ;;  %v6974_v62 = vld [vmem:[#allocation135_spill] sm:$0xff] }
 0x2ee   : > { %6961 = vst [vmem:[#allocation117_spill] sm:$0xff] %v4572_v57  ;;  %6963 = vst [vmem:[#allocation118_spill] sm:$0xff] %v4575_v3  ;;  %v1672_v12 = vpack.c.bf16 %v4575_v3, %v4569_v48  ;;  %v1673_v59 = vpack.c.bf16 %v4572_v57, %v4587_v22  ;;  %v6978_v57 = vld [vmem:[#allocation11_spill] sm:$0xff]  ;;  %v6980_v22 = vld [vmem:[#allocation14_spill] sm:$0xff] }
 0x2ef   : > { %6969 = vst [vmem:[#allocation142_spill] sm:$0xff] %v4584_v28  ;;  %v1674_v45 = vpack.c.bf16 %v4584_v28, %v4581_v42  ;;  %v6976_v28 = vld [vmem:[#allocation16_spill] sm:$0xff] }
 0x2f0   : > { %v1225_v41 = vpop.f32.mrb[84].mxu0  ;;  %1727 = vmatprep.subr.bf16.mxu0 %v1672_v12 }
 0x2f1   : > { %v1418_v60 = vpop.f32.mrb[84].mxu1  ;;  %1920 = vmatprep.subr.bf16.mxu1 %v1674_v45  ;;  %v1227_v32 = vpop.f32.mrb[85].mxu0  ;;  %1728 = vmatpush1.bf16.msra.mxu0 %v1671_v33  ;;  %v4610_v33 = vadd.f32 %v1225_v41, %v6980_v22 }
 0x2f2   : > { %v1420_v49 = vpop.f32.mrb[85].mxu1  ;;  %1921 = vmatpush1.bf16.msra.mxu1 %v1673_v59  ;;  %v1229_v25 = vpop.f32.mrb[86].mxu0  ;;  %v4601_v17 = vadd.f32 %v1227_v32, %v6974_v62  ;;  %v6982_v59 = vld [vmem:[#allocation12_spill] sm:$0xff]  ;;  %v4619_v6 = vadd.f32 %v1418_v60, %v6986_v23  ;;  %v7002_v23 = vld [vmem:[#allocation23_spill] sm:$0xff] }
 0x2f3   : > { %v4598_v3 = vadd.f32 %v1229_v25, %v6972_v27  ;;  %v1422_v48 = vpop.f32.mrb[86].mxu1  ;;  %v1231_v37 = vpop.f32.mrb[87].mxu0  ;;  %6981 = vst [vmem:[#allocation148_spill] sm:$0xff] %v4610_v33  ;;  %v4613_v9 = vadd.f32 %v1420_v49, %v6982_v59  ;;  %v6984_v25 = vld [vmem:[#allocation13_spill] sm:$0xff] }
 0x2f4   : > { %6975 = vst [vmem:[#allocation145_spill] sm:$0xff] %v4601_v17  ;;  %v4604_v42 = vadd.f32 %v1422_v48, %v6976_v28  ;;  %v4607_v12 = vadd.f32 %v1231_v37, %v6978_v57  ;;  %v1424_v45 = vpop.f32.mrb[87].mxu1  ;;  %6987 = vst [vmem:[#allocation151_spill] sm:$0xff] %v4619_v6  ;;  %v6988_v28 = vld [vmem:[#allocation22_spill] sm:$0xff] }
 0x2f5   : > { %6973 = vst [vmem:[#allocation144_spill] sm:$0xff] %v4598_v3  ;;  %6983 = vst [vmem:[#allocation149_spill] sm:$0xff] %v4613_v9  ;;  %v4616_v27 = vadd.f32 %v1424_v45, %v6984_v25  ;;  %v1675_v37 = vpack.c.bf16 %v4598_v3, %v4610_v33  ;;  %v6990_v33 = vld [vmem:[#allocation17_spill] sm:$0xff] }
 0x2f6   : > { %6977 = vst [vmem:[#allocation146_spill] sm:$0xff] %v4604_v42  ;;  %6979 = vst [vmem:[#allocation147_spill] sm:$0xff] %v4607_v12  ;;  %v1676_v48 = vpack.c.bf16 %v4607_v12, %v4601_v17  ;;  %v1677_v41 = vpack.c.bf16 %v4604_v42, %v4619_v6  ;;  %v6994_v42 = vld [vmem:[#allocation18_spill] sm:$0xff]  ;;  %v6996_v6 = vld [vmem:[#allocation21_spill] sm:$0xff] }
 0x2f7   : > { %6985 = vst [vmem:[#allocation150_spill] sm:$0xff] %v4616_v27  ;;  %v1678_v32 = vpack.c.bf16 %v4616_v27, %v4613_v9  ;;  %v6992_v27 = vld [vmem:[#allocation24_spill] sm:$0xff] }
 0x2f8   : > { %v1235_v49 = vpop.f32.mrb[88].mxu0  ;;  %1729 = vmatprep.subr.bf16.mxu0 %v1676_v48 }
 0x2f9   : > { %v1428_v57 = vpop.f32.mrb[88].mxu1  ;;  %1922 = vmatprep.subr.bf16.mxu1 %v1678_v32  ;;  %v1237_v45 = vpop.f32.mrb[89].mxu0  ;;  %1730 = vmatpush1.bf16.msra.mxu0 %v1675_v37  ;;  %v4642_v37 = vadd.f32 %v1235_v49, %v6996_v6 }
 0x2fa   : > { %v1430_v60 = vpop.f32.mrb[89].mxu1  ;;  %1923 = vmatpush1.bf16.msra.mxu1 %v1677_v41  ;;  %v1239_v25 = vpop.f32.mrb[90].mxu0  ;;  %v4633_v59 = vadd.f32 %v1237_v45, %v6990_v33  ;;  %v6998_v41 = vld [vmem:[#allocation19_spill] sm:$0xff]  ;;  %v4651_v22 = vadd.f32 %v1428_v57, %v7002_v23 }
 0x2fb   : > { %v4630_v12 = vadd.f32 %v1239_v25, %v6988_v28  ;;  %v1432_v17 = vpop.f32.mrb[90].mxu1  ;;  %v1241_v3 = vpop.f32.mrb[91].mxu0  ;;  %6997 = vst [vmem:[#allocation156_spill] sm:$0xff] %v4642_v37  ;;  %v4645_v62 = vadd.f32 %v1430_v60, %v6998_v41  ;;  %v7000_v25 = vld [vmem:[#allocation20_spill] sm:$0xff]  ;;  %v7018_v23 = vld [vmem:[#allocation31_spill] sm:$0xff] }
 0x2fc   : > { %6991 = vst [vmem:[#allocation153_spill] sm:$0xff] %v4633_v59  ;;  %v4636_v9 = vadd.f32 %v1432_v17, %v6992_v27  ;;  %v4639_v48 = vadd.f32 %v1241_v3, %v6994_v42  ;;  %v1434_v32 = vpop.f32.mrb[91].mxu1  ;;  %7003 = vst [vmem:[#allocation159_spill] sm:$0xff] %v4651_v22  ;;  %v7004_v27 = vld [vmem:[#allocation30_spill] sm:$0xff] }
 0x2fd   : > { %6989 = vst [vmem:[#allocation152_spill] sm:$0xff] %v4630_v12  ;;  %6999 = vst [vmem:[#allocation157_spill] sm:$0xff] %v4645_v62  ;;  %v4648_v28 = vadd.f32 %v1434_v32, %v7000_v25  ;;  %v1679_v3 = vpack.c.bf16 %v4630_v12, %v4642_v37  ;;  %v7006_v37 = vld [vmem:[#allocation25_spill] sm:$0xff] }
 0x2fe   : > { %6993 = vst [vmem:[#allocation154_spill] sm:$0xff] %v4636_v9  ;;  %6995 = vst [vmem:[#allocation155_spill] sm:$0xff] %v4639_v48  ;;  %v1680_v17 = vpack.c.bf16 %v4639_v48, %v4633_v59  ;;  %v1681_v49 = vpack.c.bf16 %v4636_v9, %v4651_v22  ;;  %v7010_v9 = vld [vmem:[#allocation26_spill] sm:$0xff]  ;;  %v7012_v22 = vld [vmem:[#allocation29_spill] sm:$0xff] }
 0x2ff   : > { %7001 = vst [vmem:[#allocation158_spill] sm:$0xff] %v4648_v28  ;;  %v1682_v45 = vpack.c.bf16 %v4648_v28, %v4645_v62  ;;  %v7008_v28 = vld [vmem:[#allocation32_spill] sm:$0xff] }
 0x300   : > { %v1245_v60 = vpop.f32.mrb[92].mxu0  ;;  %1731 = vmatprep.subr.bf16.mxu0 %v1680_v17 }
 0x301   : > { %v1438_v42 = vpop.f32.mrb[92].mxu1  ;;  %1924 = vmatprep.subr.bf16.mxu1 %v1682_v45  ;;  %v1247_v32 = vpop.f32.mrb[93].mxu0  ;;  %1732 = vmatpush1.bf16.msra.mxu0 %v1679_v3  ;;  %v4674_v3 = vadd.f32 %v1245_v60, %v7012_v22 }
 0x302   : > { %v1440_v57 = vpop.f32.mrb[93].mxu1  ;;  %1925 = vmatpush1.bf16.msra.mxu1 %v1681_v49  ;;  %v1249_v25 = vpop.f32.mrb[94].mxu0  ;;  %v4665_v41 = vadd.f32 %v1247_v32, %v7006_v37  ;;  %v7014_v49 = vld [vmem:[#allocation27_spill] sm:$0xff]  ;;  %v4683_v6 = vadd.f32 %v1438_v42, %v7018_v23 }
 0x303   : > { %v4662_v48 = vadd.f32 %v1249_v25, %v7004_v27  ;;  %v1442_v59 = vpop.f32.mrb[94].mxu1  ;;  %v1251_v12 = vpop.f32.mrb[95].mxu0  ;;  %7013 = vst [vmem:[#allocation164_spill] sm:$0xff] %v4674_v3  ;;  %v4677_v33 = vadd.f32 %v1440_v57, %v7014_v49  ;;  %v7016_v25 = vld [vmem:[#allocation28_spill] sm:$0xff]  ;;  %v7034_v23 = vld [vmem:[#allocation39_spill] sm:$0xff] }
 0x304   : > { %7007 = vst [vmem:[#allocation161_spill] sm:$0xff] %v4665_v41  ;;  %v4668_v62 = vadd.f32 %v1442_v59, %v7008_v28  ;;  %v4671_v17 = vadd.f32 %v1251_v12, %v7010_v9  ;;  %v1444_v45 = vpop.f32.mrb[95].mxu1  ;;  %7019 = vst [vmem:[#allocation167_spill] sm:$0xff] %v4683_v6  ;;  %v7020_v28 = vld [vmem:[#allocation38_spill] sm:$0xff] }
 0x305   : > { %7005 = vst [vmem:[#allocation160_spill] sm:$0xff] %v4662_v48  ;;  %7015 = vst [vmem:[#allocation165_spill] sm:$0xff] %v4677_v33  ;;  %v4680_v27 = vadd.f32 %v1444_v45, %v7016_v25  ;;  %v1683_v12 = vpack.c.bf16 %v4662_v48, %v4674_v3  ;;  %v7022_v3 = vld [vmem:[#allocation33_spill] sm:$0xff] }
 0x306   : > { %7009 = vst [vmem:[#allocation162_spill] sm:$0xff] %v4668_v62  ;;  %7011 = vst [vmem:[#allocation163_spill] sm:$0xff] %v4671_v17  ;;  %v1684_v59 = vpack.c.bf16 %v4671_v17, %v4665_v41  ;;  %v1685_v60 = vpack.c.bf16 %v4668_v62, %v4683_v6  ;;  %v7026_v62 = vld [vmem:[#allocation34_spill] sm:$0xff]  ;;  %v7028_v6 = vld [vmem:[#allocation37_spill] sm:$0xff] }
 0x307   : > { %7017 = vst [vmem:[#allocation166_spill] sm:$0xff] %v4680_v27  ;;  %v1686_v32 = vpack.c.bf16 %v4680_v27, %v4677_v33  ;;  %v7024_v27 = vld [vmem:[#allocation40_spill] sm:$0xff] }
 0x308   : > { %v1255_v57 = vpop.f32.mrb[96].mxu0  ;;  %1733 = vmatprep.subr.bf16.mxu0 %v1684_v59 }
 0x309   : > { %v1448_v9 = vpop.f32.mrb[96].mxu1  ;;  %1926 = vmatprep.subr.bf16.mxu1 %v1686_v32  ;;  %v1257_v45 = vpop.f32.mrb[97].mxu0  ;;  %1734 = vmatpush1.bf16.msra.mxu0 %v1683_v12  ;;  %v4706_v12 = vadd.f32 %v1255_v57, %v7028_v6 }
 0x30a   : > { %v1450_v42 = vpop.f32.mrb[97].mxu1  ;;  %1927 = vmatpush1.bf16.msra.mxu1 %v1685_v60  ;;  %v1259_v25 = vpop.f32.mrb[98].mxu0  ;;  %v4697_v49 = vadd.f32 %v1257_v45, %v7022_v3  ;;  %v7030_v60 = vld [vmem:[#allocation35_spill] sm:$0xff]  ;;  %v4715_v22 = vadd.f32 %v1448_v9, %v7034_v23 }
 0x30b   : > { %v4694_v17 = vadd.f32 %v1259_v25, %v7020_v28  ;;  %v1452_v41 = vpop.f32.mrb[98].mxu1  ;;  %v1261_v48 = vpop.f32.mrb[99].mxu0  ;;  %7029 = vst [vmem:[#allocation172_spill] sm:$0xff] %v4706_v12  ;;  %v4709_v37 = vadd.f32 %v1450_v42, %v7030_v60  ;;  %v7032_v25 = vld [vmem:[#allocation36_spill] sm:$0xff]  ;;  %v7050_v23 = vld [vmem:[#allocation47_spill] sm:$0xff] }
 0x30c   : > { %7023 = vst [vmem:[#allocation169_spill] sm:$0xff] %v4697_v49  ;;  %v4700_v33 = vadd.f32 %v1452_v41, %v7024_v27  ;;  %v4703_v59 = vadd.f32 %v1261_v48, %v7026_v62  ;;  %v1454_v32 = vpop.f32.mrb[99].mxu1  ;;  %7035 = vst [vmem:[#allocation175_spill] sm:$0xff] %v4715_v22  ;;  %v7036_v27 = vld [vmem:[#allocation46_spill] sm:$0xff] }
 0x30d   : > { %7021 = vst [vmem:[#allocation168_spill] sm:$0xff] %v4694_v17  ;;  %7031 = vst [vmem:[#allocation173_spill] sm:$0xff] %v4709_v37  ;;  %v4712_v28 = vadd.f32 %v1454_v32, %v7032_v25  ;;  %v1687_v48 = vpack.c.bf16 %v4694_v17, %v4706_v12  ;;  %v7038_v12 = vld [vmem:[#allocation41_spill] sm:$0xff] }
 0x30e   : > { %7025 = vst [vmem:[#allocation170_spill] sm:$0xff] %v4700_v33  ;;  %7027 = vst [vmem:[#allocation171_spill] sm:$0xff] %v4703_v59  ;;  %v1688_v41 = vpack.c.bf16 %v4703_v59, %v4697_v49  ;;  %v1689_v57 = vpack.c.bf16 %v4700_v33, %v4715_v22  ;;  %v7042_v33 = vld [vmem:[#allocation42_spill] sm:$0xff]  ;;  %v7044_v22 = vld [vmem:[#allocation45_spill] sm:$0xff] }
 0x30f   : > { %7033 = vst [vmem:[#allocation174_spill] sm:$0xff] %v4712_v28  ;;  %v1690_v45 = vpack.c.bf16 %v4712_v28, %v4709_v37  ;;  %v7040_v28 = vld [vmem:[#allocation48_spill] sm:$0xff] }
 0x310   : > { %v1265_v42 = vpop.f32.mrb[100].mxu0  ;;  %1735 = vmatprep.subr.bf16.mxu0 %v1688_v41 }
 0x311   : > { %v1458_v62 = vpop.f32.mrb[100].mxu1  ;;  %1928 = vmatprep.subr.bf16.mxu1 %v1690_v45  ;;  %v1267_v32 = vpop.f32.mrb[101].mxu0  ;;  %1736 = vmatpush1.bf16.msra.mxu0 %v1687_v48  ;;  %v4738_v48 = vadd.f32 %v1265_v42, %v7044_v22 }
 0x312   : > { %v1460_v9 = vpop.f32.mrb[101].mxu1  ;;  %1929 = vmatpush1.bf16.msra.mxu1 %v1689_v57  ;;  %v1269_v25 = vpop.f32.mrb[102].mxu0  ;;  %v4729_v60 = vadd.f32 %v1267_v32, %v7038_v12  ;;  %v7046_v57 = vld [vmem:[#allocation43_spill] sm:$0xff]  ;;  %v4747_v6 = vadd.f32 %v1458_v62, %v7050_v23 }
 0x313   : > { %v4726_v59 = vadd.f32 %v1269_v25, %v7036_v27  ;;  %v1462_v49 = vpop.f32.mrb[102].mxu1  ;;  %v1271_v17 = vpop.f32.mrb[103].mxu0  ;;  %7045 = vst [vmem:[#allocation45_spill] sm:$0xff] %v4738_v48  ;;  %v4741_v3 = vadd.f32 %v1460_v9, %v7046_v57  ;;  %v7048_v25 = vld [vmem:[#allocation44_spill] sm:$0xff]  ;;  %v7065_v12 = vld [vmem:[#allocation55_spill] sm:$0xff] }
 0x314   : > { %7039 = vst [vmem:[#allocation177_spill] sm:$0xff] %v4729_v60  ;;  %v4732_v37 = vadd.f32 %v1462_v49, %v7040_v28  ;;  %v4735_v41 = vadd.f32 %v1271_v17, %v7042_v33  ;;  %v1464_v45 = vpop.f32.mrb[103].mxu1  ;;  %7051 = vst [vmem:[#allocation182_spill] sm:$0xff] %v4747_v6 }
 0x315   : > { %7037 = vst [vmem:[#allocation176_spill] sm:$0xff] %v4726_v59  ;;  %7047 = vst [vmem:[#allocation180_spill] sm:$0xff] %v4741_v3  ;;  %v4744_v27 = vadd.f32 %v1464_v45, %v7048_v25  ;;  %v1691_v17 = vpack.c.bf16 %v4726_v59, %v4738_v48  ;;  %v7053_v48 = vld [vmem:[#allocation49_spill] sm:$0xff] }
 0x316   : > { %7041 = vst [vmem:[#allocation178_spill] sm:$0xff] %v4732_v37  ;;  %7043 = vst [vmem:[#allocation179_spill] sm:$0xff] %v4735_v41  ;;  %v1692_v49 = vpack.c.bf16 %v4735_v41, %v4729_v60  ;;  %v1693_v42 = vpack.c.bf16 %v4732_v37, %v4747_v6  ;;  %v7057_v37 = vld [vmem:[#allocation50_spill] sm:$0xff]  ;;  %v7059_v6 = vld [vmem:[#allocation53_spill] sm:$0xff] }
 0x317   : > { %7049 = vst [vmem:[#allocation181_spill] sm:$0xff] %v4744_v27  ;;  %v1694_v32 = vpack.c.bf16 %v4744_v27, %v4741_v3  ;;  %v7055_v27 = vld [vmem:[#allocation56_spill] sm:$0xff] }
 0x318   : > { %v1275_v9 = vpop.f32.mrb[104].mxu0  ;;  %1737 = vmatprep.subr.bf16.mxu0 %v1692_v49 }
 0x319   : > { %v1468_v33 = vpop.f32.mrb[104].mxu1  ;;  %1930 = vmatprep.subr.bf16.mxu1 %v1694_v32  ;;  %v1277_v45 = vpop.f32.mrb[105].mxu0  ;;  %1738 = vmatpush1.bf16.msra.mxu0 %v1691_v17  ;;  %v4770_v17 = vadd.f32 %v1275_v9, %v7059_v6 }
 0x31a   : > { %v1470_v62 = vpop.f32.mrb[105].mxu1  ;;  %1931 = vmatpush1.bf16.msra.mxu1 %v1693_v42  ;;  %v1279_v25 = vpop.f32.mrb[106].mxu0  ;;  %v4761_v28 = vadd.f32 %v1277_v45, %v7053_v48  ;;  %v7061_v42 = vld [vmem:[#allocation51_spill] sm:$0xff]  ;;  %v4779_v23 = vadd.f32 %v1468_v33, %v7065_v12 }
 0x31b   : > { %v4758_v41 = vadd.f32 %v1279_v25, %v4184_v35  ;;  %v1472_v60 = vpop.f32.mrb[106].mxu1  ;;  %v1281_v59 = vpop.f32.mrb[107].mxu0  ;;  %7060 = vst [vmem:[#allocation53_spill] sm:$0xff] %v4770_v17  ;;  %v4773_v57 = vadd.f32 %v1470_v62, %v7061_v42  ;;  %v7063_v25 = vld [vmem:[#allocation52_spill] sm:$0xff]  ;;  %v7080_v48 = vld [vmem:[#allocation63_spill] sm:$0xff] }
 0x31c   : > { %7054 = vst [vmem:[#allocation184_spill] sm:$0xff] %v4761_v28  ;;  %v4764_v3 = vadd.f32 %v1472_v60, %v7055_v27  ;;  %v4767_v49 = vadd.f32 %v1281_v59, %v7057_v37  ;;  %v1474_v32 = vpop.f32.mrb[107].mxu1  ;;  %7066 = vst [vmem:[#allocation189_spill] sm:$0xff] %v4779_v23 }
 0x31d   : > { %7052 = vst [vmem:[#allocation183_spill] sm:$0xff] %v4758_v41  ;;  %7062 = vst [vmem:[#allocation187_spill] sm:$0xff] %v4773_v57  ;;  %v4776_v35 = vadd.f32 %v1474_v32, %v7063_v25  ;;  %v1695_v59 = vpack.c.bf16 %v4758_v41, %v4770_v17  ;;  %v7068_v17 = vld [vmem:[#allocation57_spill] sm:$0xff] }
 0x31e   : > { %7056 = vst [vmem:[#allocation185_spill] sm:$0xff] %v4764_v3  ;;  %7058 = vst [vmem:[#allocation186_spill] sm:$0xff] %v4767_v49  ;;  %v1696_v60 = vpack.c.bf16 %v4767_v49, %v4761_v28  ;;  %v1697_v9 = vpack.c.bf16 %v4764_v3, %v4779_v23  ;;  %v7072_v3 = vld [vmem:[#allocation58_spill] sm:$0xff]  ;;  %v7074_v23 = vld [vmem:[#allocation61_spill] sm:$0xff] }
 0x31f   : > { %7064 = vst [vmem:[#allocation188_spill] sm:$0xff] %v4776_v35  ;;  %v1698_v45 = vpack.c.bf16 %v4776_v35, %v4773_v57  ;;  %v7070_v35 = vld [vmem:[#allocation136_spill] sm:$0xff] }
 0x320   : > { %v1285_v62 = vpop.f32.mrb[108].mxu0  ;;  %1739 = vmatprep.subr.bf16.mxu0 %v1696_v60 }
 0x321   : > { %v1478_v37 = vpop.f32.mrb[108].mxu1  ;;  %1932 = vmatprep.subr.bf16.mxu1 %v1698_v45  ;;  %v1287_v32 = vpop.f32.mrb[109].mxu0  ;;  %1740 = vmatpush1.bf16.msra.mxu0 %v1695_v59  ;;  %v4802_v59 = vadd.f32 %v1285_v62, %v7074_v23 }
 0x322   : > { %v1480_v33 = vpop.f32.mrb[109].mxu1  ;;  %1933 = vmatpush1.bf16.msra.mxu1 %v1697_v9  ;;  %v1289_v25 = vpop.f32.mrb[110].mxu0  ;;  %v4793_v27 = vadd.f32 %v1287_v32, %v7068_v17  ;;  %v7076_v9 = vld [vmem:[#allocation59_spill] sm:$0xff]  ;;  %v4811_v12 = vadd.f32 %v1478_v37, %v7080_v48  ;;  %v7096_v48 = vld [vmem:[#allocation70_spill] sm:$0xff] }
 0x323   : > { %v4790_v49 = vadd.f32 %v1289_v25, %v4216_v20  ;;  %v1482_v28 = vpop.f32.mrb[110].mxu1  ;;  %v1291_v41 = vpop.f32.mrb[111].mxu0  ;;  %7075 = vst [vmem:[#allocation194_spill] sm:$0xff] %v4802_v59  ;;  %v4805_v42 = vadd.f32 %v1480_v33, %v7076_v9  ;;  %v7078_v25 = vld [vmem:[#allocation60_spill] sm:$0xff] }
 0x324   : > { %7069 = vst [vmem:[#allocation191_spill] sm:$0xff] %v4793_v27  ;;  %v4796_v57 = vadd.f32 %v1482_v28, %v7070_v35  ;;  %v4799_v60 = vadd.f32 %v1291_v41, %v7072_v3  ;;  %v1484_v45 = vpop.f32.mrb[111].mxu1  ;;  %7081 = vst [vmem:[#allocation197_spill] sm:$0xff] %v4811_v12  ;;  %v7082_v35 = vld [vmem:[#allocation69_spill] sm:$0xff] }
 0x325   : > { %7067 = vst [vmem:[#allocation190_spill] sm:$0xff] %v4790_v49  ;;  %7077 = vst [vmem:[#allocation195_spill] sm:$0xff] %v4805_v42  ;;  %v4808_v20 = vadd.f32 %v1484_v45, %v7078_v25  ;;  %v1699_v41 = vpack.c.bf16 %v4790_v49, %v4802_v59  ;;  %v7084_v59 = vld [vmem:[#allocation64_spill] sm:$0xff] }
 0x326   : > { %7071 = vst [vmem:[#allocation192_spill] sm:$0xff] %v4796_v57  ;;  %7073 = vst [vmem:[#allocation193_spill] sm:$0xff] %v4799_v60  ;;  %v1700_v28 = vpack.c.bf16 %v4799_v60, %v4793_v27  ;;  %v1701_v62 = vpack.c.bf16 %v4796_v57, %v4811_v12  ;;  %v7088_v57 = vld [vmem:[#allocation65_spill] sm:$0xff]  ;;  %v7090_v12 = vld [vmem:[#allocation68_spill] sm:$0xff] }
 0x327   : > { %7079 = vst [vmem:[#allocation196_spill] sm:$0xff] %v4808_v20  ;;  %v1702_v32 = vpack.c.bf16 %v4808_v20, %v4805_v42  ;;  %v7086_v20 = vld [vmem:[#allocation137_spill] sm:$0xff] }
 0x328   : > { %v1295_v33 = vpop.f32.mrb[112].mxu0  ;;  %1741 = vmatprep.subr.bf16.mxu0 %v1700_v28 }
 0x329   : > { %v1488_v3 = vpop.f32.mrb[112].mxu1  ;;  %1934 = vmatprep.subr.bf16.mxu1 %v1702_v32  ;;  %v1297_v45 = vpop.f32.mrb[113].mxu0  ;;  %1742 = vmatpush1.bf16.msra.mxu0 %v1699_v41  ;;  %v4834_v41 = vadd.f32 %v1295_v33, %v7090_v12 }
 0x32a   : > { %v1490_v37 = vpop.f32.mrb[113].mxu1  ;;  %1935 = vmatpush1.bf16.msra.mxu1 %v1701_v62  ;;  %v1299_v25 = vpop.f32.mrb[114].mxu0  ;;  %v4825_v9 = vadd.f32 %v1297_v45, %v7084_v59  ;;  %v7092_v62 = vld [vmem:[#allocation66_spill] sm:$0xff]  ;;  %v4843_v23 = vadd.f32 %v1488_v3, %v7096_v48 }
 0x32b   : > { %v4822_v60 = vadd.f32 %v1299_v25, %v7082_v35  ;;  %v1492_v27 = vpop.f32.mrb[114].mxu1  ;;  %v1301_v49 = vpop.f32.mrb[115].mxu0  ;;  %7091 = vst [vmem:[#allocation68_spill] sm:$0xff] %v4834_v41  ;;  %v4837_v17 = vadd.f32 %v1490_v37, %v7092_v62  ;;  %v7094_v25 = vld [vmem:[#allocation67_spill] sm:$0xff] }
 0x32c   : > { %7085 = vst [vmem:[#allocation64_spill] sm:$0xff] %v4825_v9  ;;  %v4828_v42 = vadd.f32 %v1492_v27, %v7086_v20  ;;  %v4831_v28 = vadd.f32 %v1301_v49, %v7088_v57  ;;  %v1494_v32 = vpop.f32.mrb[115].mxu1  ;;  %7097 = vst [vmem:[#allocation70_spill] sm:$0xff] %v4843_v23 }
 0x32d   : > { %7083 = vst [vmem:[#allocation198_spill] sm:$0xff] %v4822_v60  ;;  %7093 = vst [vmem:[#allocation66_spill] sm:$0xff] %v4837_v17  ;;  %v4840_v35 = vadd.f32 %v1494_v32, %v7094_v25  ;;  %v1703_v49 = vpack.c.bf16 %v4822_v60, %v4834_v41 }
 0x32e   : > { %7087 = vst [vmem:[#allocation199_spill] sm:$0xff] %v4828_v42  ;;  %7089 = vst [vmem:[#allocation200_spill] sm:$0xff] %v4831_v28  ;;  %v1704_v27 = vpack.c.bf16 %v4831_v28, %v4825_v9  ;;  %v1705_v33 = vpack.c.bf16 %v4828_v42, %v4843_v23  ;;  %v7102_v42 = vld [vmem:[#allocation75_spill] sm:$0xff] }
 0x32f   : > { %7095 = vst [vmem:[#allocation201_spill] sm:$0xff] %v4840_v35  ;;  %v1706_v45 = vpack.c.bf16 %v4840_v35, %v4837_v17 }
 0x330   : > { %v1305_v37 = vpop.f32.mrb[116].mxu0  ;;  %1743 = vmatprep.subr.bf16.mxu0 %v1704_v27 }
 0x331   : > { %v1498_v57 = vpop.f32.mrb[116].mxu1  ;;  %1936 = vmatprep.subr.bf16.mxu1 %v1706_v45  ;;  %v1307_v32 = vpop.f32.mrb[117].mxu0  ;;  %1744 = vmatpush1.bf16.msra.mxu0 %v1703_v49  ;;  %v4866_v49 = vadd.f32 %v1305_v37, %v7102_v42 }
 0x332   : > { %v1500_v3 = vpop.f32.mrb[117].mxu1  ;;  %1937 = vmatpush1.bf16.msra.mxu1 %v1705_v33  ;;  %v1309_v25 = vpop.f32.mrb[118].mxu0  ;;  %v4857_v41 = vadd.f32 %v1307_v32, %v4283_v55  ;;  %v7104_v33 = vld [vmem:[#allocation73_spill] sm:$0xff] }
 0x333   : > { %v4854_v28 = vadd.f32 %v1309_v25, %v4280_v14  ;;  %v1502_v9 = vpop.f32.mrb[118].mxu1  ;;  %v1311_v60 = vpop.f32.mrb[119].mxu0  ;;  %7103 = vst [vmem:[#allocation75_spill] sm:$0xff] %v4866_v49  ;;  %v4869_v17 = vadd.f32 %v1500_v3, %v7104_v33  ;;  %v7106_v25 = vld [vmem:[#allocation74_spill] sm:$0xff]  ;;  %v7108_v14 = vld [vmem:[#allocation77_spill] sm:$0xff]  ;;  %v7122_v33 = vld [vmem:[#allocation140_spill] sm:$0xff] }
 0x334   : > { %7099 = vst [vmem:[#allocation203_spill] sm:$0xff] %v4857_v41  ;;  %v4860_v35 = vadd.f32 %v1502_v9, %v4286_v46  ;;  %v4863_v27 = vadd.f32 %v1311_v60, %v4289_v52  ;;  %v1504_v45 = vpop.f32.mrb[119].mxu1  ;;  %v4875_v20 = vadd.f32 %v1498_v57, %v7108_v14 }
 0x335   : > { %7098 = vst [vmem:[#allocation202_spill] sm:$0xff] %v4854_v28  ;;  %7105 = vst [vmem:[#allocation206_spill] sm:$0xff] %v4869_v17  ;;  %v4872_v23 = vadd.f32 %v1504_v45, %v7106_v25  ;;  %v1707_v60 = vpack.c.bf16 %v4854_v28, %v4866_v49 }
 0x336   : > { %7100 = vst [vmem:[#allocation204_spill] sm:$0xff] %v4860_v35  ;;  %7101 = vst [vmem:[#allocation205_spill] sm:$0xff] %v4863_v27  ;;  %v1708_v9 = vpack.c.bf16 %v4863_v27, %v4857_v41  ;;  %v1709_v37 = vpack.c.bf16 %v4860_v35, %v4875_v20  ;;  %v7114_v35 = vld [vmem:[#allocation80_spill] sm:$0xff] }
 0x337   : > { %7107 = vst [vmem:[#allocation207_spill] sm:$0xff] %v4872_v23  ;;  %7109 = vst [vmem:[#allocation77_spill] sm:$0xff] %v4875_v20  ;;  %v1710_v32 = vpack.c.bf16 %v4872_v23, %v4869_v17  ;;  %v7112_v23 = vld [vmem:[#allocation79_spill] sm:$0xff] }
 0x338   : > { %v1315_v3 = vpop.f32.mrb[120].mxu0  ;;  %1745 = vmatprep.subr.bf16.mxu0 %v1708_v9  ;;  %v7116_v20 = vld [vmem:[#allocation139_spill] sm:$0xff] }
 0x339   : > { %v1508_v52 = vpop.f32.mrb[120].mxu1  ;;  %1938 = vmatprep.subr.bf16.mxu1 %v1710_v32  ;;  %v1317_v45 = vpop.f32.mrb[121].mxu0  ;;  %1746 = vmatpush1.bf16.msra.mxu0 %v1707_v60  ;;  %v4898_v60 = vadd.f32 %v1315_v3, %v7116_v20 }
 0x33a   : > { %v1510_v57 = vpop.f32.mrb[121].mxu1  ;;  %1939 = vmatpush1.bf16.msra.mxu1 %v1709_v37  ;;  %v1319_v25 = vpop.f32.mrb[122].mxu0  ;;  %v4889_v49 = vadd.f32 %v1317_v45, %v4315_v40  ;;  %v7118_v37 = vld [vmem:[#allocation81_spill] sm:$0xff]  ;;  %v4907_v55 = vadd.f32 %v1508_v52, %v7122_v33 }
 0x33b   : > { %v4886_v27 = vadd.f32 %v1319_v25, %v4312_v54  ;;  %v1512_v41 = vpop.f32.mrb[122].mxu1  ;;  %v1321_v28 = vpop.f32.mrb[123].mxu0  ;;  %7117 = vst [vmem:[#allocation139_spill] sm:$0xff] %v4898_v60  ;;  %v4901_v46 = vadd.f32 %v1510_v57, %v7118_v37  ;;  %v7120_v25 = vld [vmem:[#allocation82_spill] sm:$0xff] }
 0x33c   : > { %7111 = vst [vmem:[#allocation209_spill] sm:$0xff] %v4889_v49  ;;  %v4892_v17 = vadd.f32 %v1512_v41, %v7112_v23  ;;  %v4895_v9 = vadd.f32 %v1321_v28, %v7114_v35  ;;  %v1514_v32 = vpop.f32.mrb[123].mxu1  ;;  %7123 = vst [vmem:[#allocation140_spill] sm:$0xff] %v4907_v55 }
 0x33d   : > { %7110 = vst [vmem:[#allocation208_spill] sm:$0xff] %v4886_v27  ;;  %7119 = vst [vmem:[#allocation81_spill] sm:$0xff] %v4901_v46  ;;  %v4904_v54 = vadd.f32 %v1514_v32, %v7120_v25  ;;  %v1711_v28 = vpack.c.bf16 %v4886_v27, %v4898_v60 }
 0x33e   : > { %7113 = vst [vmem:[#allocation79_spill] sm:$0xff] %v4892_v17  ;;  %7115 = vst [vmem:[#allocation210_spill] sm:$0xff] %v4895_v9  ;;  %v1712_v41 = vpack.c.bf16 %v4895_v9, %v4889_v49  ;;  %v1713_v3 = vpack.c.bf16 %v4892_v17, %v4907_v55  ;;  %v7143_v55 = vld [vmem:[#allocation133_spill] sm:$0xff] }
 0x33f   : > { %7121 = vst [vmem:[#allocation211_spill] sm:$0xff] %v4904_v54  ;;  %v1714_v45 = vpack.c.bf16 %v4904_v54, %v4901_v46  ;;  %v7141_v46 = vld [vmem:[#allocation130_spill] sm:$0xff] }
 0x340   : > { %v1325_v57 = vpop.f32.mrb[124].mxu0  ;;  %1747 = vmatprep.subr.bf16.mxu0 %v1712_v41 }
 0x341   : > { %v1518_v35 = vpop.f32.mrb[124].mxu1  ;;  %1940 = vmatprep.subr.bf16.mxu1 %v1714_v45  ;;  %v1327_v32 = vpop.f32.mrb[125].mxu0  ;;  %1748 = vmatpush1.bf16.msra.mxu0 %v1711_v28  ;;  %v4930_v28 = vadd.f32 %v1325_v57, %v4356_v47 }
 0x342   : > { %v1520_v52 = vpop.f32.mrb[125].mxu1  ;;  %1941 = vmatpush1.bf16.msra.mxu1 %v1713_v3  ;;  %v1329_v25 = vpop.f32.mrb[126].mxu0  ;;  %v4921_v60 = vadd.f32 %v1327_v32, %v4347_v38  ;;  %v4939_v17 = vadd.f32 %v1518_v35, %v4365_v53  ;;  %v2753_v35 = vld [vmem:[#allocation2 + $0x14] ss:$8 sps:$4 sm:$0xff]  }
 0x343   : > { %v4918_v9 = vadd.f32 %v1329_v25, %v4344_v44  ;;  %v1522_v49 = vpop.f32.mrb[126].mxu1  ;;  %v1331_v27 = vpop.f32.mrb[127].mxu0  ;;  %7128 = vst [vmem:[#allocation216_spill] sm:$0xff] %v4930_v28  ;;  %v4933_v3 = vadd.f32 %v1520_v52, %v4359_v8  ;;  %v2752_v52 = vld [vmem:[#allocation2] ss:$8 sps:$4 sm:$0xff]  }
 0x344   : > { %7125 = vst [vmem:[#allocation213_spill] sm:$0xff] %v4921_v60  ;;  %v4924_v54 = vadd.f32 %v1522_v49, %v4350_v36  ;;  %v4927_v41 = vadd.f32 %v1331_v27, %v4353_v63  ;;  %v1524_v45 = vpop.f32.mrb[127].mxu1  ;;  %7131 = vst [vmem:[#allocation219_spill] sm:$0xff] %v4939_v17 }
 0x345   : > { %7124 = vst [vmem:[#allocation212_spill] sm:$0xff] %v4918_v9  ;;  %7129 = vst [vmem:[#allocation217_spill] sm:$0xff] %v4933_v3  ;;  %v4936_v25 = vadd.f32 %v1524_v45, %v4362_v58  ;;  %v1715_v27 = vpack.c.bf16 %v4918_v9, %v4930_v28  ;;  %v2754_v45 = vld [vmem:[#allocation2 + $0x10] ss:$8 sps:$4 sm:$0xff]  }
 0x346   : > { %7126 = vst [vmem:[#allocation214_spill] sm:$0xff] %v4924_v54  ;;  %7127 = vst [vmem:[#allocation215_spill] sm:$0xff] %v4927_v41  ;;  %v1716_v49 = vpack.c.bf16 %v4927_v41, %v4921_v60  ;;  %v1717_v57 = vpack.c.bf16 %v4924_v54, %v4939_v17  ;;  %v2755_v41 = vld [vmem:[#allocation2 + $0x24] ss:$8 sps:$4 sm:$0xff]   ;;  %v2757_v54 = vld [vmem:[#allocation2 + $0x34] ss:$8 sps:$4 sm:$0xff]  }
 0x347   : > { %7130 = vst [vmem:[#allocation218_spill] sm:$0xff] %v4936_v25  ;;  %v1718_v32 = vpack.c.bf16 %v4936_v25, %v4933_v3  ;;  %v2756_v25 = vld [vmem:[#allocation2 + $0x20] ss:$8 sps:$4 sm:$0xff]   ;;  %v7133_v9 = vld [vmem:[#allocation121_spill] sm:$0xff]  ;;  %v7134_v3 = vld [vmem:[#allocation122_spill] sm:$0xff] }
 0x348   : > { %1749 = vmatprep.subr.bf16.mxu0 %v1716_v49  ;;  %v2758_v49 = vld [vmem:[#allocation2 + $0x30] ss:$8 sps:$4 sm:$0xff]   ;;  %v7135_v60 = vld [vmem:[#allocation123_spill] sm:$0xff]  ;;  %v7137_v17 = vld [vmem:[#allocation124_spill] sm:$0xff] }
 0x349   : > { %1942 = vmatprep.subr.bf16.mxu1 %v1718_v32  ;;  %1750 = vmatpush1.bf16.msra.mxu0 %v1715_v27  ;;  %v2759_v27 = vld [vmem:[#allocation2 + $0x44] ss:$8 sps:$4 sm:$0xff]   ;;  %v2760_v32 = vld [vmem:[#allocation2 + $0x40] ss:$8 sps:$4 sm:$0xff]   ;;  %v7139_v28 = vld [vmem:[#allocation125_spill] sm:$0xff] }
 0x34a   : > { %1943 = vmatpush1.bf16.msra.mxu1 %v1717_v57  ;;  %v2761_v57 = vld [vmem:[#allocation2 + $0x54] ss:$8 sps:$4 sm:$0xff]  }
 0x34c   : > { %1752 = vmatmul.mubr.bf16.vlgmr.msra.gmra.mrb[128].mxu0 %v2752_v52 }
 0x34d   : > { %1945 = vmatmul.mubr.bf16.vlgmr.msra.gmra.mrb[128].mxu1 %v2752_v52  ;;  %1761 = vmatprep.mubr.bf16.mxu0 %v2753_v35  ;;  %v2762_v52 = vld [vmem:[#allocation2 + $0x50] ss:$8 sps:$4 sm:$0xff]  }
 0x34e   : > { %1954 = vmatprep.mubr.bf16.mxu1 %v2753_v35  ;;  %v2766_v35 = vld [vmem:[#allocation2 + $0x70] ss:$8 sps:$4 sm:$0xff]  }
 0x354   : > { %1762 = vmatmul.mubr.bf16.gmra.mrb[132].mxu0 %v2754_v45 }
 0x355   : > { %1955 = vmatmul.mubr.bf16.gmra.mrb[132].mxu1 %v2754_v45  ;;  %1771 = vmatprep.mubr.bf16.mxu0 %v2755_v41  ;;  %v2767_v45 = vld [vmem:[#allocation2 + $0x84] ss:$8 sps:$4 sm:$0xff]  }
 0x356   : > { %1964 = vmatprep.mubr.bf16.mxu1 %v2755_v41  ;;  %v2763_v41 = vld [vmem:[#allocation2 + $0x64] ss:$8 sps:$4 sm:$0xff]  }
 0x35c   : > { %1772 = vmatmul.mubr.bf16.gmra.mrb[136].mxu0 %v2756_v25 }
 0x35d   : > { %1965 = vmatmul.mubr.bf16.gmra.mrb[136].mxu1 %v2756_v25  ;;  %1781 = vmatprep.mubr.bf16.mxu0 %v2757_v54  ;;  %v2764_v25 = vld [vmem:[#allocation2 + $0x60] ss:$8 sps:$4 sm:$0xff]  }
 0x35e   : > { %1974 = vmatprep.mubr.bf16.mxu1 %v2757_v54  ;;  %v2765_v54 = vld [vmem:[#allocation2 + $0x74] ss:$8 sps:$4 sm:$0xff]  }
 0x364   : > { %1782 = vmatmul.mubr.bf16.gmra.mrb[140].mxu0 %v2758_v49 }
 0x365   : > { %1975 = vmatmul.mubr.bf16.gmra.mrb[140].mxu1 %v2758_v49  ;;  %1791 = vmatprep.mubr.bf16.mxu0 %v2759_v27  ;;  %v2768_v49 = vld [vmem:[#allocation2 + $0x80] ss:$8 sps:$4 sm:$0xff]  }
 0x366   : > { %1984 = vmatprep.mubr.bf16.mxu1 %v2759_v27  ;;  %v2769_v27 = vld [vmem:[#allocation2 + $0x94] ss:$8 sps:$4 sm:$0xff]  }
 0x36c   : > { %1792 = vmatmul.mubr.bf16.gmra.mrb[144].mxu0 %v2760_v32 }
 0x36d   : > { %1985 = vmatmul.mubr.bf16.gmra.mrb[144].mxu1 %v2760_v32  ;;  %1801 = vmatprep.mubr.bf16.mxu0 %v2761_v57  ;;  %v2770_v32 = vld [vmem:[#allocation2 + $0x90] ss:$8 sps:$4 sm:$0xff]  }
 0x36e   : > { %1994 = vmatprep.mubr.bf16.mxu1 %v2761_v57  ;;  %v2771_v57 = vld [vmem:[#allocation2 + $0xa4] ss:$8 sps:$4 sm:$0xff]  }
 0x374   : > { %1802 = vmatmul.mubr.bf16.gmra.mrb[148].mxu0 %v2762_v52 }
 0x375   : > { %1995 = vmatmul.mubr.bf16.gmra.mrb[148].mxu1 %v2762_v52  ;;  %1811 = vmatprep.mubr.bf16.mxu0 %v2763_v41  ;;  %v2772_v52 = vld [vmem:[#allocation2 + $0xa0] ss:$8 sps:$4 sm:$0xff]  }
 0x376   : > { %2004 = vmatprep.mubr.bf16.mxu1 %v2763_v41  ;;  %v2773_v41 = vld [vmem:[#allocation2 + $0xb4] ss:$8 sps:$4 sm:$0xff]  }
 0x37c   : > { %1812 = vmatmul.mubr.bf16.gmra.mrb[152].mxu0 %v2764_v25 }
 0x37d   : > { %2005 = vmatmul.mubr.bf16.gmra.mrb[152].mxu1 %v2764_v25  ;;  %1821 = vmatprep.mubr.bf16.mxu0 %v2765_v54  ;;  %v2774_v25 = vld [vmem:[#allocation2 + $0xb0] ss:$8 sps:$4 sm:$0xff]  }
 0x37e   : > { %2014 = vmatprep.mubr.bf16.mxu1 %v2765_v54  ;;  %v2775_v54 = vld [vmem:[#allocation2 + $0xc4] ss:$8 sps:$4 sm:$0xff]  }
 0x384   : > { %1822 = vmatmul.mubr.bf16.gmra.mrb[156].mxu0 %v2766_v35 }
 0x385   : > { %2015 = vmatmul.mubr.bf16.gmra.mrb[156].mxu1 %v2766_v35  ;;  %1831 = vmatprep.mubr.bf16.mxu0 %v2767_v45  ;;  %v2776_v35 = vld [vmem:[#allocation2 + $0xc0] ss:$8 sps:$4 sm:$0xff]  }
 0x386   : > { %2024 = vmatprep.mubr.bf16.mxu1 %v2767_v45  ;;  %v2777_v45 = vld [vmem:[#allocation2 + $0xd4] ss:$8 sps:$4 sm:$0xff]  }
 0x38c   : > { %1832 = vmatmul.mubr.bf16.gmra.mrb[160].mxu0 %v2768_v49 }
 0x38d   : > { %2025 = vmatmul.mubr.bf16.gmra.mrb[160].mxu1 %v2768_v49  ;;  %1841 = vmatprep.mubr.bf16.mxu0 %v2769_v27  ;;  %v2778_v49 = vld [vmem:[#allocation2 + $0xd0] ss:$8 sps:$4 sm:$0xff]  }
 0x38e   : > { %2034 = vmatprep.mubr.bf16.mxu1 %v2769_v27  ;;  %v2779_v27 = vld [vmem:[#allocation2 + $0xe4] ss:$8 sps:$4 sm:$0xff]  }
 0x394   : > { %1842 = vmatmul.mubr.bf16.gmra.mrb[164].mxu0 %v2770_v32 }
 0x395   : > { %2035 = vmatmul.mubr.bf16.gmra.mrb[164].mxu1 %v2770_v32  ;;  %1851 = vmatprep.mubr.bf16.mxu0 %v2771_v57  ;;  %v2780_v32 = vld [vmem:[#allocation2 + $0xe0] ss:$8 sps:$4 sm:$0xff]  }
 0x396   : > { %2044 = vmatprep.mubr.bf16.mxu1 %v2771_v57  ;;  %v2781_v57 = vld [vmem:[#allocation2 + $0xf4] ss:$8 sps:$4 sm:$0xff]  }
 0x39c   : > { %1852 = vmatmul.mubr.bf16.gmra.mrb[168].mxu0 %v2772_v52 }
 0x39d   : > { %2045 = vmatmul.mubr.bf16.gmra.mrb[168].mxu1 %v2772_v52  ;;  %1861 = vmatprep.mubr.bf16.mxu0 %v2773_v41  ;;  %v2782_v52 = vld [vmem:[#allocation2 + $0xf0] ss:$8 sps:$4 sm:$0xff]  }
 0x39e   : > { %2054 = vmatprep.mubr.bf16.mxu1 %v2773_v41  ;;  %v2783_v41 = vld [vmem:[%s3215_s24] sm:$0xff] }
 0x3a4   : > { %1862 = vmatmul.mubr.bf16.gmra.mrb[172].mxu0 %v2774_v25 }
 0x3a5   : > { %2055 = vmatmul.mubr.bf16.gmra.mrb[172].mxu1 %v2774_v25  ;;  %1871 = vmatprep.mubr.bf16.mxu0 %v2775_v54  ;;  %v4951_v25 = vadd.f32 %v2783_v41, %v3876_v26  ;;  %v2788_v41 = vld [vmem:[%s3215_s24 + $0x30] sm:$0xff] }
 0x3a6   : > { %2064 = vmatprep.mubr.bf16.mxu1 %v2775_v54  ;;  %v2784_v54 = vld [vmem:[%s3215_s24 + $0x10] sm:$0xff] }
 0x3ac   : > { %1872 = vmatmul.mubr.bf16.gmra.mrb[176].mxu0 %v2776_v35 }
 0x3ad   : > { %2065 = vmatmul.mubr.bf16.gmra.mrb[176].mxu1 %v2776_v35  ;;  %1881 = vmatprep.mubr.bf16.mxu0 %v2777_v45  ;;  %v4955_v35 = vadd.f32 %v2784_v54, %v3885_v30  ;;  %v4971_v30 = vadd.f32 %v2788_v41, %v3870_v21  ;;  %v2789_v54 = vld [vmem:[%s3215_s24 + $0x28] sm:$0xff] }
 0x3ae   : > { %2074 = vmatprep.mubr.bf16.mxu1 %v2777_v45  ;;  %v2785_v45 = vld [vmem:[%s3215_s24 + $0x8] sm:$0xff] }
 0x3af   : > { %v2793_v41 = vld [vmem:[%s3215_s24 + $0x48] sm:$0xff] }
 0x3b4   : > { %1882 = vmatmul.mubr.bf16.gmra.mrb[180].mxu0 %v2778_v49 }
 0x3b5   : > { %2075 = vmatmul.mubr.bf16.gmra.mrb[180].mxu1 %v2778_v49  ;;  %1891 = vmatprep.mubr.bf16.mxu0 %v2779_v27  ;;  %v4959_v49 = vadd.f32 %v2785_v45, %v3867_v43  ;;  %v4975_v43 = vadd.f32 %v2789_v54, %v7133_v9  ;;  %v2790_v45 = vld [vmem:[%s3215_s24 + $0x38] sm:$0xff]  ;;  %v4991_v9 = vadd.f32 %v2793_v41, %v3899_v16 }
 0x3b6   : > { %2084 = vmatprep.mubr.bf16.mxu1 %v2779_v27  ;;  %v2786_v27 = vld [vmem:[%s3215_s24 + $0x18] sm:$0xff] }
 0x3b7   : > { %v2794_v54 = vld [vmem:[%s3215_s24 + $0x58] sm:$0xff] }
 0x3b8   : > { %v2798_v41 = vld [vmem:[%s3215_s24 + $0x78] sm:$0xff] }
 0x3bc   : > { %1892 = vmatmul.mubr.bf16.gmra.mrb[184].mxu0 %v2780_v32 }
 0x3bd   : > { %2085 = vmatmul.mubr.bf16.gmra.mrb[184].mxu1 %v2780_v32  ;;  %1901 = vmatprep.mubr.bf16.mxu0 %v2781_v57  ;;  %v4963_v32 = vadd.f32 %v2786_v27, %v3879_v39  ;;  %v4979_v39 = vadd.f32 %v2790_v45, %v7134_v3  ;;  %v2791_v27 = vld [vmem:[%s3215_s24 + $0x40] sm:$0xff]  ;;  %v4995_v3 = vadd.f32 %v2794_v54, %v3911_v5 }
 0x3be   : > { %2094 = vmatprep.mubr.bf16.mxu1 %v2781_v57  ;;  %v2787_v57 = vld [vmem:[%s3215_s24 + $0x20] sm:$0xff]  ;;  %v5011_v5 = vadd.f32 %v2798_v41, %v3914_v19 }
 0x3bf   : > { %v2795_v45 = vld [vmem:[%s3215_s24 + $0x60] sm:$0xff] }
 0x3c0   : > { %v2799_v54 = vld [vmem:[%s3215_s24 + $0x80] sm:$0xff] }
 0x3c1   : > { %v2803_v41 = vld [vmem:[%s3215_s24 + $0xa0] sm:$0xff] }
 0x3c4   : > { %1902 = vmatmul.mubr.bf16.gmra.mrb[188].mxu0 %v2782_v52 }
 0x3c5   : > { %2095 = vmatmul.mubr.bf16.gmra.mrb[188].mxu1 %v2782_v52  ;;  %v7132_v52 = vld [vmem:[#allocation120_spill] sm:$0xff] }
 0x3c6   : > { %v4967_v26 = vadd.f32 %v2787_v57, %v7132_v52  ;;  %v4983_v57 = vadd.f32 %v2791_v27, %v3908_v1  ;;  %v2792_v52 = vld [vmem:[%s3215_s24 + $0x50] sm:$0xff]  ;;  %v4999_v1 = vadd.f32 %v2795_v45, %v3896_v51  ;;  %v5015_v51 = vadd.f32 %v2799_v54, %v3940_v13 }
 0x3c7   : > { %v4987_v21 = vadd.f32 %v2792_v52, %v3917_v61  ;;  %v2796_v27 = vld [vmem:[%s3215_s24 + $0x70] sm:$0xff]  ;;  %v2797_v52 = vld [vmem:[%s3215_s24 + $0x68] sm:$0xff]  ;;  %v5031_v13 = vadd.f32 %v2803_v41, %v3928_v4 }
 0x3c8   : > { %v5003_v61 = vadd.f32 %v2796_v27, %v3902_v34  ;;  %v5007_v16 = vadd.f32 %v2797_v52, %v3905_v0  ;;  %v2800_v45 = vld [vmem:[%s3215_s24 + $0x90] sm:$0xff]  ;;  %v2801_v27 = vld [vmem:[%s3215_s24 + $0x88] sm:$0xff]  ;;  %v2802_v52 = vld [vmem:[%s3215_s24 + $0x98] sm:$0xff] }
 0x3c9   : > { %v5019_v34 = vadd.f32 %v2800_v45, %v3949_v50  ;;  %v5023_v0 = vadd.f32 %v2801_v27, %v3931_v56  ;;  %v5027_v19 = vadd.f32 %v2802_v52, %v3943_v18  ;;  %v2804_v54 = vld [vmem:[%s3215_s24 + $0xb0] sm:$0xff]  ;;  %v2805_v45 = vld [vmem:[%s3215_s24 + $0xa8] sm:$0xff]  ;;  %v2806_v27 = vld [vmem:[%s3215_s24 + $0xb8] sm:$0xff] }
 0x3ca   : > { %v5035_v50 = vadd.f32 %v2804_v54, %v3934_v10  ;;  %v5039_v56 = vadd.f32 %v2805_v45, %v3937_v11  ;;  %v5043_v18 = vadd.f32 %v2806_v27, %v3946_v31  ;;  %v2807_v52 = vld [vmem:[%s3215_s24 + $0xc0] sm:$0xff]  ;;  %v2808_v41 = vld [vmem:[%s3215_s24 + $0xd0] sm:$0xff]  ;;  %v2809_v54 = vld [vmem:[%s3215_s24 + $0xc8] sm:$0xff] }
 0x3cb   : > { %v5047_v4 = vadd.f32 %v2807_v52, %v3972_v24  ;;  %v5051_v10 = vadd.f32 %v2808_v41, %v3981_v2  ;;  %v5055_v11 = vadd.f32 %v2809_v54, %v3963_v7  ;;  %v2810_v45 = vld [vmem:[%s3215_s24 + $0xd8] sm:$0xff]  ;;  %v2811_v27 = vld [vmem:[%s3215_s24 + $0xe0] sm:$0xff]  ;;  %v2812_v52 = vld [vmem:[%s3215_s24 + $0xf0] sm:$0xff] }
 0x3cc   : > { %v5059_v31 = vadd.f32 %v2810_v45, %v3975_v29  ;;  %v5063_v24 = vadd.f32 %v2811_v27, %v3960_v15  ;;  %v5067_v2 = vadd.f32 %v2812_v52, %v7135_v60  ;;  %v2813_v41 = vld [vmem:[%s3215_s24 + $0xe8] sm:$0xff]  ;;  %v2814_v54 = vld [vmem:[%s3215_s24 + $0xf8] sm:$0xff]  ;;  %v2815_v45 = vld [vmem:[%s3215_s24 + $0x100] sm:$0xff] }
 0x3cd   : > { %v5071_v7 = vadd.f32 %v2813_v41, %v7137_v17  ;;  %v5075_v29 = vadd.f32 %v2814_v54, %v7139_v28  ;;  %v5079_v15 = vadd.f32 %v2815_v45, %v7141_v46  ;;  %v2816_v27 = vld [vmem:[%s3215_s24 + $0x110] sm:$0xff]  ;;  %v2817_v52 = vld [vmem:[%s3215_s24 + $0x108] sm:$0xff]  ;;  %v2818_v41 = vld [vmem:[%s3215_s24 + $0x118] sm:$0xff] }
 0x3ce   : > { %7136 = vst [vmem:[#allocation120_spill] sm:$0xff] %v5067_v2  ;;  %v5083_v60 = vadd.f32 %v2816_v27, %v7143_v55  ;;  %v7145_v2 = vld [vmem:[#allocation127_spill] sm:$0xff]  ;;  %v2820_v45 = vld [vmem:[%s3215_s24 + $0x130] sm:$0xff]  ;;  %v2821_v27 = vld [vmem:[%s3215_s24 + $0x128] sm:$0xff] }
 0x3cf   : > { %7138 = vst [vmem:[#allocation121_spill] sm:$0xff] %v5071_v7  ;;  %7140 = vst [vmem:[#allocation122_spill] sm:$0xff] %v5075_v29  ;;  %v5087_v17 = vadd.f32 %v2817_v52, %v7145_v2  ;;  %v7147_v7 = vld [vmem:[#allocation131_spill] sm:$0xff]  ;;  %v7149_v29 = vld [vmem:[#allocation126_spill] sm:$0xff] }
 0x3d0   : > { %7142 = vst [vmem:[#allocation123_spill] sm:$0xff] %v5079_v15  ;;  %7144 = vst [vmem:[#allocation124_spill] sm:$0xff] %v5083_v60  ;;  %v5091_v28 = vadd.f32 %v2818_v41, %v7147_v7  ;;  %v2819_v54 = vld [vmem:[%s3215_s24 + $0x120] sm:$0xff]  ;;  %v7151_v15 = vld [vmem:[#allocation128_spill] sm:$0xff] }
 0x3d1   : > { %7146 = vst [vmem:[#allocation125_spill] sm:$0xff] %v5087_v17  ;;  %v5095_v46 = vadd.f32 %v2819_v54, %v7149_v29  ;;  %v5099_v55 = vadd.f32 %v2820_v45, %v7151_v15  ;;  %v7153_v60 = vld [vmem:[#allocation129_spill] sm:$0xff]  ;;  %v2822_v52 = vld [vmem:[%s3215_s24 + $0x138] sm:$0xff]  ;;  %v7155_v17 = vld [vmem:[#allocation132_spill] sm:$0xff] }
 0x3d2   : > { %7148 = vst [vmem:[#allocation130_spill] sm:$0xff] %v5091_v28  ;;  %v5103_v2 = vadd.f32 %v2821_v27, %v7153_v60  ;;  %v5107_v7 = vadd.f32 %v2822_v52, %v7155_v17  ;;  %v2823_v41 = vld [vmem:[%s3215_s24 + $0x140] sm:$0xff]  ;;  %v7157_v28 = vld [vmem:[#allocation14_spill] sm:$0xff]  ;;  %v2824_v54 = vld [vmem:[%s3215_s24 + $0x150] sm:$0xff] }
 0x3d3   : > { %7150 = vst [vmem:[#allocation133_spill] sm:$0xff] %v5095_v46  ;;  %7152 = vst [vmem:[#allocation127_spill] sm:$0xff] %v5099_v55  ;;  %v5111_v29 = vadd.f32 %v2823_v41, %v7157_v28  ;;  %v7159_v46 = vld [vmem:[#allocation15_spill] sm:$0xff]  ;;  %v2825_v45 = vld [vmem:[%s3215_s24 + $0x148] sm:$0xff] }
 0x3d4   : > { %7154 = vst [vmem:[#allocation131_spill] sm:$0xff] %v5103_v2  ;;  %7156 = vst [vmem:[#allocation126_spill] sm:$0xff] %v5107_v7  ;;  %v5115_v15 = vadd.f32 %v2824_v54, %v7159_v46  ;;  %v7161_v55 = vld [vmem:[#allocation135_spill] sm:$0xff]  ;;  %v2826_v27 = vld [vmem:[%s3215_s24 + $0x158] sm:$0xff] }
 0x3d5   : > { %7158 = vst [vmem:[#allocation128_spill] sm:$0xff] %v5111_v29  ;;  %v5119_v60 = vadd.f32 %v2825_v45, %v7161_v55  ;;  %v7163_v2 = vld [vmem:[#allocation12_spill] sm:$0xff]  ;;  %v2827_v52 = vld [vmem:[%s3215_s24 + $0x160] sm:$0xff]  ;;  %v7165_v7 = vld [vmem:[#allocation134_spill] sm:$0xff] }
 0x3d6   : > { %7160 = vst [vmem:[#allocation129_spill] sm:$0xff] %v5115_v15  ;;  %v5123_v17 = vadd.f32 %v2826_v27, %v7163_v2  ;;  %v5127_v28 = vadd.f32 %v2827_v52, %v7165_v7  ;;  %v2828_v41 = vld [vmem:[%s3215_s24 + $0x170] sm:$0xff]  ;;  %v7167_v29 = vld [vmem:[#allocation16_spill] sm:$0xff]  ;;  %v7169_v15 = vld [vmem:[#allocation11_spill] sm:$0xff] }
 0x3d7   : > { %7162 = vst [vmem:[#allocation132_spill] sm:$0xff] %v5119_v60  ;;  %v5131_v46 = vadd.f32 %v2828_v41, %v7167_v29  ;;  %v2829_v54 = vld [vmem:[%s3215_s24 + $0x168] sm:$0xff]  ;;  %v2830_v45 = vld [vmem:[%s3215_s24 + $0x178] sm:$0xff]  ;;  %v7171_v60 = vld [vmem:[#allocation13_spill] sm:$0xff] }
 0x3d8   : > { %7164 = vst [vmem:[#allocation14_spill] sm:$0xff] %v5123_v17  ;;  %7166 = vst [vmem:[#allocation15_spill] sm:$0xff] %v5127_v28  ;;  %v5135_v55 = vadd.f32 %v2829_v54, %v7169_v15  ;;  %v5139_v2 = vadd.f32 %v2830_v45, %v7171_v60  ;;  %v2831_v27 = vld [vmem:[%s3215_s24 + $0x180] sm:$0xff]  ;;  %v7173_v17 = vld [vmem:[#allocation21_spill] sm:$0xff] }
 0x3d9   : > { %7168 = vst [vmem:[#allocation135_spill] sm:$0xff] %v5131_v46  ;;  %v5143_v7 = vadd.f32 %v2831_v27, %v7173_v17  ;;  %v2832_v52 = vld [vmem:[%s3215_s24 + $0x190] sm:$0xff]  ;;  %v7175_v28 = vld [vmem:[#allocation23_spill] sm:$0xff]  ;;  %v2833_v41 = vld [vmem:[%s3215_s24 + $0x188] sm:$0xff] }
 0x3da   : > { %7170 = vst [vmem:[#allocation12_spill] sm:$0xff] %v5135_v55  ;;  %7172 = vst [vmem:[#allocation134_spill] sm:$0xff] %v5139_v2  ;;  %v5147_v29 = vadd.f32 %v2832_v52, %v7175_v28  ;;  %v7177_v46 = vld [vmem:[#allocation17_spill] sm:$0xff]  ;;  %v2834_v54 = vld [vmem:[%s3215_s24 + $0x198] sm:$0xff] }
 0x3db   : > { %7174 = vst [vmem:[#allocation16_spill] sm:$0xff] %v5143_v7  ;;  %v5151_v15 = vadd.f32 %v2833_v41, %v7177_v46  ;;  %v7179_v55 = vld [vmem:[#allocation19_spill] sm:$0xff]  ;;  %v7181_v2 = vld [vmem:[#allocation22_spill] sm:$0xff]  ;;  %v2836_v27 = vld [vmem:[%s3215_s24 + $0x1b0] sm:$0xff] }
 0x3dc   : > { %7176 = vst [vmem:[#allocation11_spill] sm:$0xff] %v5147_v29  ;;  %v5155_v60 = vadd.f32 %v2834_v54, %v7179_v55  ;;  %v2835_v45 = vld [vmem:[%s3215_s24 + $0x1a0] sm:$0xff]  ;;  %v7183_v7 = vld [vmem:[#allocation24_spill] sm:$0xff]  ;;  %v7185_v29 = vld [vmem:[#allocation18_spill] sm:$0xff] }
 0x3dd   : > { %7178 = vst [vmem:[#allocation13_spill] sm:$0xff] %v5151_v15  ;;  %v5159_v17 = vadd.f32 %v2835_v45, %v7181_v2  ;;  %v5163_v28 = vadd.f32 %v2836_v27, %v7183_v7  ;;  %v2837_v52 = vld [vmem:[%s3215_s24 + $0x1a8] sm:$0xff]  ;;  %v2838_v41 = vld [vmem:[%s3215_s24 + $0x1b8] sm:$0xff]  ;;  %v2839_v54 = vld [vmem:[%s3215_s24 + $0x1c0] sm:$0xff] }
 0x3de   : > { %7180 = vst [vmem:[#allocation21_spill] sm:$0xff] %v5155_v60  ;;  %v5167_v46 = vadd.f32 %v2837_v52, %v7185_v29  ;;  %v7187_v15 = vld [vmem:[#allocation20_spill] sm:$0xff]  ;;  %v7189_v60 = vld [vmem:[#allocation29_spill] sm:$0xff]  ;;  %v2842_v52 = vld [vmem:[%s3215_s24 + $0x1d8] sm:$0xff] }
 0x3df   : > { %7182 = vst [vmem:[#allocation23_spill] sm:$0xff] %v5159_v17  ;;  %7184 = vst [vmem:[#allocation17_spill] sm:$0xff] %v5163_v28  ;;  %v5171_v55 = vadd.f32 %v2838_v41, %v7187_v15  ;;  %v5175_v2 = vadd.f32 %v2839_v54, %v7189_v60  ;;  %v2840_v45 = vld [vmem:[%s3215_s24 + $0x1d0] sm:$0xff]  ;;  %v7191_v17 = vld [vmem:[#allocation31_spill] sm:$0xff] }
 0x3e0   : > { %7186 = vst [vmem:[#allocation19_spill] sm:$0xff] %v5167_v46  ;;  %v5179_v7 = vadd.f32 %v2840_v45, %v7191_v17  ;;  %v2841_v27 = vld [vmem:[%s3215_s24 + $0x1c8] sm:$0xff]  ;;  %v7193_v28 = vld [vmem:[#allocation25_spill] sm:$0xff]  ;;  %v7195_v46 = vld [vmem:[#allocation27_spill] sm:$0xff] }
 0x3e1   : > { %7188 = vst [vmem:[#allocation22_spill] sm:$0xff] %v5171_v55  ;;  %7190 = vst [vmem:[#allocation24_spill] sm:$0xff] %v5175_v2  ;;  %v5183_v29 = vadd.f32 %v2841_v27, %v7193_v28  ;;  %v5187_v15 = vadd.f32 %v2842_v52, %v7195_v46  ;;  %v2843_v41 = vld [vmem:[%s3215_s24 + $0x1e0] sm:$0xff]  ;;  %v7197_v55 = vld [vmem:[#allocation30_spill] sm:$0xff] }
 0x3e2   : > { %7192 = vst [vmem:[#allocation18_spill] sm:$0xff] %v5179_v7  ;;  %v5191_v60 = vadd.f32 %v2843_v41, %v7197_v55  ;;  %v2844_v54 = vld [vmem:[%s3215_s24 + $0x1f0] sm:$0xff]  ;;  %v7199_v2 = vld [vmem:[#allocation32_spill] sm:$0xff]  ;;  %v7201_v7 = vld [vmem:[#allocation26_spill] sm:$0xff] }
 0x3e3   : > { %7194 = vst [vmem:[#allocation20_spill] sm:$0xff] %v5183_v29  ;;  %7196 = vst [vmem:[#allocation29_spill] sm:$0xff] %v5187_v15  ;;  %v5195_v17 = vadd.f32 %v2844_v54, %v7199_v2  ;;  %v2845_v45 = vld [vmem:[%s3215_s24 + $0x1e8] sm:$0xff]  ;;  %v2846_v27 = vld [vmem:[%s3215_s24 + $0x1f8] sm:$0xff] }
 0x3e4   : > { %7198 = vst [vmem:[#allocation31_spill] sm:$0xff] %v5191_v60  ;;  %v5199_v28 = vadd.f32 %v2845_v45, %v7201_v7  ;;  %v7203_v29 = vld [vmem:[#allocation28_spill] sm:$0xff]  ;;  %v2847_v52 = vld [vmem:[%s3215_s24 + $0x200] sm:$0xff]  ;;  %v7205_v15 = vld [vmem:[#allocation37_spill] sm:$0xff] }
 0x3e5   : > { %7200 = vst [vmem:[#allocation25_spill] sm:$0xff] %v5195_v17  ;;  %v5203_v46 = vadd.f32 %v2846_v27, %v7203_v29  ;;  %v5207_v55 = vadd.f32 %v2847_v52, %v7205_v15  ;;  %v2848_v41 = vld [vmem:[%s3215_s24 + $0x210] sm:$0xff]  ;;  %v7207_v60 = vld [vmem:[#allocation39_spill] sm:$0xff]  ;;  %v2849_v54 = vld [vmem:[%s3215_s24 + $0x208] sm:$0xff] }
 0x3e6   : > { %7202 = vst [vmem:[#allocation27_spill] sm:$0xff] %v5199_v28  ;;  %v5211_v2 = vadd.f32 %v2848_v41, %v7207_v60  ;;  %v7209_v17 = vld [vmem:[#allocation33_spill] sm:$0xff]  ;;  %v2850_v45 = vld [vmem:[%s3215_s24 + $0x218] sm:$0xff]  ;;  %v7211_v28 = vld [vmem:[#allocation35_spill] sm:$0xff] }
 0x3e7   : > { %7204 = vst [vmem:[#allocation30_spill] sm:$0xff] %v5203_v46  ;;  %7206 = vst [vmem:[#allocation32_spill] sm:$0xff] %v5207_v55  ;;  %v5215_v7 = vadd.f32 %v2849_v54, %v7209_v17  ;;  %v5219_v29 = vadd.f32 %v2850_v45, %v7211_v28  ;;  %v2851_v27 = vld [vmem:[%s3215_s24 + $0x220] sm:$0xff]  ;;  %v7212_v46 = vld [vmem:[#allocation38_spill] sm:$0xff] }
 0x3e8   : > { %7208 = vst [vmem:[#allocation26_spill] sm:$0xff] %v5211_v2  ;;  %v5223_v15 = vadd.f32 %v2851_v27, %v7212_v46  ;;  %v2852_v52 = vld [vmem:[%s3215_s24 + $0x230] sm:$0xff]  ;;  %v7214_v55 = vld [vmem:[#allocation40_spill] sm:$0xff]  ;;  %v7216_v2 = vld [vmem:[#allocation34_spill] sm:$0xff] }
 0x3e9   : > { %7210 = vst [vmem:[#allocation28_spill] sm:$0xff] %v5215_v7  ;;  %v5227_v60 = vadd.f32 %v2852_v52, %v7214_v55  ;;  %v2853_v41 = vld [vmem:[%s3215_s24 + $0x228] sm:$0xff]  ;;  %v2854_v54 = vld [vmem:[%s3215_s24 + $0x238] sm:$0xff]  ;;  %v2855_v45 = vld [vmem:[%s3215_s24 + $0x240] sm:$0xff] }
 0x3ea   : > { %7213 = vst [vmem:[#allocation37_spill] sm:$0xff] %v5223_v15  ;;  %v5231_v17 = vadd.f32 %v2853_v41, %v7216_v2  ;;  %v7218_v7 = vld [vmem:[#allocation36_spill] sm:$0xff]  ;;  %v5239_v46 = vadd.f32 %v2855_v45, %v7044_v22  ;;  %v2856_v27 = vld [vmem:[%s3215_s24 + $0x250] sm:$0xff]  ;;  %v7221_v15 = vld [vmem:[#allocation47_spill] sm:$0xff] }
 0x3eb   : > { %7215 = vst [vmem:[#allocation39_spill] sm:$0xff] %v5227_v60  ;;  %v5235_v28 = vadd.f32 %v2854_v54, %v7218_v7  ;;  %v5243_v55 = vadd.f32 %v2856_v27, %v7221_v15  ;;  %v2857_v52 = vld [vmem:[%s3215_s24 + $0x248] sm:$0xff]  ;;  %v7223_v60 = vld [vmem:[#allocation41_spill] sm:$0xff]  ;;  %v2858_v41 = vld [vmem:[%s3215_s24 + $0x258] sm:$0xff] }
 0x3ec   : > { %7217 = vst [vmem:[#allocation33_spill] sm:$0xff] %v5231_v17  ;;  %7220 = vst [vmem:[#allocation38_spill] sm:$0xff] %v5239_v46  ;;  %v5247_v2 = vadd.f32 %v2857_v52, %v7223_v60  ;;  %v7225_v17 = vld [vmem:[#allocation43_spill] sm:$0xff]  ;;  %v2860_v45 = vld [vmem:[%s3215_s24 + $0x270] sm:$0xff] }
 0x3ed   : > { %7219 = vst [vmem:[#allocation35_spill] sm:$0xff] %v5235_v28  ;;  %7222 = vst [vmem:[#allocation40_spill] sm:$0xff] %v5243_v55  ;;  %v5251_v7 = vadd.f32 %v2858_v41, %v7225_v17  ;;  %v2859_v54 = vld [vmem:[%s3215_s24 + $0x260] sm:$0xff]  ;;  %v7226_v28 = vld [vmem:[#allocation46_spill] sm:$0xff] }
 0x3ee   : > { %7224 = vst [vmem:[#allocation34_spill] sm:$0xff] %v5247_v2  ;;  %v5255_v22 = vadd.f32 %v2859_v54, %v7226_v28  ;;  %v7228_v46 = vld [vmem:[#allocation48_spill] sm:$0xff]  ;;  %v7230_v55 = vld [vmem:[#allocation42_spill] sm:$0xff]  ;;  %v2863_v41 = vld [vmem:[%s3215_s24 + $0x280] sm:$0xff] }
 0x3ef   : > { %v5259_v15 = vadd.f32 %v2860_v45, %v7228_v46  ;;  %v2861_v27 = vld [vmem:[%s3215_s24 + $0x268] sm:$0xff]  ;;  %v2862_v52 = vld [vmem:[%s3215_s24 + $0x278] sm:$0xff]  ;;  %v5271_v28 = vadd.f32 %v2863_v41, %v7059_v6  ;;  %v2864_v54 = vld [vmem:[%s3215_s24 + $0x290] sm:$0xff] }
 0x3f0   : > { %7227 = vst [vmem:[#allocation36_spill] sm:$0xff] %v5255_v22  ;;  %v5263_v60 = vadd.f32 %v2861_v27, %v7230_v55  ;;  %v7232_v2 = vld [vmem:[#allocation44_spill] sm:$0xff]  ;;  %v7235_v22 = vld [vmem:[#allocation55_spill] sm:$0xff]  ;;  %v2866_v27 = vld [vmem:[%s3215_s24 + $0x298] sm:$0xff] }
 0x3f1   : > { %7229 = vst [vmem:[#allocation47_spill] sm:$0xff] %v5259_v15  ;;  %v5267_v17 = vadd.f32 %v2862_v52, %v7232_v2  ;;  %7234 = vst [vmem:[#allocation46_spill] sm:$0xff] %v5271_v28  ;;  %v5275_v46 = vadd.f32 %v2864_v54, %v7235_v22  ;;  %v2865_v45 = vld [vmem:[%s3215_s24 + $0x288] sm:$0xff]  ;;  %v7237_v15 = vld [vmem:[#allocation49_spill] sm:$0xff] }
 0x3f2   : > { %7231 = vst [vmem:[#allocation41_spill] sm:$0xff] %v5263_v60  ;;  %v5279_v55 = vadd.f32 %v2865_v45, %v7237_v15  ;;  %v7239_v60 = vld [vmem:[#allocation51_spill] sm:$0xff]  ;;  %v2868_v41 = vld [vmem:[%s3215_s24 + $0x2b0] sm:$0xff]  ;;  %v7243_v28 = vld [vmem:[#allocation56_spill] sm:$0xff] }
 0x3f3   : > { %7233 = vst [vmem:[#allocation43_spill] sm:$0xff] %v5267_v17  ;;  %7236 = vst [vmem:[#allocation48_spill] sm:$0xff] %v5275_v46  ;;  %v5283_v2 = vadd.f32 %v2866_v27, %v7239_v60  ;;  %v2867_v52 = vld [vmem:[%s3215_s24 + $0x2a0] sm:$0xff]  ;;  %v7241_v17 = vld [vmem:[#allocation54_spill] sm:$0xff]  ;;  %v5291_v22 = vadd.f32 %v2868_v41, %v7243_v28 }
 0x3f4   : > { %7238 = vst [vmem:[#allocation42_spill] sm:$0xff] %v5279_v55  ;;  %v5287_v6 = vadd.f32 %v2867_v52, %v7241_v17  ;;  %v2869_v54 = vld [vmem:[%s3215_s24 + $0x2a8] sm:$0xff]  ;;  %v7245_v46 = vld [vmem:[#allocation50_spill] sm:$0xff]  ;;  %v2871_v27 = vld [vmem:[%s3215_s24 + $0x2c0] sm:$0xff] }
 0x3f5   : > { %7240 = vst [vmem:[#allocation44_spill] sm:$0xff] %v5283_v2  ;;  %7244 = vst [vmem:[#allocation49_spill] sm:$0xff] %v5291_v22  ;;  %v5295_v15 = vadd.f32 %v2869_v54, %v7245_v46  ;;  %v2870_v45 = vld [vmem:[%s3215_s24 + $0x2b8] sm:$0xff]  ;;  %v7247_v55 = vld [vmem:[#allocation52_spill] sm:$0xff] }
 0x3f6   : > { %7242 = vst [vmem:[#allocation55_spill] sm:$0xff] %v5287_v6  ;;  %v5299_v60 = vadd.f32 %v2870_v45, %v7247_v55  ;;  %v7249_v2 = vld [vmem:[#allocation61_spill] sm:$0xff]  ;;  %v7251_v6 = vld [vmem:[#allocation63_spill] sm:$0xff]  ;;  %v2873_v41 = vld [vmem:[%s3215_s24 + $0x2c8] sm:$0xff] }
 0x3f7   : > { %7246 = vst [vmem:[#allocation51_spill] sm:$0xff] %v5295_v15  ;;  %v5303_v17 = vadd.f32 %v2871_v27, %v7249_v2  ;;  %v2872_v52 = vld [vmem:[%s3215_s24 + $0x2d0] sm:$0xff]  ;;  %v2874_v54 = vld [vmem:[%s3215_s24 + $0x2d8] sm:$0xff]  ;;  %v7255_v15 = vld [vmem:[#allocation59_spill] sm:$0xff] }
 0x3f8   : > { %7248 = vst [vmem:[#allocation54_spill] sm:$0xff] %v5299_v60  ;;  %v5307_v28 = vadd.f32 %v2872_v52, %v7251_v6  ;;  %v7253_v22 = vld [vmem:[#allocation57_spill] sm:$0xff]  ;;  %v5315_v55 = vadd.f32 %v2874_v54, %v7255_v15  ;;  %v2875_v45 = vld [vmem:[%s3215_s24 + $0x2e0] sm:$0xff]  ;;  %v7256_v60 = vld [vmem:[#allocation62_spill] sm:$0xff] }
 0x3f9   : > { %7250 = vst [vmem:[#allocation56_spill] sm:$0xff] %v5303_v17  ;;  %v5311_v46 = vadd.f32 %v2873_v41, %v7253_v22  ;;  %v5319_v2 = vadd.f32 %v2875_v45, %v7256_v60  ;;  %v2876_v27 = vld [vmem:[%s3215_s24 + $0x2f0] sm:$0xff]  ;;  %v7257_v17 = vld [vmem:[#allocation136_spill] sm:$0xff]  ;;  %v2878_v41 = vld [vmem:[%s3215_s24 + $0x2f8] sm:$0xff] }
 0x3fa   : > { %7252 = vst [vmem:[#allocation50_spill] sm:$0xff] %v5307_v28  ;;  %v5323_v6 = vadd.f32 %v2876_v27, %v7257_v17  ;;  %v2877_v52 = vld [vmem:[%s3215_s24 + $0x2e8] sm:$0xff]  ;;  %v7258_v28 = vld [vmem:[#allocation58_spill] sm:$0xff]  ;;  %v2879_v54 = vld [vmem:[%s3215_s24 + $0x300] sm:$0xff] }
 0x3fb   : > { %7254 = vst [vmem:[#allocation52_spill] sm:$0xff] %v5311_v46  ;;  %v5327_v22 = vadd.f32 %v2877_v52, %v7258_v28  ;;  %v7259_v46 = vld [vmem:[#allocation60_spill] sm:$0xff]  ;;  %v5335_v60 = vadd.f32 %v2879_v54, %v7090_v12  ;;  %v2880_v45 = vld [vmem:[%s3215_s24 + $0x310] sm:$0xff]  ;;  %v2882_v52 = vld [vmem:[%s3215_s24 + $0x318] sm:$0xff] }
 0x3fc   : > { %v5331_v15 = vadd.f32 %v2878_v41, %v7259_v46  ;;  %v5339_v17 = vadd.f32 %v2880_v45, %v7096_v48  ;;  %v2881_v27 = vld [vmem:[%s3215_s24 + $0x308] sm:$0xff]  ;;  %v5347_v46 = vadd.f32 %v2882_v52, %v7092_v62  ;;  %v2883_v41 = vld [vmem:[%s3215_s24 + $0x320] sm:$0xff]  ;;  %v2884_v54 = vld [vmem:[%s3215_s24 + $0x330] sm:$0xff] }
 0x3fd   : > { %7261 = vst [vmem:[#allocation63_spill] sm:$0xff] %v5335_v60  ;;  %v5343_v28 = vadd.f32 %v2881_v27, %v7084_v59  ;;  %v7265_v60 = vld [vmem:[#allocation137_spill] sm:$0xff]  ;;  %v2885_v45 = vld [vmem:[%s3215_s24 + $0x328] sm:$0xff]  ;;  %v2886_v27 = vld [vmem:[%s3215_s24 + $0x338] sm:$0xff] }
 0x3fe   : > { %7260 = vst [vmem:[#allocation61_spill] sm:$0xff] %v5331_v15  ;;  %7262 = vst [vmem:[#allocation57_spill] sm:$0xff] %v5339_v17  ;;  %v7264_v15 = vld [vmem:[#allocation69_spill] sm:$0xff]  ;;  %v5355_v48 = vadd.f32 %v2884_v54, %v7265_v60  ;;  %v2887_v52 = vld [vmem:[%s3215_s24 + $0x340] sm:$0xff] }
 0x3ff   : > { %7263 = vst [vmem:[#allocation59_spill] sm:$0xff] %v5343_v28  ;;  %v5351_v12 = vadd.f32 %v2883_v41, %v7264_v15  ;;  %v7267_v17 = vld [vmem:[#allocation65_spill] sm:$0xff]  ;;  %v7269_v28 = vld [vmem:[#allocation67_spill] sm:$0xff]  ;;  %v5367_v15 = vadd.f32 %v2887_v52, %v7102_v42  ;;  %v2889_v54 = vld [vmem:[%s3215_s24 + $0x348] sm:$0xff] }
 0x400   : > { %7266 = vst [vmem:[#allocation62_spill] sm:$0xff] %v5355_v48  ;;  %v5359_v59 = vadd.f32 %v2885_v45, %v7267_v17  ;;  %v5363_v62 = vadd.f32 %v2886_v27, %v7269_v28  ;;  %v2888_v41 = vld [vmem:[%s3215_s24 + $0x350] sm:$0xff]  ;;  %v7273_v48 = vld [vmem:[#allocation71_spill] sm:$0xff]  ;;  %v2890_v45 = vld [vmem:[%s3215_s24 + $0x358] sm:$0xff] }
 0x401   : > { %7271 = vst [vmem:[#allocation60_spill] sm:$0xff] %v5367_v15  ;;  %v5371_v60 = vadd.f32 %v2888_v41, %v7108_v14  ;;  %v5375_v17 = vadd.f32 %v2889_v54, %v7273_v48  ;;  %v2891_v27 = vld [vmem:[%s3215_s24 + $0x360] sm:$0xff]  ;;  %v2892_v52 = vld [vmem:[%s3215_s24 + $0x370] sm:$0xff]  ;;  %v7277_v15 = vld [vmem:[#allocation78_spill] sm:$0xff] }
 0x402   : > { %7268 = vst [vmem:[#allocation136_spill] sm:$0xff] %v5359_v59  ;;  %7270 = vst [vmem:[#allocation58_spill] sm:$0xff] %v5363_v62  ;;  %v7275_v59 = vld [vmem:[#allocation73_spill] sm:$0xff]  ;;  %v7276_v62 = vld [vmem:[#allocation76_spill] sm:$0xff]  ;;  %v5387_v14 = vadd.f32 %v2892_v52, %v7277_v15 }
 0x403   : > { %7272 = vst [vmem:[#allocation69_spill] sm:$0xff] %v5371_v60  ;;  %7274 = vst [vmem:[#allocation137_spill] sm:$0xff] %v5375_v17  ;;  %v5379_v28 = vadd.f32 %v2890_v45, %v7275_v59  ;;  %v5383_v42 = vadd.f32 %v2891_v27, %v7276_v62  ;;  %v2893_v41 = vld [vmem:[%s3215_s24 + $0x368] sm:$0xff]  ;;  %v2894_v54 = vld [vmem:[%s3215_s24 + $0x378] sm:$0xff] }
 0x404   : > { %v7278_v60 = vld [vmem:[#allocation72_spill] sm:$0xff]  ;;  %v7279_v17 = vld [vmem:[#allocation74_spill] sm:$0xff]  ;;  %v2895_v45 = vld [vmem:[%s3215_s24 + $0x380] sm:$0xff] }
 0x405   : > { %v5391_v48 = vadd.f32 %v2893_v41, %v7278_v60  ;;  %v5395_v59 = vadd.f32 %v2894_v54, %v7279_v17  ;;  %v5399_v62 = vadd.f32 %v2895_v45, %v7116_v20  ;;  %v2896_v27 = vld [vmem:[%s3215_s24 + $0x390] sm:$0xff]  ;;  %v2897_v52 = vld [vmem:[%s3215_s24 + $0x388] sm:$0xff]  ;;  %v2898_v41 = vld [vmem:[%s3215_s24 + $0x398] sm:$0xff] }
 0x406   : > { %v5403_v15 = vadd.f32 %v2896_v27, %v7122_v33  ;;  %v5407_v60 = vadd.f32 %v2897_v52, %v4315_v40  ;;  %v5411_v17 = vadd.f32 %v2898_v41, %v7118_v37  ;;  %v2899_v54 = vld [vmem:[%s3215_s24 + $0x3a0] sm:$0xff]  ;;  %v2900_v45 = vld [vmem:[%s3215_s24 + $0x3b0] sm:$0xff]  ;;  %v2901_v27 = vld [vmem:[%s3215_s24 + $0x3a8] sm:$0xff] }
 0x407   : > { %7280 = vst [vmem:[#allocation65_spill] sm:$0xff] %v5395_v59  ;;  %7281 = vst [vmem:[#allocation67_spill] sm:$0xff] %v5399_v62  ;;  %v7285_v59 = vld [vmem:[#allocation138_spill] sm:$0xff]  ;;  %v5419_v33 = vadd.f32 %v2900_v45, %v7112_v23  ;;  %v2903_v41 = vld [vmem:[%s3215_s24 + $0x3c0] sm:$0xff] }
 0x408   : > { %7282 = vst [vmem:[#allocation71_spill] sm:$0xff] %v5403_v15  ;;  %7283 = vst [vmem:[#allocation73_spill] sm:$0xff] %v5407_v60  ;;  %v5415_v20 = vadd.f32 %v2899_v54, %v7285_v59  ;;  %v7288_v15 = vld [vmem:[#allocation80_spill] sm:$0xff]  ;;  %v2902_v52 = vld [vmem:[%s3215_s24 + $0x3b8] sm:$0xff] }
 0x409   : > { %7284 = vst [vmem:[#allocation76_spill] sm:$0xff] %v5411_v17  ;;  %7287 = vst [vmem:[#allocation72_spill] sm:$0xff] %v5419_v33  ;;  %v5423_v40 = vadd.f32 %v2901_v27, %v7288_v15  ;;  %v7290_v60 = vld [vmem:[#allocation82_spill] sm:$0xff]  ;;  %v5431_v17 = vadd.f32 %v2903_v41, %v4356_v47  ;;  %v2904_v59 = vld [vmem:[%s3215_s24 + $0x3d0] sm:$0xff] }
 0x40a   : > { %7286 = vst [vmem:[#allocation78_spill] sm:$0xff] %v5415_v20  ;;  %v5427_v37 = vadd.f32 %v2902_v52, %v7290_v60  ;;  %v5435_v54 = vadd.f32 %v2904_v59, %v4365_v53  ;;  %v2905_v23 = vld [vmem:[%s3215_s24 + $0x3c8] sm:$0xff]  ;;  %v2906_v33 = vld [vmem:[%s3215_s24 + $0x3d8] sm:$0xff]  ;;  %v2907_v27 = vld [vmem:[%s3215_s24 + $0x3e0] sm:$0xff] }
 0x40b   : > { %7289 = vst [vmem:[#allocation74_spill] sm:$0xff] %v5423_v40  ;;  %7292 = vst [vmem:[#allocation80_spill] sm:$0xff] %v5431_v17  ;;  %v5439_v45 = vadd.f32 %v2905_v23, %v4347_v38  ;;  %v5443_v15 = vadd.f32 %v2906_v33, %v4359_v8  ;;  %v5447_v60 = vadd.f32 %v2907_v27, %v4344_v44  ;;  %v2908_v52 = vld [vmem:[%s3215_s24 + $0x3f0] sm:$0xff]  ;;  %v2909_v41 = vld [vmem:[%s3215_s24 + $0x3e8] sm:$0xff] }
 0x40c   : > { %7291 = vst [vmem:[#allocation138_spill] sm:$0xff] %v5427_v37  ;;  %7293 = vst [vmem:[#allocation82_spill] sm:$0xff] %v5435_v54  ;;  %v5451_v47 = vadd.f32 %v2908_v52, %v4350_v36  ;;  %v5455_v53 = vadd.f32 %v2909_v41, %v4353_v63  ;;  %v2910_v59 = vld [vmem:[%s3215_s24 + $0x3f8] sm:$0xff]  ;;  %v7300_v23 = vld [vmem:[#allocation85_spill] sm:$0xff] }
 0x40d   : > { %7294 = vst [vmem:[#allocation220_spill] sm:$0xff] %v5439_v45  ;;  %7295 = vst [vmem:[#allocation221_spill] sm:$0xff] %v5443_v15  ;;  %v5459_v38 = vadd.f32 %v2910_v59, %v4362_v58  ;;  %v1527_v8 = vadd.f32 %v7300_v23, %v4951_v25  ;;  %v7301_v15 = vld [vmem:[#allocation90_spill] sm:$0xff]  ;;  %v7302_v36 = vld [vmem:[#allocation83_spill] sm:$0xff] }
 0x40e   : > { %7296 = vst [vmem:[#allocation222_spill] sm:$0xff] %v5447_v60  ;;  %7297 = vst [vmem:[#allocation223_spill] sm:$0xff] %v5451_v47  ;;  %v1529_v44 = vadd.f32 %v7301_v15, %v4955_v35  ;;  %v1528_v52 = vadd.f32 %v7302_v36, %v4959_v49  ;;  %v7303_v63 = vld [vmem:[#allocation87_spill] sm:$0xff]  ;;  %v7304_v58 = vld [vmem:[#allocation88_spill] sm:$0xff] }
 0x40f   : > { %7298 = vst [vmem:[#allocation224_spill] sm:$0xff] %v5455_v53  ;;  %7299 = vst [vmem:[#allocation225_spill] sm:$0xff] %v5459_v38  ;;  %v1530_v41 = vadd.f32 %v7303_v63, %v4963_v32  ;;  %v1531_v59 = vadd.f32 %v7304_v58, %v4967_v26  ;;  %v7305_v35 = vld [vmem:[#allocation86_spill] sm:$0xff] }
 0x41f   : > { %v1753_v33 = vpop.f32.mrb[128].mxu0 }
 0x420   : > { %v1754_v27 = vadd.f32 %v1753_v33, %v7300_v23  ;;  %v1946_v60 = vpop.f32.mrb[128].mxu1  ;;  %v1755_v47 = vpop.f32.mrb[129].mxu0  ;;  %v1533_v23 = vadd.f32 %v7305_v35, %v4971_v30  ;;  %v7306_v33 = vld [vmem:[#allocation84_spill] sm:$0xff] }
 0x421   : > { %v1947_v38 = vadd.f32 %v1946_v60, %v7301_v15  ;;  %v1756_v25 = vadd.f32 %v1755_v47, %v7302_v36  ;;  %v1948_v53 = vpop.f32.mrb[129].mxu1  ;;  %v1757_v45 = vpop.f32.mrb[130].mxu0  ;;  %v1532_v54 = vadd.f32 %v7306_v33, %v4975_v43  ;;  %v7307_v15 = vld [vmem:[#allocation89_spill] sm:$0xff] }
 0x422   : > { %v2105_v49 = vadd.f32 %v1754_v27, %v1527_v8  ;;  %v1949_v17 = vadd.f32 %v1948_v53, %v7303_v63  ;;  %v1758_v32 = vadd.f32 %v1757_v45, %v7304_v58  ;;  %v1950_v37 = vpop.f32.mrb[130].mxu1  ;;  %v1759_v26 = vpop.f32.mrb[131].mxu0  ;;  %v1534_v60 = vadd.f32 %v7307_v15, %v4979_v39 }
 0x423   : > { %v2107_v47 = vadd.f32 %v1947_v38, %v1529_v44  ;;  %v2106_v36 = vadd.f32 %v1756_v25, %v1528_v52  ;;  %v1951_v40 = vadd.f32 %v1950_v37, %v7305_v35  ;;  %v1760_v30 = vadd.f32 %v1759_v26, %v7306_v33  ;;  %v1952_v20 = vpop.f32.mrb[131].mxu1  ;;  %v7309_v52 = vld [vmem:[#allocation98_spill] sm:$0xff]  ;;  %v7311_v33 = vld [vmem:[#allocation96_spill] sm:$0xff] }
 0x424   : > { %v2233_v62 = vmul.f32 0.25, %v2105_v49  ;;  %v2108_v43 = vadd.f32 %v1949_v17, %v1530_v41  ;;  %v2109_v8 = vadd.f32 %v1758_v32, %v1531_v59  ;;  %v1953_v53 = vadd.f32 %v1952_v20, %v7307_v15  ;;  %v7308_v17 = vld [vmem:[#allocation95_spill] sm:$0xff]  ;;  %v7310_v59 = vld [vmem:[#allocation92_spill] sm:$0xff] }
 0x425   : > { %v2235_v27 = vmul.f32 0.25, %v2107_v47  ;;  %v2234_v45 = vmul.f32 0.25, %v2106_v36  ;;  %v2111_v63 = vadd.f32 %v1951_v40, %v1533_v23  ;;  %v2110_v58 = vadd.f32 %v1760_v30, %v1532_v54  ;;  %v7312_v32 = vld [vmem:[#allocation91_spill] sm:$0xff]  ;;  %v7313_v47 = vld [vmem:[#allocation93_spill] sm:$0xff]  ;;  %v7314_v30 = vld [vmem:[#allocation94_spill] sm:$0xff] }
 0x426   : > { %2361 = vst [vmem:[%s5487_s20] sm:$0xff] %v2233_v62  ;;  %v2236_v39 = vmul.f32 0.25, %v2108_v43  ;;  %v2237_v37 = vmul.f32 0.25, %v2109_v8  ;;  %v2112_v38 = vadd.f32 %v1953_v53, %v1534_v60  ;;  %v1535_v44 = vadd.f32 %v7308_v17, %v4983_v57 }
 0x427   : > { %2363 = vst [vmem:[%s5487_s20 + $0x10] sm:$0xff] %v2235_v27  ;;  %2362 = vst [vmem:[%s5487_s20 + $0x8] sm:$0xff] %v2234_v45  ;;  %v2239_v20 = vmul.f32 0.25, %v2111_v63  ;;  %v2238_v40 = vmul.f32 0.25, %v2110_v58  ;;  %v1763_v54 = vpop.f32.mrb[132].mxu0  ;;  %v1537_v41 = vadd.f32 %v7309_v52, %v4987_v21  ;;  %v1536_v25 = vadd.f32 %v7310_v59, %v4991_v9  ;;  %v7315_v45 = vld [vmem:[#allocation97_spill] sm:$0xff] }
 0x428   : > { %2364 = vst [vmem:[%s5487_s20 + $0x18] sm:$0xff] %v2236_v39  ;;  %2365 = vst [vmem:[%s5487_s20 + $0x20] sm:$0xff] %v2237_v37  ;;  %v2240_v62 = vmul.f32 0.25, %v2112_v38  ;;  %v1764_v35 = vadd.f32 %v1763_v54, %v7308_v17  ;;  %v1956_v57 = vpop.f32.mrb[132].mxu1  ;;  %v1765_v23 = vpop.f32.mrb[133].mxu0  ;;  %v1538_v49 = vadd.f32 %v7311_v33, %v4995_v3  ;;  %v1539_v26 = vadd.f32 %v7312_v32, %v4999_v1 }
 0x429   : > { %2367 = vst [vmem:[%s5487_s20 + $0x30] sm:$0xff] %v2239_v20  ;;  %2366 = vst [vmem:[%s5487_s20 + $0x28] sm:$0xff] %v2238_v40  ;;  %v1957_v21 = vadd.f32 %v1956_v57, %v7309_v52  ;;  %v1766_v9 = vadd.f32 %v1765_v23, %v7310_v59  ;;  %v1958_v15 = vpop.f32.mrb[133].mxu1  ;;  %v1767_v60 = vpop.f32.mrb[134].mxu0  ;;  %v1541_v36 = vadd.f32 %v7313_v47, %v5003_v61 }
 0x42a   : > { %v1540_v43 = vadd.f32 %v7314_v30, %v5007_v16  ;;  %2368 = vst [vmem:[%s5487_s20 + $0x38] sm:$0xff] %v2240_v62  ;;  %v2113_v8 = vadd.f32 %v1764_v35, %v1535_v44  ;;  %v1959_v3 = vadd.f32 %v1958_v15, %v7311_v33  ;;  %v1768_v1 = vadd.f32 %v1767_v60, %v7312_v32  ;;  %v1960_v53 = vpop.f32.mrb[134].mxu1  ;;  %v1769_v27 = vpop.f32.mrb[135].mxu0  ;;  %v7316_v62 = vld [vmem:[#allocation103_spill] sm:$0xff] }
 0x42b   : > { %v1542_v63 = vadd.f32 %v7315_v45, %v5011_v5  ;;  %v2115_v58 = vadd.f32 %v1957_v21, %v1537_v41  ;;  %v2114_v39 = vadd.f32 %v1766_v9, %v1536_v25  ;;  %v1961_v37 = vadd.f32 %v1960_v53, %v7313_v47  ;;  %v1962_v16 = vpop.f32.mrb[135].mxu1  ;;  %v7319_v47 = vld [vmem:[#allocation104_spill] sm:$0xff] }
 0x42c   : > { %v1770_v61 = vadd.f32 %v1769_v27, %v7314_v30  ;;  %v2241_v38 = vmul.f32 0.25, %v2113_v8  ;;  %v2116_v17 = vadd.f32 %v1959_v3, %v1538_v49  ;;  %v2117_v44 = vadd.f32 %v1768_v1, %v1539_v26  ;;  %v7317_v49 = vld [vmem:[#allocation106_spill] sm:$0xff]  ;;  %v7318_v26 = vld [vmem:[#allocation100_spill] sm:$0xff]  ;;  %v7320_v30 = vld [vmem:[#allocation99_spill] sm:$0xff] }
 0x42d   : > { %v1963_v20 = vadd.f32 %v1962_v16, %v7315_v45  ;;  %v2243_v40 = vmul.f32 0.25, %v2115_v58  ;;  %v2242_v54 = vmul.f32 0.25, %v2114_v39  ;;  %v2119_v52 = vadd.f32 %v1961_v37, %v1541_v36  ;;  %v7321_v1 = vld [vmem:[#allocation101_spill] sm:$0xff]  ;;  %v7322_v27 = vld [vmem:[#allocation102_spill] sm:$0xff] }
 0x42e   : > { %v2118_v5 = vadd.f32 %v1770_v61, %v1540_v43  ;;  %2369 = vst [vmem:[%s5487_s20 + $0x40] sm:$0xff] %v2241_v38  ;;  %v2244_v41 = vmul.f32 0.25, %v2116_v17  ;;  %v2245_v59 = vmul.f32 0.25, %v2117_v44  ;;  %v1543_v35 = vadd.f32 %v7316_v62, %v5015_v51  ;;  %v7323_v37 = vld [vmem:[#allocation105_spill] sm:$0xff] }
 0x42f   : > { %v2120_v25 = vadd.f32 %v1963_v20, %v1542_v63  ;;  %2371 = vst [vmem:[%s5487_s20 + $0x50] sm:$0xff] %v2243_v40  ;;  %2370 = vst [vmem:[%s5487_s20 + $0x48] sm:$0xff] %v2242_v54  ;;  %v2247_v57 = vmul.f32 0.25, %v2119_v52  ;;  %v1773_v33 = vpop.f32.mrb[136].mxu0  ;;  %v1545_v32 = vadd.f32 %v7317_v49, %v5019_v34  ;;  %v1544_v21 = vadd.f32 %v7318_v26, %v5023_v0 }
 0x430   : > { %v2246_v23 = vmul.f32 0.25, %v2118_v5  ;;  %2372 = vst [vmem:[%s5487_s20 + $0x58] sm:$0xff] %v2244_v41  ;;  %2373 = vst [vmem:[%s5487_s20 + $0x60] sm:$0xff] %v2245_v59  ;;  %v1774_v15 = vadd.f32 %v1773_v33, %v7316_v62  ;;  %v1966_v51 = vpop.f32.mrb[136].mxu1  ;;  %v1775_v60 = vpop.f32.mrb[137].mxu0  ;;  %v1546_v36 = vadd.f32 %v7319_v47, %v5027_v19  ;;  %v1547_v43 = vadd.f32 %v7320_v30, %v5031_v13 }
 0x431   : > { %v2248_v9 = vmul.f32 0.25, %v2120_v25  ;;  %2375 = vst [vmem:[%s5487_s20 + $0x70] sm:$0xff] %v2247_v57  ;;  %v1967_v34 = vadd.f32 %v1966_v51, %v7317_v49  ;;  %v1776_v0 = vadd.f32 %v1775_v60, %v7318_v26  ;;  %v1968_v8 = vpop.f32.mrb[137].mxu1  ;;  %v1777_v3 = vpop.f32.mrb[138].mxu0  ;;  %v1549_v53 = vadd.f32 %v7321_v1, %v5035_v50 }
 0x432   : > { %2374 = vst [vmem:[%s5487_s20 + $0x68] sm:$0xff] %v2246_v23  ;;  %v1548_v45 = vadd.f32 %v7322_v27, %v5039_v56  ;;  %v2121_v63 = vadd.f32 %v1774_v15, %v1543_v35  ;;  %v1969_v19 = vadd.f32 %v1968_v8, %v7319_v47  ;;  %v1778_v13 = vadd.f32 %v1777_v3, %v7320_v30  ;;  %v1970_v58 = vpop.f32.mrb[138].mxu1  ;;  %v1779_v39 = vpop.f32.mrb[139].mxu0  ;;  %v7324_v35 = vld [vmem:[#allocation111_spill] sm:$0xff]  ;;  %v7327_v47 = vld [vmem:[#allocation112_spill] sm:$0xff]  ;;  %v7330_v3 = vld [vmem:[#allocation109_spill] sm:$0xff] }
 0x433   : > { %2376 = vst [vmem:[%s5487_s20 + $0x78] sm:$0xff] %v2248_v9  ;;  %v1550_v61 = vadd.f32 %v7323_v37, %v5043_v18  ;;  %v2123_v16 = vadd.f32 %v1967_v34, %v1545_v32  ;;  %v2122_v38 = vadd.f32 %v1776_v0, %v1544_v21  ;;  %v1971_v17 = vadd.f32 %v1970_v58, %v7321_v1  ;;  %v1972_v56 = vpop.f32.mrb[139].mxu1  ;;  %v7325_v32 = vld [vmem:[#allocation114_spill] sm:$0xff]  ;;  %v7326_v21 = vld [vmem:[#allocation108_spill] sm:$0xff]  ;;  %v7328_v30 = vld [vmem:[#allocation107_spill] sm:$0xff] }
 0x434   : > { %v1780_v50 = vadd.f32 %v1779_v39, %v7322_v27  ;;  %v2249_v44 = vmul.f32 0.25, %v2121_v63  ;;  %v2124_v20 = vadd.f32 %v1969_v19, %v1546_v36  ;;  %v2125_v40 = vadd.f32 %v1778_v13, %v1547_v43  ;;  %v7329_v8 = vld [vmem:[#allocation120_spill] sm:$0xff]  ;;  %v7332_v27 = vld [vmem:[#allocation110_spill] sm:$0xff]  ;;  %v7334_v39 = vld [vmem:[#allocation113_spill] sm:$0xff] }
 0x435   : > { %v1973_v54 = vadd.f32 %v1972_v56, %v7323_v37  ;;  %v2251_v52 = vmul.f32 0.25, %v2123_v16  ;;  %v2250_v5 = vmul.f32 0.25, %v2122_v38  ;;  %v2127_v41 = vadd.f32 %v1971_v17, %v1549_v53  ;;  %v7331_v53 = vld [vmem:[#allocation121_spill] sm:$0xff]  ;;  %v7333_v58 = vld [vmem:[#allocation122_spill] sm:$0xff] }
 0x436   : > { %v2126_v18 = vadd.f32 %v1780_v50, %v1548_v45  ;;  %2377 = vst [vmem:[%s5487_s20 + $0x80] sm:$0xff] %v2249_v44  ;;  %v2252_v59 = vmul.f32 0.25, %v2124_v20  ;;  %v2253_v25 = vmul.f32 0.25, %v2125_v40  ;;  %v1551_v57 = vadd.f32 %v7324_v35, %v5047_v4 }
 0x437   : > { %v2128_v62 = vadd.f32 %v1973_v54, %v1550_v61  ;;  %2379 = vst [vmem:[%s5487_s20 + $0x90] sm:$0xff] %v2251_v52  ;;  %2378 = vst [vmem:[%s5487_s20 + $0x88] sm:$0xff] %v2250_v5  ;;  %v2255_v23 = vmul.f32 0.25, %v2127_v41  ;;  %v1783_v49 = vpop.f32.mrb[140].mxu0  ;;  %v1553_v26 = vadd.f32 %v7325_v32, %v5051_v10  ;;  %v1552_v9 = vadd.f32 %v7326_v21, %v5055_v11 }
 0x438   : > { %v2254_v33 = vmul.f32 0.25, %v2126_v18  ;;  %2380 = vst [vmem:[%s5487_s20 + $0x98] sm:$0xff] %v2252_v59  ;;  %2381 = vst [vmem:[%s5487_s20 + $0xa0] sm:$0xff] %v2253_v25  ;;  %v1784_v51 = vadd.f32 %v1783_v49, %v7324_v35  ;;  %v1976_v4 = vpop.f32.mrb[140].mxu1  ;;  %v1785_v60 = vpop.f32.mrb[141].mxu0  ;;  %v1554_v36 = vadd.f32 %v7327_v47, %v5059_v31  ;;  %v1555_v43 = vadd.f32 %v7328_v30, %v5063_v24  ;;  %v7336_v35 = vld [vmem:[#allocation119_spill] sm:$0xff] }
 0x439   : > { %v2256_v15 = vmul.f32 0.25, %v2128_v62  ;;  %2383 = vst [vmem:[%s5487_s20 + $0xb0] sm:$0xff] %v2255_v23  ;;  %v1977_v10 = vadd.f32 %v1976_v4, %v7325_v32  ;;  %v1786_v11 = vadd.f32 %v1785_v60, %v7326_v21  ;;  %v1978_v34 = vpop.f32.mrb[141].mxu1  ;;  %v1787_v0 = vpop.f32.mrb[142].mxu0  ;;  %v1557_v1 = vadd.f32 %v7330_v3, %v7329_v8  ;;  %v7335_v62 = vld [vmem:[#allocation123_spill] sm:$0xff]  ;;  %v7337_v32 = vld [vmem:[#allocation124_spill] sm:$0xff] }
 0x43a   : > { %2382 = vst [vmem:[%s5487_s20 + $0xa8] sm:$0xff] %v2254_v33  ;;  %v1556_v45 = vadd.f32 %v7332_v27, %v7331_v53  ;;  %v2129_v63 = vadd.f32 %v1784_v51, %v1551_v57  ;;  %v1979_v31 = vadd.f32 %v1978_v34, %v7327_v47  ;;  %v1788_v24 = vadd.f32 %v1787_v0, %v7328_v30  ;;  %v1980_v19 = vpop.f32.mrb[142].mxu1  ;;  %v1789_v13 = vpop.f32.mrb[143].mxu0  ;;  %v7341_v30 = vld [vmem:[#allocation130_spill] sm:$0xff]  ;;  %v7344_v34 = vld [vmem:[#allocation115_spill] sm:$0xff] }
 0x43b   : > { %2384 = vst [vmem:[%s5487_s20 + $0xb8] sm:$0xff] %v2256_v15  ;;  %v1558_v37 = vadd.f32 %v7334_v39, %v7333_v58  ;;  %v2131_v61 = vadd.f32 %v1977_v10, %v1553_v26  ;;  %v2130_v16 = vadd.f32 %v1786_v11, %v1552_v9  ;;  %v1981_v38 = vadd.f32 %v1980_v19, %v7330_v3  ;;  %v1982_v50 = vpop.f32.mrb[143].mxu1  ;;  %v7338_v26 = vld [vmem:[#allocation143_spill] sm:$0xff]  ;;  %v7339_v9 = vld [vmem:[#allocation125_spill] sm:$0xff]  ;;  %v7340_v15 = vld [vmem:[#allocation116_spill] sm:$0xff] }
 0x43c   : > { %v1790_v17 = vadd.f32 %v1789_v13, %v7332_v27  ;;  %v2257_v56 = vmul.f32 0.25, %v2129_v63  ;;  %v2132_v44 = vadd.f32 %v1979_v31, %v1554_v36  ;;  %v2133_v20 = vadd.f32 %v1788_v24, %v1555_v43  ;;  %v7342_v43 = vld [vmem:[#allocation141_spill] sm:$0xff]  ;;  %v7345_v27 = vld [vmem:[#allocation127_spill] sm:$0xff]  ;;  %v7348_v24 = vld [vmem:[#allocation118_spill] sm:$0xff] }
 0x43d   : > { %v1983_v40 = vadd.f32 %v1982_v50, %v7334_v39  ;;  %v2259_v54 = vmul.f32 0.25, %v2131_v61  ;;  %v2258_v52 = vmul.f32 0.25, %v2130_v16  ;;  %v2135_v5 = vadd.f32 %v1981_v38, %v1557_v1  ;;  %v7343_v11 = vld [vmem:[#allocation133_spill] sm:$0xff]  ;;  %v7347_v31 = vld [vmem:[#allocation131_spill] sm:$0xff]  ;;  %v7349_v16 = vld [vmem:[#allocation126_spill] sm:$0xff] }
 0x43e   : > { %v2134_v41 = vadd.f32 %v1790_v17, %v1556_v45  ;;  %2385 = vst [vmem:[%s5487_s20 + $0xc0] sm:$0xff] %v2257_v56  ;;  %v2260_v18 = vmul.f32 0.25, %v2132_v44  ;;  %v2261_v59 = vmul.f32 0.25, %v2133_v20  ;;  %v1559_v57 = vadd.f32 %v7336_v35, %v7335_v62  ;;  %v7346_v45 = vld [vmem:[#allocation117_spill] sm:$0xff]  ;;  %v7350_v38 = vld [vmem:[#allocation142_spill] sm:$0xff] }
 0x43f   : > { %v2136_v25 = vadd.f32 %v1983_v40, %v1558_v37  ;;  %2387 = vst [vmem:[%s5487_s20 + $0xd0] sm:$0xff] %v2259_v54  ;;  %2386 = vst [vmem:[%s5487_s20 + $0xc8] sm:$0xff] %v2258_v52  ;;  %v2263_v23 = vmul.f32 0.25, %v2135_v5  ;;  %v1793_v49 = vpop.f32.mrb[144].mxu0  ;;  %v1561_v21 = vadd.f32 %v7338_v26, %v7337_v32  ;;  %v1560_v51 = vadd.f32 %v7340_v15, %v7339_v9 }
 0x440   : > { %v2262_v33 = vmul.f32 0.25, %v2134_v41  ;;  %2388 = vst [vmem:[%s5487_s20 + $0xd8] sm:$0xff] %v2260_v18  ;;  %2389 = vst [vmem:[%s5487_s20 + $0xe0] sm:$0xff] %v2261_v59  ;;  %v1794_v60 = vadd.f32 %v1793_v49, %v7336_v35  ;;  %v1986_v47 = vpop.f32.mrb[144].mxu1  ;;  %v1795_v36 = vpop.f32.mrb[145].mxu0  ;;  %v1562_v10 = vadd.f32 %v7342_v43, %v7341_v30  ;;  %v1563_v0 = vadd.f32 %v7344_v34, %v7343_v11  ;;  %v7352_v49 = vld [vmem:[#allocation148_spill] sm:$0xff] }
 0x441   : > { %v2264_v4 = vmul.f32 0.25, %v2136_v25  ;;  %2391 = vst [vmem:[%s5487_s20 + $0xf0] sm:$0xff] %v2263_v23  ;;  %v1987_v8 = vadd.f32 %v1986_v47, %v7338_v26  ;;  %v1796_v3 = vadd.f32 %v1795_v36, %v7340_v15  ;;  %v1988_v1 = vpop.f32.mrb[145].mxu1  ;;  %v1797_v53 = vpop.f32.mrb[146].mxu0  ;;  %v1565_v63 = vadd.f32 %v7346_v45, %v7345_v27  ;;  %v7353_v15 = vld [vmem:[#allocation129_spill] sm:$0xff] }
 0x442   : > { %2390 = vst [vmem:[%s5487_s20 + $0xe8] sm:$0xff] %v2262_v33  ;;  %v1564_v19 = vadd.f32 %v7348_v24, %v7347_v31  ;;  %v2137_v13 = vadd.f32 %v1794_v60, %v1559_v57  ;;  %v1989_v58 = vadd.f32 %v1988_v1, %v7342_v43  ;;  %v1798_v39 = vadd.f32 %v1797_v53, %v7344_v34  ;;  %v1990_v37 = vpop.f32.mrb[146].mxu1  ;;  %v1799_v61 = vpop.f32.mrb[147].mxu0  ;;  %v7351_v33 = vld [vmem:[#allocation128_spill] sm:$0xff]  ;;  %v7356_v47 = vld [vmem:[#allocation145_spill] sm:$0xff]  ;;  %v7357_v34 = vld [vmem:[#allocation14_spill] sm:$0xff] }
 0x443   : > { %2392 = vst [vmem:[%s5487_s20 + $0xf8] sm:$0xff] %v2264_v4  ;;  %v1566_v17 = vadd.f32 %v7350_v38, %v7349_v16  ;;  %v2139_v50 = vadd.f32 %v1987_v8, %v1561_v21  ;;  %v2138_v56 = vadd.f32 %v1796_v3, %v1560_v51  ;;  %v1991_v44 = vadd.f32 %v1990_v37, %v7346_v45  ;;  %v1992_v40 = vpop.f32.mrb[147].mxu1  ;;  %v7354_v51 = vld [vmem:[#allocation151_spill] sm:$0xff]  ;;  %v7355_v60 = vld [vmem:[#allocation132_spill] sm:$0xff] }
 0x444   : > { %v1800_v20 = vadd.f32 %v1799_v61, %v7348_v24  ;;  %v2265_v54 = vmul.f32 0.25, %v2137_v13  ;;  %v2140_v52 = vadd.f32 %v1989_v58, %v1562_v10  ;;  %v2141_v5 = vadd.f32 %v1798_v39, %v1563_v0  ;;  %v7358_v0 = vld [vmem:[#allocation149_spill] sm:$0xff]  ;;  %v7359_v3 = vld [vmem:[#allocation15_spill] sm:$0xff]  ;;  %v7360_v1 = vld [vmem:[#allocation144_spill] sm:$0xff] }
 0x445   : > { %v1993_v41 = vadd.f32 %v1992_v40, %v7350_v38  ;;  %v2267_v18 = vmul.f32 0.25, %v2139_v50  ;;  %v2266_v59 = vmul.f32 0.25, %v2138_v56  ;;  %v2143_v25 = vadd.f32 %v1991_v44, %v1565_v63  ;;  %v7361_v24 = vld [vmem:[#allocation135_spill] sm:$0xff]  ;;  %v7363_v58 = vld [vmem:[#allocation12_spill] sm:$0xff]  ;;  %v7365_v56 = vld [vmem:[#allocation134_spill] sm:$0xff] }
 0x446   : > { %v2142_v62 = vadd.f32 %v1800_v20, %v1564_v19  ;;  %2393 = vst [vmem:[%s5487_s20 + $0x100] sm:$0xff] %v2265_v54  ;;  %v2268_v35 = vmul.f32 0.25, %v2140_v52  ;;  %v2269_v57 = vmul.f32 0.25, %v2141_v5  ;;  %v1567_v32 = vadd.f32 %v7352_v49, %v7351_v33  ;;  %v7362_v19 = vld [vmem:[#allocation146_spill] sm:$0xff]  ;;  %v7364_v39 = vld [vmem:[#allocation147_spill] sm:$0xff] }
 0x447   : > { %v2144_v23 = vadd.f32 %v1993_v41, %v1566_v17  ;;  %2395 = vst [vmem:[%s5487_s20 + $0x110] sm:$0xff] %v2267_v18  ;;  %2394 = vst [vmem:[%s5487_s20 + $0x108] sm:$0xff] %v2266_v59  ;;  %v2271_v26 = vmul.f32 0.25, %v2143_v25  ;;  %v1803_v9 = vpop.f32.mrb[148].mxu0  ;;  %v1569_v4 = vadd.f32 %v7354_v51, %v7353_v15  ;;  %v1568_v36 = vadd.f32 %v7356_v47, %v7355_v60  ;;  %v7366_v44 = vld [vmem:[#allocation150_spill] sm:$0xff] }
 0x448   : > { %v2270_v21 = vmul.f32 0.25, %v2142_v62  ;;  %2396 = vst [vmem:[%s5487_s20 + $0x118] sm:$0xff] %v2268_v35  ;;  %2397 = vst [vmem:[%s5487_s20 + $0x120] sm:$0xff] %v2269_v57  ;;  %v1804_v43 = vadd.f32 %v1803_v9, %v7352_v49  ;;  %v1996_v10 = vpop.f32.mrb[148].mxu1  ;;  %v1805_v11 = vpop.f32.mrb[149].mxu0  ;;  %v1570_v8 = vadd.f32 %v7358_v0, %v7357_v34  ;;  %v1571_v53 = vadd.f32 %v7360_v1, %v7359_v3  ;;  %v7368_v9 = vld [vmem:[#allocation156_spill] sm:$0xff] }
 0x449   : > { %v2272_v30 = vmul.f32 0.25, %v2144_v23  ;;  %2399 = vst [vmem:[%s5487_s20 + $0x130] sm:$0xff] %v2271_v26  ;;  %v1997_v27 = vadd.f32 %v1996_v10, %v7354_v51  ;;  %v1806_v45 = vadd.f32 %v1805_v11, %v7356_v47  ;;  %v1998_v63 = vpop.f32.mrb[149].mxu1  ;;  %v1807_v31 = vpop.f32.mrb[150].mxu0  ;;  %v1573_v13 = vadd.f32 %v7362_v19, %v7361_v24  ;;  %v7369_v47 = vld [vmem:[#allocation11_spill] sm:$0xff]  ;;  %v7372_v10 = vld [vmem:[#allocation153_spill] sm:$0xff] }
 0x44a   : > { %2398 = vst [vmem:[%s5487_s20 + $0x128] sm:$0xff] %v2270_v21  ;;  %v1572_v37 = vadd.f32 %v7364_v39, %v7363_v58  ;;  %v2145_v61 = vadd.f32 %v1804_v43, %v1567_v32  ;;  %v1999_v16 = vadd.f32 %v1998_v63, %v7358_v0  ;;  %v1808_v38 = vadd.f32 %v1807_v31, %v7360_v1  ;;  %v2000_v17 = vpop.f32.mrb[150].mxu1  ;;  %v1809_v50 = vpop.f32.mrb[151].mxu0  ;;  %v7367_v21 = vld [vmem:[#allocation16_spill] sm:$0xff]  ;;  %v7371_v43 = vld [vmem:[#allocation13_spill] sm:$0xff] }
 0x44b   : > { %2400 = vst [vmem:[%s5487_s20 + $0x138] sm:$0xff] %v2272_v30  ;;  %v1574_v20 = vadd.f32 %v7366_v44, %v7365_v56  ;;  %v2147_v40 = vadd.f32 %v1997_v27, %v1569_v4  ;;  %v2146_v54 = vadd.f32 %v1806_v45, %v1568_v36  ;;  %v2001_v52 = vadd.f32 %v2000_v17, %v7362_v19  ;;  %v2002_v41 = vpop.f32.mrb[151].mxu1  ;;  %v7370_v36 = vld [vmem:[#allocation159_spill] sm:$0xff]  ;;  %v7373_v1 = vld [vmem:[#allocation21_spill] sm:$0xff]  ;;  %v7376_v63 = vld [vmem:[#allocation152_spill] sm:$0xff] }
 0x44c   : > { %v1810_v5 = vadd.f32 %v1809_v50, %v7364_v39  ;;  %v2273_v18 = vmul.f32 0.25, %v2145_v61  ;;  %v2148_v59 = vadd.f32 %v1999_v16, %v1570_v8  ;;  %v2149_v25 = vadd.f32 %v1808_v38, %v1571_v53  ;;  %v7374_v53 = vld [vmem:[#allocation157_spill] sm:$0xff]  ;;  %v7375_v45 = vld [vmem:[#allocation23_spill] sm:$0xff] }
 0x44d   : > { %v2003_v62 = vadd.f32 %v2002_v41, %v7366_v44  ;;  %v2275_v35 = vmul.f32 0.25, %v2147_v40  ;;  %v2274_v57 = vmul.f32 0.25, %v2146_v54  ;;  %v2151_v23 = vadd.f32 %v2001_v52, %v1573_v13  ;;  %v7377_v39 = vld [vmem:[#allocation17_spill] sm:$0xff]  ;;  %v7379_v16 = vld [vmem:[#allocation19_spill] sm:$0xff]  ;;  %v7381_v54 = vld [vmem:[#allocation22_spill] sm:$0xff] }
 0x44e   : > { %v2150_v33 = vadd.f32 %v1810_v5, %v1572_v37  ;;  %2401 = vst [vmem:[%s5487_s20 + $0x140] sm:$0xff] %v2273_v18  ;;  %v2276_v49 = vmul.f32 0.25, %v2148_v59  ;;  %v2277_v32 = vmul.f32 0.25, %v2149_v25  ;;  %v1575_v15 = vadd.f32 %v7368_v9, %v7367_v21  ;;  %v7378_v37 = vld [vmem:[#allocation154_spill] sm:$0xff]  ;;  %v7380_v38 = vld [vmem:[#allocation155_spill] sm:$0xff] }
 0x44f   : > { %v2152_v26 = vadd.f32 %v2003_v62, %v1574_v20  ;;  %2403 = vst [vmem:[%s5487_s20 + $0x150] sm:$0xff] %v2275_v35  ;;  %2402 = vst [vmem:[%s5487_s20 + $0x148] sm:$0xff] %v2274_v57  ;;  %v2279_v51 = vmul.f32 0.25, %v2151_v23  ;;  %v1813_v60 = vpop.f32.mrb[152].mxu0  ;;  %v1577_v30 = vadd.f32 %v7370_v36, %v7369_v47  ;;  %v1576_v11 = vadd.f32 %v7372_v10, %v7371_v43  ;;  %v7382_v52 = vld [vmem:[#allocation158_spill] sm:$0xff] }
 0x450   : > { %v2278_v4 = vmul.f32 0.25, %v2150_v33  ;;  %2404 = vst [vmem:[%s5487_s20 + $0x158] sm:$0xff] %v2276_v49  ;;  %2405 = vst [vmem:[%s5487_s20 + $0x160] sm:$0xff] %v2277_v32  ;;  %v1814_v0 = vadd.f32 %v1813_v60, %v7368_v9  ;;  %v2006_v8 = vpop.f32.mrb[152].mxu1  ;;  %v1815_v3 = vpop.f32.mrb[153].mxu0  ;;  %v1578_v27 = vadd.f32 %v7374_v53, %v7373_v1  ;;  %v1579_v31 = vadd.f32 %v7376_v63, %v7375_v45  ;;  %v7384_v60 = vld [vmem:[#allocation164_spill] sm:$0xff] }
 0x451   : > { %v2280_v34 = vmul.f32 0.25, %v2152_v26  ;;  %2407 = vst [vmem:[%s5487_s20 + $0x170] sm:$0xff] %v2279_v51  ;;  %v2007_v24 = vadd.f32 %v2006_v8, %v7370_v36  ;;  %v1816_v19 = vadd.f32 %v1815_v3, %v7372_v10  ;;  %v2008_v13 = vpop.f32.mrb[153].mxu1  ;;  %v1817_v58 = vpop.f32.mrb[154].mxu0  ;;  %v1581_v61 = vadd.f32 %v7378_v37, %v7377_v39  ;;  %v7385_v10 = vld [vmem:[#allocation18_spill] sm:$0xff]  ;;  %v7388_v8 = vld [vmem:[#allocation161_spill] sm:$0xff] }
 0x452   : > { %2406 = vst [vmem:[%s5487_s20 + $0x168] sm:$0xff] %v2278_v4  ;;  %v1580_v17 = vadd.f32 %v7380_v38, %v7379_v16  ;;  %v2153_v50 = vadd.f32 %v1814_v0, %v1575_v15  ;;  %v2009_v56 = vadd.f32 %v2008_v13, %v7374_v53  ;;  %v1818_v44 = vadd.f32 %v1817_v58, %v7376_v63  ;;  %v2010_v20 = vpop.f32.mrb[154].mxu1  ;;  %v1819_v40 = vpop.f32.mrb[155].mxu0  ;;  %v7383_v4 = vld [vmem:[#allocation24_spill] sm:$0xff]  ;;  %v7389_v63 = vld [vmem:[#allocation29_spill] sm:$0xff] }
 0x453   : > { %2408 = vst [vmem:[%s5487_s20 + $0x178] sm:$0xff] %v2280_v34  ;;  %v1582_v5 = vadd.f32 %v7382_v52, %v7381_v54  ;;  %v2155_v41 = vadd.f32 %v2007_v24, %v1577_v30  ;;  %v2154_v18 = vadd.f32 %v1816_v19, %v1576_v11  ;;  %v2011_v59 = vadd.f32 %v2010_v20, %v7378_v37  ;;  %v2012_v62 = vpop.f32.mrb[155].mxu1  ;;  %v7386_v11 = vld [vmem:[#allocation167_spill] sm:$0xff]  ;;  %v7387_v0 = vld [vmem:[#allocation20_spill] sm:$0xff] }
 0x454   : > { %v1820_v25 = vadd.f32 %v1819_v40, %v7380_v38  ;;  %v2281_v35 = vmul.f32 0.25, %v2153_v50  ;;  %v2156_v57 = vadd.f32 %v2009_v56, %v1578_v27  ;;  %v2157_v23 = vadd.f32 %v1818_v44, %v1579_v31  ;;  %v7390_v31 = vld [vmem:[#allocation165_spill] sm:$0xff]  ;;  %v7391_v19 = vld [vmem:[#allocation31_spill] sm:$0xff]  ;;  %v7392_v13 = vld [vmem:[#allocation160_spill] sm:$0xff] }
 0x455   : > { %v2013_v33 = vadd.f32 %v2012_v62, %v7382_v52  ;;  %v2283_v49 = vmul.f32 0.25, %v2155_v41  ;;  %v2282_v32 = vmul.f32 0.25, %v2154_v18  ;;  %v2159_v26 = vadd.f32 %v2011_v59, %v1581_v61  ;;  %v7393_v38 = vld [vmem:[#allocation25_spill] sm:$0xff]  ;;  %v7395_v56 = vld [vmem:[#allocation27_spill] sm:$0xff]  ;;  %v7397_v18 = vld [vmem:[#allocation30_spill] sm:$0xff] }
 0x456   : > { %v2158_v21 = vadd.f32 %v1820_v25, %v1580_v17  ;;  %2409 = vst [vmem:[%s5487_s20 + $0x180] sm:$0xff] %v2281_v35  ;;  %v2284_v9 = vmul.f32 0.25, %v2156_v57  ;;  %v2285_v15 = vmul.f32 0.25, %v2157_v23  ;;  %v1583_v47 = vadd.f32 %v7384_v60, %v7383_v4  ;;  %v7394_v17 = vld [vmem:[#allocation162_spill] sm:$0xff]  ;;  %v7396_v44 = vld [vmem:[#allocation163_spill] sm:$0xff] }
 0x457   : > { %v2160_v51 = vadd.f32 %v2013_v33, %v1582_v5  ;;  %2411 = vst [vmem:[%s5487_s20 + $0x190] sm:$0xff] %v2283_v49  ;;  %2410 = vst [vmem:[%s5487_s20 + $0x188] sm:$0xff] %v2282_v32  ;;  %v2287_v36 = vmul.f32 0.25, %v2159_v26  ;;  %v1823_v43 = vpop.f32.mrb[156].mxu0  ;;  %v1585_v34 = vadd.f32 %v7386_v11, %v7385_v10  ;;  %v1584_v3 = vadd.f32 %v7388_v8, %v7387_v0  ;;  %v7398_v59 = vld [vmem:[#allocation166_spill] sm:$0xff] }
 0x458   : > { %v2286_v30 = vmul.f32 0.25, %v2158_v21  ;;  %2412 = vst [vmem:[%s5487_s20 + $0x198] sm:$0xff] %v2284_v9  ;;  %2413 = vst [vmem:[%s5487_s20 + $0x1a0] sm:$0xff] %v2285_v15  ;;  %v1824_v53 = vadd.f32 %v1823_v43, %v7384_v60  ;;  %v2016_v27 = vpop.f32.mrb[156].mxu1  ;;  %v1825_v45 = vpop.f32.mrb[157].mxu0  ;;  %v1586_v24 = vadd.f32 %v7390_v31, %v7389_v63  ;;  %v1587_v58 = vadd.f32 %v7392_v13, %v7391_v19  ;;  %v7400_v43 = vld [vmem:[#allocation172_spill] sm:$0xff] }
 0x459   : > { %v2288_v1 = vmul.f32 0.25, %v2160_v51  ;;  %2415 = vst [vmem:[%s5487_s20 + $0x1b0] sm:$0xff] %v2287_v36  ;;  %v2017_v39 = vadd.f32 %v2016_v27, %v7386_v11  ;;  %v1826_v37 = vadd.f32 %v1825_v45, %v7388_v8  ;;  %v2018_v61 = vpop.f32.mrb[157].mxu1  ;;  %v1827_v16 = vpop.f32.mrb[158].mxu0  ;;  %v1589_v50 = vadd.f32 %v7394_v17, %v7393_v38  ;;  %v7401_v8 = vld [vmem:[#allocation26_spill] sm:$0xff]  ;;  %v7404_v27 = vld [vmem:[#allocation169_spill] sm:$0xff] }
 0x45a   : > { %2414 = vst [vmem:[%s5487_s20 + $0x1a8] sm:$0xff] %v2286_v30  ;;  %v1588_v20 = vadd.f32 %v7396_v44, %v7395_v56  ;;  %v2161_v40 = vadd.f32 %v1824_v53, %v1583_v47  ;;  %v2019_v54 = vadd.f32 %v2018_v61, %v7390_v31  ;;  %v1828_v52 = vadd.f32 %v1827_v16, %v7392_v13  ;;  %v2020_v5 = vpop.f32.mrb[158].mxu1  ;;  %v1829_v41 = vpop.f32.mrb[159].mxu0  ;;  %v7399_v30 = vld [vmem:[#allocation32_spill] sm:$0xff]  ;;  %v7405_v13 = vld [vmem:[#allocation173_spill] sm:$0xff]  ;;  %v7408_v56 = vld [vmem:[#allocation39_spill] sm:$0xff] }
 0x45b   : > { %2416 = vst [vmem:[%s5487_s20 + $0x1b8] sm:$0xff] %v2288_v1  ;;  %v1590_v25 = vadd.f32 %v7398_v59, %v7397_v18  ;;  %v2163_v62 = vadd.f32 %v2017_v39, %v1585_v34  ;;  %v2162_v35 = vadd.f32 %v1826_v37, %v1584_v3  ;;  %v2021_v57 = vadd.f32 %v2020_v5, %v7394_v17  ;;  %v2022_v33 = vpop.f32.mrb[159].mxu1  ;;  %v7402_v3 = vld [vmem:[#allocation175_spill] sm:$0xff]  ;;  %v7403_v53 = vld [vmem:[#allocation28_spill] sm:$0xff]  ;;  %v7406_v39 = vld [vmem:[#allocation37_spill] sm:$0xff] }
 0x45c   : > { %v1830_v23 = vadd.f32 %v1829_v41, %v7396_v44  ;;  %v2289_v49 = vmul.f32 0.25, %v2161_v40  ;;  %v2164_v32 = vadd.f32 %v2019_v54, %v1586_v24  ;;  %v2165_v26 = vadd.f32 %v1828_v52, %v1587_v58  ;;  %v7407_v37 = vld [vmem:[#allocation168_spill] sm:$0xff]  ;;  %v7409_v44 = vld [vmem:[#allocation170_spill] sm:$0xff]  ;;  %v7410_v40 = vld [vmem:[#allocation33_spill] sm:$0xff] }
 0x45d   : > { %v2023_v21 = vadd.f32 %v2022_v33, %v7398_v59  ;;  %v2291_v9 = vmul.f32 0.25, %v2163_v62  ;;  %v2290_v15 = vmul.f32 0.25, %v2162_v35  ;;  %v2167_v51 = vadd.f32 %v2021_v57, %v1589_v50  ;;  %v7411_v54 = vld [vmem:[#allocation171_spill] sm:$0xff]  ;;  %v7413_v62 = vld [vmem:[#allocation174_spill] sm:$0xff] }
 0x45e   : > { %v2166_v4 = vadd.f32 %v1830_v23, %v1588_v20  ;;  %2417 = vst [vmem:[%s5487_s20 + $0x1c0] sm:$0xff] %v2289_v49  ;;  %v2292_v60 = vmul.f32 0.25, %v2164_v32  ;;  %v2293_v47 = vmul.f32 0.25, %v2165_v26  ;;  %v1591_v10 = vadd.f32 %v7400_v43, %v7399_v30 }
 0x45f   : > { %v2168_v36 = vadd.f32 %v2023_v21, %v1590_v25  ;;  %2419 = vst [vmem:[%s5487_s20 + $0x1d0] sm:$0xff] %v2291_v9  ;;  %2418 = vst [vmem:[%s5487_s20 + $0x1c8] sm:$0xff] %v2290_v15  ;;  %v2295_v11 = vmul.f32 0.25, %v2167_v51  ;;  %v1833_v0 = vpop.f32.mrb[160].mxu0  ;;  %v1593_v1 = vadd.f32 %v7402_v3, %v7401_v8  ;;  %v1592_v45 = vadd.f32 %v7404_v27, %v7403_v53  ;;  %v7412_v25 = vld [vmem:[#allocation35_spill] sm:$0xff]  ;;  %v7417_v53 = vld [vmem:[#allocation182_spill] sm:$0xff] }
 0x460   : > { %v2294_v34 = vmul.f32 0.25, %v2166_v4  ;;  %2420 = vst [vmem:[%s5487_s20 + $0x1d8] sm:$0xff] %v2292_v60  ;;  %2421 = vst [vmem:[%s5487_s20 + $0x1e0] sm:$0xff] %v2293_v47  ;;  %v1834_v31 = vadd.f32 %v1833_v0, %v7400_v43  ;;  %v2026_v24 = vpop.f32.mrb[160].mxu1  ;;  %v1835_v19 = vpop.f32.mrb[161].mxu0  ;;  %v1594_v58 = vadd.f32 %v7405_v13, %v5219_v29  ;;  %v1595_v61 = vadd.f32 %v7407_v37, %v7406_v39  ;;  %v7420_v39 = vld [vmem:[#allocation180_spill] sm:$0xff] }
 0x461   : > { %v2296_v63 = vmul.f32 0.25, %v2168_v36  ;;  %2423 = vst [vmem:[%s5487_s20 + $0x1f0] sm:$0xff] %v2295_v11  ;;  %v2027_v16 = vadd.f32 %v2026_v24, %v7402_v3  ;;  %v1836_v38 = vadd.f32 %v1835_v19, %v7404_v27  ;;  %v2028_v17 = vpop.f32.mrb[161].mxu1  ;;  %v1837_v50 = vpop.f32.mrb[162].mxu0  ;;  %v1597_v20 = vadd.f32 %v7409_v44, %v7408_v56  ;;  %v7415_v11 = vld [vmem:[#allocation45_spill] sm:$0xff] }
 0x462   : > { %2422 = vst [vmem:[%s5487_s20 + $0x1e8] sm:$0xff] %v2294_v34  ;;  %v1596_v52 = vadd.f32 %v7411_v54, %v7410_v40  ;;  %v2169_v5 = vadd.f32 %v1834_v31, %v1591_v10  ;;  %v2029_v29 = vadd.f32 %v2028_v17, %v7405_v13  ;;  %v1838_v41 = vadd.f32 %v1837_v50, %v7407_v37  ;;  %v2030_v18 = vpop.f32.mrb[162].mxu1  ;;  %v1839_v59 = vpop.f32.mrb[163].mxu0  ;;  %v7414_v10 = vld [vmem:[#allocation38_spill] sm:$0xff] }
 0x463   : > { %2424 = vst [vmem:[%s5487_s20 + $0x1f8] sm:$0xff] %v2296_v63  ;;  %v1598_v35 = vadd.f32 %v7413_v62, %v7412_v25  ;;  %v2171_v57 = vadd.f32 %v2027_v16, %v1593_v1  ;;  %v2170_v23 = vadd.f32 %v1836_v38, %v1592_v45  ;;  %v2031_v33 = vadd.f32 %v2030_v18, %v7409_v44  ;;  %v2032_v32 = vpop.f32.mrb[163].mxu1  ;;  %v7416_v1 = vld [vmem:[#allocation40_spill] sm:$0xff]  ;;  %v7418_v45 = vld [vmem:[#allocation34_spill] sm:$0xff]  ;;  %v7419_v63 = vld [vmem:[#allocation177_spill] sm:$0xff] }
 0x464   : > { %v1840_v49 = vadd.f32 %v1839_v59, %v7411_v54  ;;  %v2297_v26 = vmul.f32 0.25, %v2169_v5  ;;  %v2172_v21 = vadd.f32 %v2029_v29, %v1594_v58  ;;  %v2173_v9 = vadd.f32 %v1838_v41, %v1595_v61  ;;  %v7421_v61 = vld [vmem:[#allocation36_spill] sm:$0xff]  ;;  %v7424_v40 = vld [vmem:[#allocation178_spill] sm:$0xff]  ;;  %v7426_v5 = vld [vmem:[#allocation179_spill] sm:$0xff] }
 0x465   : > { %v2033_v15 = vadd.f32 %v2032_v32, %v7413_v62  ;;  %v2299_v51 = vmul.f32 0.25, %v2171_v57  ;;  %v2298_v4 = vmul.f32 0.25, %v2170_v23  ;;  %v2175_v60 = vadd.f32 %v2031_v33, %v1597_v20  ;;  %v7422_v16 = vld [vmem:[#allocation176_spill] sm:$0xff]  ;;  %v7423_v20 = vld [vmem:[#allocation47_spill] sm:$0xff] }
 0x466   : > { %v2174_v47 = vadd.f32 %v1840_v49, %v1596_v52  ;;  %2425 = vst [vmem:[%s5487_s20 + $0x200] sm:$0xff] %v2297_v26  ;;  %v2300_v36 = vmul.f32 0.25, %v2172_v21  ;;  %v2301_v30 = vmul.f32 0.25, %v2173_v9  ;;  %v1599_v34 = vadd.f32 %v7415_v11, %v7414_v10  ;;  %v7425_v52 = vld [vmem:[#allocation41_spill] sm:$0xff]  ;;  %v7427_v62 = vld [vmem:[#allocation43_spill] sm:$0xff] }
 0x467   : > { %v2176_v43 = vadd.f32 %v2033_v15, %v1598_v35  ;;  %2427 = vst [vmem:[%s5487_s20 + $0x210] sm:$0xff] %v2299_v51  ;;  %2426 = vst [vmem:[%s5487_s20 + $0x208] sm:$0xff] %v2298_v4  ;;  %v2303_v0 = vmul.f32 0.25, %v2175_v60  ;;  %v1843_v3 = vpop.f32.mrb[164].mxu0  ;;  %v1601_v27 = vadd.f32 %v7417_v53, %v7416_v1  ;;  %v1600_v31 = vadd.f32 %v7419_v63, %v7418_v45  ;;  %v7428_v35 = vld [vmem:[#allocation181_spill] sm:$0xff] }
 0x468   : > { %v2302_v8 = vmul.f32 0.25, %v2174_v47  ;;  %2428 = vst [vmem:[%s5487_s20 + $0x218] sm:$0xff] %v2300_v36  ;;  %2429 = vst [vmem:[%s5487_s20 + $0x220] sm:$0xff] %v2301_v30  ;;  %v1844_v19 = vadd.f32 %v1843_v3, %v7415_v11  ;;  %v2036_v13 = vpop.f32.mrb[164].mxu1  ;;  %v1845_v58 = vpop.f32.mrb[165].mxu0  ;;  %v1602_v37 = vadd.f32 %v7420_v39, %v5251_v7  ;;  %v1603_v38 = vadd.f32 %v7422_v16, %v7421_v61  ;;  %v7429_v11 = vld [vmem:[#allocation46_spill] sm:$0xff] }
 0x469   : > { %v2304_v24 = vmul.f32 0.25, %v2176_v43  ;;  %2431 = vst [vmem:[%s5487_s20 + $0x230] sm:$0xff] %v2303_v0  ;;  %v2037_v17 = vadd.f32 %v2036_v13, %v7417_v53  ;;  %v1846_v50 = vadd.f32 %v1845_v58, %v7419_v63  ;;  %v2038_v56 = vpop.f32.mrb[165].mxu1  ;;  %v1847_v44 = vpop.f32.mrb[166].mxu0  ;;  %v1605_v54 = vadd.f32 %v7424_v40, %v7423_v20  ;;  %v7431_v53 = vld [vmem:[#allocation48_spill] sm:$0xff]  ;;  %v7433_v63 = vld [vmem:[#allocation42_spill] sm:$0xff] }
 0x46a   : > { %2430 = vst [vmem:[%s5487_s20 + $0x228] sm:$0xff] %v2302_v8  ;;  %v1604_v29 = vadd.f32 %v7426_v5, %v7425_v52  ;;  %v2177_v41 = vadd.f32 %v1844_v19, %v1599_v34  ;;  %v2039_v7 = vadd.f32 %v2038_v56, %v7420_v39  ;;  %v1848_v18 = vadd.f32 %v1847_v44, %v7422_v16  ;;  %v2040_v59 = vpop.f32.mrb[166].mxu1  ;;  %v1849_v25 = vpop.f32.mrb[167].mxu0  ;;  %v7430_v34 = vld [vmem:[#allocation53_spill] sm:$0xff]  ;;  %v7436_v61 = vld [vmem:[#allocation187_spill] sm:$0xff] }
 0x46b   : > { %2432 = vst [vmem:[%s5487_s20 + $0x238] sm:$0xff] %v2304_v24  ;;  %v1606_v57 = vadd.f32 %v7428_v35, %v7427_v62  ;;  %v2179_v23 = vadd.f32 %v2037_v17, %v1601_v27  ;;  %v2178_v33 = vadd.f32 %v1846_v50, %v1600_v31  ;;  %v2041_v49 = vadd.f32 %v2040_v59, %v7424_v40  ;;  %v2042_v26 = vpop.f32.mrb[167].mxu1  ;;  %v7432_v27 = vld [vmem:[#allocation189_spill] sm:$0xff]  ;;  %v7434_v31 = vld [vmem:[#allocation184_spill] sm:$0xff]  ;;  %v7438_v17 = vld [vmem:[#allocation183_spill] sm:$0xff] }
 0x46c   : > { %v1850_v32 = vadd.f32 %v1849_v25, %v7426_v5  ;;  %v2305_v21 = vmul.f32 0.25, %v2177_v41  ;;  %v2180_v9 = vadd.f32 %v2039_v7, %v1602_v37  ;;  %v2181_v15 = vadd.f32 %v1848_v18, %v1603_v38  ;;  %v7435_v37 = vld [vmem:[#allocation44_spill] sm:$0xff]  ;;  %v7437_v38 = vld [vmem:[#allocation55_spill] sm:$0xff]  ;;  %v7440_v52 = vld [vmem:[#allocation185_spill] sm:$0xff] }
 0x46d   : > { %v2043_v51 = vadd.f32 %v2042_v26, %v7428_v35  ;;  %v2307_v4 = vmul.f32 0.25, %v2179_v23  ;;  %v2306_v60 = vmul.f32 0.25, %v2178_v33  ;;  %v2183_v47 = vadd.f32 %v2041_v49, %v1605_v54  ;;  %v7439_v54 = vld [vmem:[#allocation49_spill] sm:$0xff]  ;;  %v7442_v41 = vld [vmem:[#allocation186_spill] sm:$0xff]  ;;  %v7444_v23 = vld [vmem:[#allocation188_spill] sm:$0xff] }
 0x46e   : > { %v2182_v36 = vadd.f32 %v1850_v32, %v1604_v29  ;;  %2433 = vst [vmem:[%s5487_s20 + $0x240] sm:$0xff] %v2305_v21  ;;  %v2308_v30 = vmul.f32 0.25, %v2180_v9  ;;  %v2309_v43 = vmul.f32 0.25, %v2181_v15  ;;  %v1607_v0 = vadd.f32 %v7430_v34, %v7429_v11  ;;  %v7441_v29 = vld [vmem:[#allocation51_spill] sm:$0xff] }
 0x46f   : > { %v2184_v10 = vadd.f32 %v2043_v51, %v1606_v57  ;;  %2435 = vst [vmem:[%s5487_s20 + $0x250] sm:$0xff] %v2307_v4  ;;  %2434 = vst [vmem:[%s5487_s20 + $0x248] sm:$0xff] %v2306_v60  ;;  %v2311_v8 = vmul.f32 0.25, %v2183_v47  ;;  %v1853_v1 = vpop.f32.mrb[168].mxu0  ;;  %v1609_v45 = vadd.f32 %v7432_v27, %v7431_v53  ;;  %v1608_v24 = vadd.f32 %v7434_v31, %v7433_v63  ;;  %v7443_v57 = vld [vmem:[#allocation54_spill] sm:$0xff]  ;;  %v7448_v63 = vld [vmem:[#allocation197_spill] sm:$0xff] }
 0x470   : > { %v2310_v3 = vmul.f32 0.25, %v2182_v36  ;;  %2436 = vst [vmem:[%s5487_s20 + $0x258] sm:$0xff] %v2308_v30  ;;  %2437 = vst [vmem:[%s5487_s20 + $0x260] sm:$0xff] %v2309_v43  ;;  %v1854_v13 = vadd.f32 %v1853_v1, %v7430_v34  ;;  %v2046_v58 = vpop.f32.mrb[168].mxu1  ;;  %v1855_v39 = vpop.f32.mrb[169].mxu0  ;;  %v1610_v16 = vadd.f32 %v7436_v61, %v7435_v37  ;;  %v1611_v50 = vadd.f32 %v7438_v17, %v7437_v38 }
 0x471   : > { %v2312_v19 = vmul.f32 0.25, %v2184_v10  ;;  %2439 = vst [vmem:[%s5487_s20 + $0x270] sm:$0xff] %v2311_v8  ;;  %v2047_v56 = vadd.f32 %v2046_v58, %v7432_v27  ;;  %v1856_v44 = vadd.f32 %v1855_v39, %v7434_v31  ;;  %v2048_v20 = vpop.f32.mrb[169].mxu1  ;;  %v1857_v40 = vpop.f32.mrb[170].mxu0  ;;  %v1613_v5 = vadd.f32 %v7440_v52, %v7439_v54  ;;  %v7446_v8 = vld [vmem:[#allocation194_spill] sm:$0xff]  ;;  %v7453_v54 = vld [vmem:[#allocation192_spill] sm:$0xff] }
 0x472   : > { %2438 = vst [vmem:[%s5487_s20 + $0x268] sm:$0xff] %v2310_v3  ;;  %v1612_v7 = vadd.f32 %v7442_v41, %v7441_v29  ;;  %v2185_v18 = vadd.f32 %v1854_v13, %v1607_v0  ;;  %v2049_v59 = vadd.f32 %v2048_v20, %v7436_v61  ;;  %v1858_v25 = vadd.f32 %v1857_v40, %v7438_v17  ;;  %v2050_v62 = vpop.f32.mrb[170].mxu1  ;;  %v1859_v35 = vpop.f32.mrb[171].mxu0  ;;  %v7445_v0 = vld [vmem:[#allocation56_spill] sm:$0xff]  ;;  %v7452_v17 = vld [vmem:[#allocation190_spill] sm:$0xff] }
 0x473   : > { %2440 = vst [vmem:[%s5487_s20 + $0x278] sm:$0xff] %v2312_v19  ;;  %v1614_v33 = vadd.f32 %v7444_v23, %v7443_v57  ;;  %v2187_v49 = vadd.f32 %v2047_v56, %v1609_v45  ;;  %v2186_v32 = vadd.f32 %v1856_v44, %v1608_v24  ;;  %v2051_v26 = vadd.f32 %v2050_v62, %v7440_v52  ;;  %v2052_v9 = vpop.f32.mrb[171].mxu1  ;;  %v7447_v45 = vld [vmem:[#allocation50_spill] sm:$0xff]  ;;  %v7449_v24 = vld [vmem:[#allocation52_spill] sm:$0xff]  ;;  %v7450_v19 = vld [vmem:[#allocation191_spill] sm:$0xff] }
 0x474   : > { %v1860_v21 = vadd.f32 %v1859_v35, %v7442_v41  ;;  %v2313_v15 = vmul.f32 0.25, %v2185_v18  ;;  %v2188_v51 = vadd.f32 %v2049_v59, %v1610_v16  ;;  %v2189_v4 = vadd.f32 %v1858_v25, %v1611_v50  ;;  %v7451_v16 = vld [vmem:[#allocation195_spill] sm:$0xff]  ;;  %v7455_v59 = vld [vmem:[#allocation61_spill] sm:$0xff]  ;;  %v7456_v25 = vld [vmem:[#allocation196_spill] sm:$0xff] }
 0x475   : > { %v2053_v60 = vadd.f32 %v2052_v9, %v7444_v23  ;;  %v2315_v47 = vmul.f32 0.25, %v2187_v49  ;;  %v2314_v36 = vmul.f32 0.25, %v2186_v32  ;;  %v2191_v30 = vadd.f32 %v2051_v26, %v1613_v5  ;;  %v7454_v5 = vld [vmem:[#allocation193_spill] sm:$0xff] }
 0x476   : > { %v2190_v43 = vadd.f32 %v1860_v21, %v1612_v7  ;;  %2441 = vst [vmem:[%s5487_s20 + $0x280] sm:$0xff] %v2313_v15  ;;  %v2316_v10 = vmul.f32 0.25, %v2188_v51  ;;  %v2317_v11 = vmul.f32 0.25, %v2189_v4  ;;  %v1615_v3 = vadd.f32 %v7446_v8, %v7445_v0  ;;  %v7459_v0 = vld [vmem:[#allocation57_spill] sm:$0xff] }
 0x477   : > { %v2192_v34 = vadd.f32 %v2053_v60, %v1614_v33  ;;  %2443 = vst [vmem:[%s5487_s20 + $0x290] sm:$0xff] %v2315_v47  ;;  %2442 = vst [vmem:[%s5487_s20 + $0x288] sm:$0xff] %v2314_v36  ;;  %v2319_v1 = vmul.f32 0.25, %v2191_v30  ;;  %v1863_v27 = vpop.f32.mrb[172].mxu0  ;;  %v1617_v31 = vadd.f32 %v7448_v63, %v7447_v45  ;;  %v1616_v13 = vadd.f32 %v7450_v19, %v7449_v24  ;;  %v7457_v36 = vld [vmem:[#allocation63_spill] sm:$0xff]  ;;  %v7458_v30 = vld [vmem:[#allocation68_spill] sm:$0xff] }
 0x478   : > { %v2318_v53 = vmul.f32 0.25, %v2190_v43  ;;  %2444 = vst [vmem:[%s5487_s20 + $0x298] sm:$0xff] %v2316_v10  ;;  %2445 = vst [vmem:[%s5487_s20 + $0x2a0] sm:$0xff] %v2317_v11  ;;  %v1864_v39 = vadd.f32 %v1863_v27, %v7446_v8  ;;  %v2056_v37 = vpop.f32.mrb[172].mxu1  ;;  %v1865_v61 = vpop.f32.mrb[173].mxu0  ;;  %v1618_v38 = vadd.f32 %v7451_v16, %v5315_v55  ;;  %v1619_v50 = vadd.f32 %v7452_v17, %v5319_v2  ;;  %v7460_v8 = vld [vmem:[#allocation70_spill] sm:$0xff] }
 0x479   : > { %v2320_v58 = vmul.f32 0.25, %v2192_v34  ;;  %2447 = vst [vmem:[%s5487_s20 + $0x2b0] sm:$0xff] %v2319_v1  ;;  %v2057_v56 = vadd.f32 %v2056_v37, %v7448_v63  ;;  %v1866_v44 = vadd.f32 %v1865_v61, %v7450_v19  ;;  %v2058_v20 = vpop.f32.mrb[173].mxu1  ;;  %v1867_v40 = vpop.f32.mrb[174].mxu0  ;;  %v1621_v52 = vadd.f32 %v7453_v54, %v5323_v6  ;;  %v7461_v1 = vld [vmem:[#allocation59_spill] sm:$0xff]  ;;  %v7463_v19 = vld [vmem:[#allocation66_spill] sm:$0xff] }
 0x47a   : > { %2446 = vst [vmem:[%s5487_s20 + $0x2a8] sm:$0xff] %v2318_v53  ;;  %v1620_v29 = vadd.f32 %v7454_v5, %v5327_v22  ;;  %v2193_v41 = vadd.f32 %v1864_v39, %v1615_v3  ;;  %v2059_v55 = vadd.f32 %v2058_v20, %v7451_v16  ;;  %v1868_v2 = vadd.f32 %v1867_v40, %v7452_v17  ;;  %v2060_v7 = vpop.f32.mrb[174].mxu1  ;;  %v1869_v18 = vpop.f32.mrb[175].mxu0  ;;  %v7462_v53 = vld [vmem:[#allocation64_spill] sm:$0xff]  ;;  %v7465_v17 = vld [vmem:[#allocation62_spill] sm:$0xff] }
 0x47b   : > { %2448 = vst [vmem:[%s5487_s20 + $0x2b8] sm:$0xff] %v2320_v58  ;;  %v1622_v62 = vadd.f32 %v7456_v25, %v7455_v59  ;;  %v2195_v35 = vadd.f32 %v2057_v56, %v1617_v31  ;;  %v2194_v57 = vadd.f32 %v1866_v44, %v1616_v13  ;;  %v2061_v23 = vadd.f32 %v2060_v7, %v7453_v54  ;;  %v2062_v22 = vpop.f32.mrb[175].mxu1  ;;  %v7464_v58 = vld [vmem:[#allocation198_spill] sm:$0xff]  ;;  %v7467_v44 = vld [vmem:[#allocation136_spill] sm:$0xff] }
 0x47c   : > { %v1870_v6 = vadd.f32 %v1869_v18, %v7454_v5  ;;  %v2321_v33 = vmul.f32 0.25, %v2193_v41  ;;  %v2196_v49 = vadd.f32 %v2059_v55, %v1618_v38  ;;  %v2197_v32 = vadd.f32 %v1868_v2, %v1619_v50  ;;  %v7466_v50 = vld [vmem:[#allocation199_spill] sm:$0xff]  ;;  %v7468_v20 = vld [vmem:[#allocation200_spill] sm:$0xff]  ;;  %v7470_v41 = vld [vmem:[#allocation201_spill] sm:$0xff] }
 0x47d   : > { %v2063_v26 = vadd.f32 %v2062_v22, %v7456_v25  ;;  %v2323_v21 = vmul.f32 0.25, %v2195_v35  ;;  %v2322_v9 = vmul.f32 0.25, %v2194_v57  ;;  %v2199_v15 = vadd.f32 %v2061_v23, %v1621_v52 }
 0x47e   : > { %v2198_v51 = vadd.f32 %v1870_v6, %v1620_v29  ;;  %2449 = vst [vmem:[%s5487_s20 + $0x2c0] sm:$0xff] %v2321_v33  ;;  %v2324_v4 = vmul.f32 0.25, %v2196_v49  ;;  %v2325_v60 = vmul.f32 0.25, %v2197_v32  ;;  %v1623_v43 = vadd.f32 %v7458_v30, %v7457_v36  ;;  %v7469_v29 = vld [vmem:[#allocation58_spill] sm:$0xff]  ;;  %v7473_v36 = vld [vmem:[#allocation69_spill] sm:$0xff] }
 0x47f   : > { %v2200_v47 = vadd.f32 %v2063_v26, %v1622_v62  ;;  %2451 = vst [vmem:[%s5487_s20 + $0x2d0] sm:$0xff] %v2323_v21  ;;  %2450 = vst [vmem:[%s5487_s20 + $0x2c8] sm:$0xff] %v2322_v9  ;;  %v2327_v10 = vmul.f32 0.25, %v2199_v15  ;;  %v1873_v34 = vpop.f32.mrb[176].mxu0  ;;  %v1625_v3 = vadd.f32 %v7460_v8, %v7459_v0  ;;  %v1624_v27 = vadd.f32 %v7462_v53, %v7461_v1  ;;  %v7471_v9 = vld [vmem:[#allocation60_spill] sm:$0xff]  ;;  %v7472_v15 = vld [vmem:[#allocation75_spill] sm:$0xff] }
 0x480   : > { %v2326_v11 = vmul.f32 0.25, %v2198_v51  ;;  %2452 = vst [vmem:[%s5487_s20 + $0x2d8] sm:$0xff] %v2324_v4  ;;  %2453 = vst [vmem:[%s5487_s20 + $0x2e0] sm:$0xff] %v2325_v60  ;;  %v1874_v63 = vadd.f32 %v1873_v34, %v7458_v30  ;;  %v2066_v31 = vpop.f32.mrb[176].mxu1  ;;  %v1875_v24 = vpop.f32.mrb[177].mxu0  ;;  %v1626_v13 = vadd.f32 %v7463_v19, %v5347_v46  ;;  %v1627_v39 = vadd.f32 %v7464_v58, %v5351_v12  ;;  %v7474_v30 = vld [vmem:[#allocation77_spill] sm:$0xff] }
 0x481   : > { %v2328_v45 = vmul.f32 0.25, %v2200_v47  ;;  %2455 = vst [vmem:[%s5487_s20 + $0x2f0] sm:$0xff] %v2327_v10  ;;  %v2067_v37 = vadd.f32 %v2066_v31, %v7460_v8  ;;  %v1876_v61 = vadd.f32 %v1875_v24, %v7462_v53  ;;  %v2068_v16 = vpop.f32.mrb[177].mxu1  ;;  %v1877_v38 = vpop.f32.mrb[178].mxu0  ;;  %v1629_v56 = vadd.f32 %v7466_v50, %v7465_v17  ;;  %v7475_v10 = vld [vmem:[#allocation137_spill] sm:$0xff]  ;;  %v7477_v53 = vld [vmem:[#allocation206_spill] sm:$0xff] }
 0x482   : > { %2454 = vst [vmem:[%s5487_s20 + $0x2e8] sm:$0xff] %v2326_v11  ;;  %v1628_v40 = vadd.f32 %v7468_v20, %v7467_v44  ;;  %v2201_v54 = vadd.f32 %v1874_v63, %v1623_v43  ;;  %v2069_v46 = vadd.f32 %v2068_v16, %v7463_v19  ;;  %v1878_v12 = vadd.f32 %v1877_v38, %v7464_v58  ;;  %v2070_v52 = vpop.f32.mrb[178].mxu1  ;;  %v1879_v5 = vpop.f32.mrb[179].mxu0  ;;  %v7476_v11 = vld [vmem:[#allocation203_spill] sm:$0xff]  ;;  %v7479_v58 = vld [vmem:[#allocation204_spill] sm:$0xff] }
 0x483   : > { %2456 = vst [vmem:[%s5487_s20 + $0x2f8] sm:$0xff] %v2328_v45  ;;  %v1630_v55 = vadd.f32 %v7470_v41, %v7469_v29  ;;  %v2203_v2 = vadd.f32 %v2067_v37, %v1625_v3  ;;  %v2202_v7 = vadd.f32 %v1876_v61, %v1624_v27  ;;  %v2071_v18 = vadd.f32 %v2070_v52, %v7466_v50  ;;  %v2072_v25 = vpop.f32.mrb[179].mxu1  ;;  %v7478_v45 = vld [vmem:[#allocation202_spill] sm:$0xff]  ;;  %v7480_v37 = vld [vmem:[#allocation205_spill] sm:$0xff] }
 0x484   : > { %v1880_v59 = vadd.f32 %v1879_v5, %v7468_v20  ;;  %v2329_v62 = vmul.f32 0.25, %v2201_v54  ;;  %v2204_v35 = vadd.f32 %v2069_v46, %v1626_v13  ;;  %v2205_v57 = vadd.f32 %v1878_v12, %v1627_v39  ;;  %v7481_v50 = vld [vmem:[#allocation65_spill] sm:$0xff] }
 0x485   : > { %v2073_v23 = vadd.f32 %v2072_v25, %v7470_v41  ;;  %v2331_v6 = vmul.f32 0.25, %v2203_v2  ;;  %v2330_v22 = vmul.f32 0.25, %v2202_v7  ;;  %v2207_v33 = vadd.f32 %v2071_v18, %v1629_v56  ;;  %v7482_v56 = vld [vmem:[#allocation207_spill] sm:$0xff] }
 0x486   : > { %v2206_v49 = vadd.f32 %v1880_v59, %v1628_v40  ;;  %2457 = vst [vmem:[%s5487_s20 + $0x300] sm:$0xff] %v2329_v62  ;;  %v2332_v32 = vmul.f32 0.25, %v2204_v35  ;;  %v2333_v26 = vmul.f32 0.25, %v2205_v57  ;;  %v1631_v51 = vadd.f32 %v7472_v15, %v7471_v9  ;;  %v7483_v25 = vld [vmem:[#allocation67_spill] sm:$0xff] }
 0x487   : > { %v2208_v21 = vadd.f32 %v2073_v23, %v1630_v55  ;;  %2459 = vst [vmem:[%s5487_s20 + $0x310] sm:$0xff] %v2331_v6  ;;  %2458 = vst [vmem:[%s5487_s20 + $0x308] sm:$0xff] %v2330_v22  ;;  %v2335_v4 = vmul.f32 0.25, %v2207_v33  ;;  %v1883_v47 = vpop.f32.mrb[180].mxu0  ;;  %v1633_v43 = vadd.f32 %v7474_v30, %v7473_v36  ;;  %v1632_v34 = vadd.f32 %v7476_v11, %v7475_v10  ;;  %v7484_v62 = vld [vmem:[#allocation139_spill] sm:$0xff]  ;;  %v7486_v33 = vld [vmem:[#allocation140_spill] sm:$0xff] }
 0x488   : > { %v2334_v60 = vmul.f32 0.25, %v2206_v49  ;;  %2460 = vst [vmem:[%s5487_s20 + $0x318] sm:$0xff] %v2332_v32  ;;  %2461 = vst [vmem:[%s5487_s20 + $0x320] sm:$0xff] %v2333_v26  ;;  %v1884_v8 = vadd.f32 %v1883_v47, %v7472_v15  ;;  %v2076_v3 = vpop.f32.mrb[180].mxu1  ;;  %v1885_v1 = vpop.f32.mrb[181].mxu0  ;;  %v1634_v27 = vadd.f32 %v7477_v53, %v5379_v28  ;;  %v1635_v63 = vadd.f32 %v7478_v45, %v5383_v42  ;;  %v7485_v22 = vld [vmem:[#allocation71_spill] sm:$0xff] }
 0x489   : > { %v2336_v0 = vmul.f32 0.25, %v2208_v21  ;;  %2463 = vst [vmem:[%s5487_s20 + $0x330] sm:$0xff] %v2335_v4  ;;  %v2077_v31 = vadd.f32 %v2076_v3, %v7474_v30  ;;  %v1886_v24 = vadd.f32 %v1885_v1, %v7476_v11  ;;  %v2078_v19 = vpop.f32.mrb[181].mxu1  ;;  %v1887_v13 = vpop.f32.mrb[182].mxu0  ;;  %v1637_v39 = vadd.f32 %v7479_v58, %v5387_v14  ;;  %v7487_v32 = vld [vmem:[#allocation73_spill] sm:$0xff]  ;;  %v7491_v30 = vld [vmem:[#allocation78_spill] sm:$0xff] }
 0x48a   : > { %2462 = vst [vmem:[%s5487_s20 + $0x328] sm:$0xff] %v2334_v60  ;;  %v1636_v61 = vadd.f32 %v7480_v37, %v5391_v48  ;;  %v2209_v16 = vadd.f32 %v1884_v8, %v1631_v51  ;;  %v2079_v28 = vadd.f32 %v2078_v19, %v7477_v53  ;;  %v1888_v42 = vadd.f32 %v1887_v13, %v7478_v45  ;;  %v2080_v38 = vpop.f32.mrb[182].mxu1  ;;  %v1889_v17 = vpop.f32.mrb[183].mxu0  ;;  %v7488_v26 = vld [vmem:[#allocation209_spill] sm:$0xff]  ;;  %v7489_v60 = vld [vmem:[#allocation76_spill] sm:$0xff]  ;;  %v7494_v1 = vld [vmem:[#allocation79_spill] sm:$0xff] }
 0x48b   : > { %2464 = vst [vmem:[%s5487_s20 + $0x338] sm:$0xff] %v2336_v0  ;;  %v1638_v44 = vadd.f32 %v7482_v56, %v7481_v50  ;;  %v2211_v20 = vadd.f32 %v2077_v31, %v1633_v43  ;;  %v2210_v40 = vadd.f32 %v1886_v24, %v1632_v34  ;;  %v2081_v54 = vadd.f32 %v2080_v38, %v7479_v58  ;;  %v2082_v48 = vpop.f32.mrb[183].mxu1  ;;  %v7490_v47 = vld [vmem:[#allocation81_spill] sm:$0xff]  ;;  %v7492_v43 = vld [vmem:[#allocation208_spill] sm:$0xff]  ;;  %v7496_v45 = vld [vmem:[#allocation210_spill] sm:$0xff] }
 0x48c   : > { %v1890_v14 = vadd.f32 %v1889_v17, %v7480_v37  ;;  %v2337_v46 = vmul.f32 0.25, %v2209_v16  ;;  %v2212_v12 = vadd.f32 %v2079_v28, %v1634_v27  ;;  %v2213_v52 = vadd.f32 %v1888_v42, %v1635_v63  ;;  %v7493_v3 = vld [vmem:[#allocation72_spill] sm:$0xff]  ;;  %v7495_v27 = vld [vmem:[#allocation74_spill] sm:$0xff]  ;;  %v7498_v37 = vld [vmem:[#allocation211_spill] sm:$0xff] }
 0x48d   : > { %v2083_v5 = vadd.f32 %v2082_v48, %v7482_v56  ;;  %v2339_v29 = vmul.f32 0.25, %v2211_v20  ;;  %v2338_v41 = vmul.f32 0.25, %v2210_v40  ;;  %v2215_v55 = vadd.f32 %v2081_v54, %v1637_v39  ;;  %v7497_v39 = vld [vmem:[#allocation138_spill] sm:$0xff] }
 0x48e   : > { %v2214_v2 = vadd.f32 %v1890_v14, %v1636_v61  ;;  %2465 = vst [vmem:[%s5487_s20 + $0x340] sm:$0xff] %v2337_v46  ;;  %v2340_v7 = vmul.f32 0.25, %v2212_v12  ;;  %v2341_v18 = vmul.f32 0.25, %v2213_v52  ;;  %v1639_v35 = vadd.f32 %v7484_v62, %v7483_v25 }
 0x48f   : > { %v2216_v59 = vadd.f32 %v2083_v5, %v1638_v44  ;;  %2467 = vst [vmem:[%s5487_s20 + $0x350] sm:$0xff] %v2339_v29  ;;  %2466 = vst [vmem:[%s5487_s20 + $0x348] sm:$0xff] %v2338_v41  ;;  %v2343_v57 = vmul.f32 0.25, %v2215_v55  ;;  %v1893_v6 = vpop.f32.mrb[184].mxu0  ;;  %v1641_v49 = vadd.f32 %v7486_v33, %v7485_v22  ;;  %v1640_v21 = vadd.f32 %v7488_v26, %v7487_v32  ;;  %v7499_v5 = vld [vmem:[#allocation80_spill] sm:$0xff]  ;;  %v7506_v32 = vld [vmem:[#allocation217_spill] sm:$0xff] }
 0x490   : > { %v2342_v23 = vmul.f32 0.25, %v2214_v2  ;;  %2468 = vst [vmem:[%s5487_s20 + $0x358] sm:$0xff] %v2340_v7  ;;  %2469 = vst [vmem:[%s5487_s20 + $0x360] sm:$0xff] %v2341_v18  ;;  %v1894_v15 = vadd.f32 %v1893_v6, %v7484_v62  ;;  %v2086_v51 = vpop.f32.mrb[184].mxu1  ;;  %v1895_v4 = vpop.f32.mrb[185].mxu0  ;;  %v1642_v36 = vadd.f32 %v7490_v47, %v7489_v60  ;;  %v1643_v10 = vadd.f32 %v7492_v43, %v7491_v30  ;;  %v7500_v29 = vld [vmem:[#allocation216_spill] sm:$0xff] }
 0x491   : > { %v2344_v9 = vmul.f32 0.25, %v2216_v59  ;;  %2471 = vst [vmem:[%s5487_s20 + $0x370] sm:$0xff] %v2343_v57  ;;  %v2087_v11 = vadd.f32 %v2086_v51, %v7486_v33  ;;  %v1896_v34 = vadd.f32 %v1895_v4, %v7488_v26  ;;  %v2088_v0 = vpop.f32.mrb[185].mxu1  ;;  %v1897_v8 = vpop.f32.mrb[186].mxu0  ;;  %v1645_v53 = vadd.f32 %v7494_v1, %v7493_v3  ;;  %v7501_v18 = vld [vmem:[#allocation82_spill] sm:$0xff]  ;;  %v7502_v59 = vld [vmem:[#allocation219_spill] sm:$0xff] }
 0x492   : > { %2470 = vst [vmem:[%s5487_s20 + $0x368] sm:$0xff] %v2342_v23  ;;  %v1644_v63 = vadd.f32 %v7496_v45, %v7495_v27  ;;  %v2217_v31 = vadd.f32 %v1894_v15, %v1639_v35  ;;  %v2089_v24 = vadd.f32 %v2088_v0, %v7490_v47  ;;  %v1898_v19 = vadd.f32 %v1897_v8, %v7492_v43  ;;  %v2090_v13 = vpop.f32.mrb[186].mxu1  ;;  %v1899_v58 = vpop.f32.mrb[187].mxu0  ;;  %v7503_v62 = vld [vmem:[#allocation220_spill] sm:$0xff]  ;;  %v7504_v35 = vld [vmem:[#allocation213_spill] sm:$0xff]  ;;  %v7510_v30 = vld [vmem:[#allocation214_spill] sm:$0xff] }
 0x493   : > { %2472 = vst [vmem:[%s5487_s20 + $0x378] sm:$0xff] %v2344_v9  ;;  %v1646_v61 = vadd.f32 %v7498_v37, %v7497_v39  ;;  %v2219_v16 = vadd.f32 %v2087_v11, %v1641_v49  ;;  %v2218_v28 = vadd.f32 %v1896_v34, %v1640_v21  ;;  %v2091_v42 = vadd.f32 %v2090_v13, %v7494_v1  ;;  %v2092_v17 = vpop.f32.mrb[187].mxu1  ;;  %v7505_v49 = vld [vmem:[#allocation221_spill] sm:$0xff]  ;;  %v7507_v21 = vld [vmem:[#allocation222_spill] sm:$0xff]  ;;  %v7508_v9 = vld [vmem:[#allocation212_spill] sm:$0xff] }
 0x494   : > { %v1900_v38 = vadd.f32 %v1899_v58, %v7496_v45  ;;  %v2345_v50 = vmul.f32 0.25, %v2217_v31  ;;  %v2220_v56 = vadd.f32 %v2089_v24, %v1642_v36  ;;  %v2221_v44 = vadd.f32 %v1898_v19, %v1643_v10  ;;  %v7509_v36 = vld [vmem:[#allocation223_spill] sm:$0xff]  ;;  %v7511_v10 = vld [vmem:[#allocation224_spill] sm:$0xff]  ;;  %v7513_v27 = vld [vmem:[#allocation225_spill] sm:$0xff] }
 0x495   : > { %v2093_v20 = vadd.f32 %v2092_v17, %v7498_v37  ;;  %v2347_v40 = vmul.f32 0.25, %v2219_v16  ;;  %v2346_v54 = vmul.f32 0.25, %v2218_v28  ;;  %v2223_v14 = vadd.f32 %v2091_v42, %v1645_v53  ;;  %v7512_v11 = vld [vmem:[#allocation215_spill] sm:$0xff]  ;;  %v7514_v45 = vld [vmem:[#allocation218_spill] sm:$0xff] }
 0x496   : > { %v2222_v48 = vadd.f32 %v1900_v38, %v1644_v63  ;;  %2473 = vst [vmem:[%s5487_s20 + $0x380] sm:$0xff] %v2345_v50  ;;  %v2348_v46 = vmul.f32 0.25, %v2220_v56  ;;  %v2349_v12 = vmul.f32 0.25, %v2221_v44  ;;  %v1647_v41 = vadd.f32 %v7500_v29, %v7499_v5 }
 0x497   : > { %v2224_v52 = vadd.f32 %v2093_v20, %v1646_v61  ;;  %2475 = vst [vmem:[%s5487_s20 + $0x390] sm:$0xff] %v2347_v40  ;;  %2474 = vst [vmem:[%s5487_s20 + $0x388] sm:$0xff] %v2346_v54  ;;  %v2351_v55 = vmul.f32 0.25, %v2223_v14  ;;  %v1903_v7 = vpop.f32.mrb[188].mxu0  ;;  %v1649_v25 = vadd.f32 %v7502_v59, %v7501_v18  ;;  %v1648_v57 = vadd.f32 %v7504_v35, %v7503_v62 }
 0x498   : > { %v2350_v2 = vmul.f32 0.25, %v2222_v48  ;;  %2476 = vst [vmem:[%s5487_s20 + $0x398] sm:$0xff] %v2348_v46  ;;  %2477 = vst [vmem:[%s5487_s20 + $0x3a0] sm:$0xff] %v2349_v12  ;;  %v1904_v6 = vadd.f32 %v1903_v7, %v7500_v29  ;;  %v2096_v22 = vpop.f32.mrb[188].mxu1  ;;  %v1905_v33 = vpop.f32.mrb[189].mxu0  ;;  %v1650_v26 = vadd.f32 %v7506_v32, %v7505_v49  ;;  %v1651_v15 = vadd.f32 %v7508_v9, %v7507_v21 }
 0x499   : > { %v2352_v23 = vmul.f32 0.25, %v2224_v52  ;;  %2479 = vst [vmem:[%s5487_s20 + $0x3b0] sm:$0xff] %v2351_v55  ;;  %v2097_v51 = vadd.f32 %v2096_v22, %v7502_v59  ;;  %v1906_v4 = vadd.f32 %v1905_v33, %v7504_v35  ;;  %v2098_v60 = vpop.f32.mrb[189].mxu1  ;;  %v1907_v47 = vpop.f32.mrb[190].mxu0  ;;  %v1653_v43 = vadd.f32 %v7510_v30, %v7509_v36 }
 0x49a   : > { %2478 = vst [vmem:[%s5487_s20 + $0x3a8] sm:$0xff] %v2350_v2  ;;  %v1652_v34 = vadd.f32 %v7512_v11, %v7511_v10  ;;  %v2225_v0 = vadd.f32 %v1904_v6, %v1647_v41  ;;  %v2099_v8 = vadd.f32 %v2098_v60, %v7506_v32  ;;  %v1908_v3 = vadd.f32 %v1907_v47, %v7508_v9  ;;  %v2100_v1 = vpop.f32.mrb[190].mxu1  ;;  %v1909_v53 = vpop.f32.mrb[191].mxu0 }
 0x49b   : > { %2480 = vst [vmem:[%s5487_s20 + $0x3b8] sm:$0xff] %v2352_v23  ;;  %v1654_v63 = vadd.f32 %v7514_v45, %v7513_v27  ;;  %v2227_v31 = vadd.f32 %v2097_v51, %v1649_v25  ;;  %v2226_v24 = vadd.f32 %v1906_v4, %v1648_v57  ;;  %v2101_v19 = vadd.f32 %v2100_v1, %v7510_v30  ;;  %v2102_v58 = vpop.f32.mrb[191].mxu1 }
 0x49c   : > { %v1910_v13 = vadd.f32 %v1909_v53, %v7512_v11  ;;  %v2353_v39 = vmul.f32 0.25, %v2225_v0  ;;  %v2228_v37 = vadd.f32 %v2099_v8, %v1650_v26  ;;  %v2229_v61 = vadd.f32 %v1908_v3, %v1651_v15 }
 0x49d   : > { %v2103_v16 = vadd.f32 %v2102_v58, %v7514_v45  ;;  %v2355_v28 = vmul.f32 0.25, %v2227_v31  ;;  %v2354_v42 = vmul.f32 0.25, %v2226_v24  ;;  %v2231_v38 = vadd.f32 %v2101_v19, %v1653_v43 }
 0x49e   : > { %v2230_v17 = vadd.f32 %v1910_v13, %v1652_v34  ;;  %2481 = vst [vmem:[%s5487_s20 + $0x3c0] sm:$0xff] %v2353_v39  ;;  %v2356_v50 = vmul.f32 0.25, %v2228_v37  ;;  %v2357_v56 = vmul.f32 0.25, %v2229_v61 }
 0x49f   : > { %v2232_v44 = vadd.f32 %v2103_v16, %v1654_v63  ;;  %2483 = vst [vmem:[%s5487_s20 + $0x3d0] sm:$0xff] %v2355_v28  ;;  %2482 = vst [vmem:[%s5487_s20 + $0x3c8] sm:$0xff] %v2354_v42  ;;  %v2359_v20 = vmul.f32 0.25, %v2231_v38 }
 0x4a0   : > { %v2358_v40 = vmul.f32 0.25, %v2230_v17  ;;  %2484 = vst [vmem:[%s5487_s20 + $0x3d8] sm:$0xff] %v2356_v50  ;;  %2485 = vst [vmem:[%s5487_s20 + $0x3e0] sm:$0xff] %v2357_v56 }
 0x4a1   : > { %v2360_v54 = vmul.f32 0.25, %v2232_v44  ;;  %2487 = vst [vmem:[%s5487_s20 + $0x3f0] sm:$0xff] %v2359_v20 }
 0x4a2   : > { %2486 = vst [vmem:[%s5487_s20 + $0x3e8] sm:$0xff] %v2358_v40 }
 0x4a3   : > { %2488 = vst [vmem:[%s5487_s20 + $0x3f8] sm:$0xff] %v2360_v54 }
 0x4a4   : > { %2982 = shalt.err (!%p2979_p11)
}
 0x4a5   : > { %s2983_s28 = scalar_lea.hbm %s5975_s26, 16384  ;;  %s2987_s3 = scalar_lea.hbm %s6030_s2, 32768 }
 0x4a6   : > { %p2984_p13 = scmp.ne.s32.totalorder %s5975_s26, %s2983_s28  ;;  %p2988_p12 = scmp.lt.u32.totalorder %s5975_s26, %s6030_s2 }
 0x4a7   : > { %p2989_p3 = scmp.lt.u32.totalorder %s2987_s3, %s2983_s28  ;;  %p2991_p8 = scmp.lt.u32.totalorder %s2983_s28, %s5975_s26 }
 0x4a8   : > { %p2985_p2 = pnand %p2984_p13, %p7515_p9 }
 0x4a9   : > { %p2990_p0 = por %p2989_p3, %p2988_p12 }
 0x4aa   : > { %p2986_p6 = pneg %p2985_p2 }
 0x4ab   : > { %p2992_p10 = por %p2991_p8, %p2990_p0 }
 0x4ad   : > { %p2993_p1 = pnand %p2992_p10, %p2986_p6 }
 0x4af   : > { %2996 = shalt.err (!%p2993_p1)
}
 0x4b0   : > { %s3049_s7 = smov 512   ;;  %s3050_s24 = smov 1024  }
 0x4b1   : > { %s3051_s20 = smov 32  }
 0x4b2   : > { %2644 = dma.vmem_to_hbm [thread:$0]  (%p7515_p9), %s5979_s4, 16384, %s5975_s26, %s2490_s8, %s3049_s7, %s3050_s24, %s3051_s20  }
 0x4b3 PF: > { %s2518_s23 = sand.u32 1, %s3027_s9   ;;  %p7516_p4 = scmp.ne.s32.totalorder %s6605_s22, 0 }
 0x4b4   : > { %p7517_p7 = scmp.ge.s32.totalorder %s3039_s12, 2  ;;  %s2519_s13 = scalar_lea.sflag [#allocation4], %s2518_s23 }
 0x4b6   : > { %p2655_p5 = pnand %p7517_p7, %p7516_p4 }
 0x4b8   : > { %3022 = dma.done.wait (!%p2655_p5), %s2519_s13, 16384  }
 0x4b9   : > { %3024 = vsyncadd (!%p2655_p5), %s2519_s13, 4294950912  ;;  %p16_p11 = scmp.ge.s32.totalorder %s3092_s15, 4   ;;  %s7518_s9 = smov %s3031_s10 }
 0x4ba   : > { %s7519_s10 = smov %s3035_s11  ;;  %s7520_s11 = smov %s3104_s18 }
 0x4bb   : > { %s7521_s12 = smov %s3092_s15  ;;  %18 = sbr.rel (!%p16_p11) target bundleno = 6 (0x6), region = 78 }
 0x4c2   :  { %2524 = vsyncpa [#allocation3], 1 }
 0x4c3   :  { %2526 = vsyncpa [#allocation3 + $0x1], 1 }
 0x4c4   :  { %2527 = vsyncpa [#allocation6], 1 }
 0x4c5   :  { %2529 = vsyncpa [#allocation6 + $0x1], 1 }
 0x4c6   :  { %2530 = vsyncpa [#allocation4], 1 }
 0x4c7   :  { %2532 = vsyncpa [#allocation4 + $0x1], 1 }

</bundles_post_ra>
